<compile_context>
chip_gen: v7x
topology: tpu7x:2x2x1
jax: 0.10.0
libtpu: 0.0.40
codegen_flags: <defaults>
</compile_context>

<pallas_src>
import math
import functools

import jax
import jax.numpy as jnp
import numpy as np
from jax.experimental import pallas as pl
from jax.experimental.pallas import tpu as pltpu

BN_EPS = 1e-5
LN_EPS = 1e-5
# MXU operand dtype (f32 accumulation via preferred_element_type).  bf16 is the
# MXU-native path on every generation; all elementwise math stays f32.
MXU_DTYPE = jnp.bfloat16


# ----------------------------------------------------------------------------
# shared math helpers (pure jnp: usable both inside the kernel and in the
# pure-JAX reference, so the correctness check is apples-to-apples)
# ----------------------------------------------------------------------------
def _mm(a, b):
    return jnp.dot(a.astype(MXU_DTYPE), b.astype(MXU_DTYPE),
                   preferred_element_type=jnp.float32)


def _bmm(eq, a, b):
    return jnp.einsum(eq, a.astype(MXU_DTYPE), b.astype(MXU_DTYPE),
                      preferred_element_type=jnp.float32)


def _layer_norm(z, g, b):
    mu = jnp.mean(z, axis=-1, keepdims=True)
    var = jnp.mean(jnp.square(z - mu), axis=-1, keepdims=True)
    return (z - mu) * jax.lax.rsqrt(var + LN_EPS) * g + b


# ----------------------------------------------------------------------------
# Fused forward kernel: one grid step == `nb` batch elements, folded into the
# matmul row axis (R = nb * L).
# ----------------------------------------------------------------------------
def fused_forward_kernel(x_ref,
                         cw1_ref, ss1_ref, cw2_ref, ss2_ref, cw3_ref, ss3_ref,
                         wi_ref, bi_ref,
                         wqkv_ref, bqkv_ref, wo_ref,
                         w1_ref, b1_ref, w2_ref, vec_ref,
                         wf_ref, bf_ref,
                         o_ref, *, nb, seq_len, nhead, num_layers):
    L = seq_len
    x = x_ref[...]                                  # (nb, L, Cin) f32
    R = nb * L
    h = x.reshape(R, x.shape[-1])                   # fold batch into rows

    # per-sequence boundary masks, hoisted once and shared by all three convs
    rid = jax.lax.broadcasted_iota(jnp.int32, (R, 1), 0)
    first = (rid % L) == 0
    last = (rid % L) == (L - 1)

    def conv_bn_relu(h, wcat_ref, ss_ref):
        """Conv1d(k=3,pad=1) + eval-mode BN (folded) + ReLU as ONE matmul.
        Operand = lane-concat [h[l-1] | h[l] | h[l+1]] (boundaries zeroed per
        sequence via row%L masks); weight was reshaped to (3*Cin, Cout) in init."""
        h_prev = jnp.where(first, 0.0, pltpu.roll(h, 1, 0))       # h[l-1]
        h_next = jnp.where(last, 0.0, pltpu.roll(h, R - 1, 0))    # h[l+1]
        taps = jnp.concatenate([h_prev, h, h_next], axis=-1)      # (R, 3*Cin)
        y = _mm(taps, wcat_ref[...])                              # one MXU push
        ss = ss_ref[...]                                          # (2, Cout)
        return jnp.maximum(y * ss[0:1] + ss[1:2], 0.0)            # dropout == id

    # --- CNN stack: 3x (Conv1d + BN(eval) + ReLU), dropout = identity --------
    h = conv_bn_relu(h, cw1_ref, ss1_ref)
    h = conv_bn_relu(h, cw2_ref, ss2_ref)
    h = conv_bn_relu(h, cw3_ref, ss3_ref)

    # --- input_layer: Linear(2*cnn_filters -> D) ------------------------------
    h = _mm(h, wi_ref[...]) + bi_ref[...]           # (R, D)
    D = h.shape[-1]
    dh = D // nhead
    scale = 1.0 / math.sqrt(dh)

    # --- Transformer encoder (post-norm, relu FFN, eval dropout) --------------
    # TODO(synk): whole-(L,L)-scores attention is fine at L=16; re-derive tiling
    # (flash-style KV blocking, sized against v7x's 32 MiB default scoped VMEM)
    # before scaling L.
    for l in range(num_layers):                     # static loop, weights differ
        vec = vec_ref[l]                            # (6, D): bo,g1,be1,b2,g2,be2
        bo, g1, be1 = vec[0:1], vec[1:2], vec[2:3]
        b2, g2, be2 = vec[3:4], vec[4:5], vec[5:6]

        # fused Q/K/V projection: ONE (R,D)x(D,3D) MXU push
        qkv = _mm(h, wqkv_ref[l]) + bqkv_ref[l]     # (R, 3D)
        q = qkv[:, :D].reshape(nb, L, D)
        k = qkv[:, D:2 * D].reshape(nb, L, D)
        v = qkv[:, 2 * D:].reshape(nb, L, D)

        # scaled dot-product attention: static head loop, batched over sequences
        ctx = []
        for hh in range(nhead):
            sl = slice(hh * dh, (hh + 1) * dh)
            qh, kh, vh = q[:, :, sl], k[:, :, sl], v[:, :, sl]    # (nb, L, dh)
            s = _bmm('bld,bmd->blm', qh, kh) * scale              # (nb, L, L)
            s = s - jnp.max(s, axis=-1, keepdims=True)
            e = jnp.exp(s)
            p = e * pl.reciprocal(jnp.sum(e, axis=-1, keepdims=True), approx=True)
            ctx.append(_bmm('blm,bmd->bld', p, vh))               # (nb, L, dh)

        # lane-pack heads -> (R, D) and hit the original Wo in ONE push
        ctx = jnp.concatenate(ctx, axis=-1).reshape(R, D)
        attn = _mm(ctx, wo_ref[l]) + bo

        # residual + LayerNorm 1, FFN(relu) + residual + LayerNorm 2
        x1 = _layer_norm(h + attn, g1, be1)
        ff = _mm(jnp.maximum(_mm(x1, w1_ref[l]) + b1_ref[l], 0.0),
                 w2_ref[l]) + b2
        h = _layer_norm(x1 + ff, g2, be2)

    # --- per-sequence mean + fc(D,1) as a VPU lane-reduce (no MXU push) -------
    m = jnp.concatenate(
        [jnp.mean(h[b * L:(b + 1) * L], axis=0, keepdims=True) for b in range(nb)],
        axis=0)                                                   # (nb, D)
    out = jnp.sum(m * wf_ref[...], axis=-1, keepdims=True) + bf_ref[...]  # (nb,1)
    o_ref[0] = out


def _replicated_spec(a):
    nd = a.ndim
    return pl.BlockSpec(a.shape, lambda g, _nd=nd: (0,) * _nd)


def _default_batch_per_step(B):
    """v7x has 2 TensorCores per chip -> split the batch across them; single-TC
    chips (v5e/v6e) fold the whole batch into one grid step."""
    try:
        kind = jax.devices()[0].device_kind.lower()
    except Exception:
        kind = ""
    if ("v7" in kind or "tpu7" in kind) and B % 2 == 0:
        return B // 2
    return B


def cnn_transformer_forward(x, params, nhead, num_layers, batch_per_step=None):
    # x: (B, L, input_dim) f32
    B, L, Cin = x.shape
    nb = batch_per_step if batch_per_step is not None else _default_batch_per_step(B)
    assert B % nb == 0
    G = B // nb

    pk = params['packed']
    (cw1, ss1), (cw2, ss2), (cw3, ss3) = pk['convs']
    weights = [cw1, ss1, cw2, ss2, cw3, ss3,
               pk['wi'], pk['bi'],
               pk['wqkv'], pk['bqkv'], pk['wo'],
               pk['w1'], pk['b1'], pk['w2'], pk['vec'],
               pk['wf_row'], pk['bf']]

    kernel = functools.partial(fused_forward_kernel, nb=nb, seq_len=L,
                               nhead=nhead, num_layers=num_layers)
    out = pl.pallas_call(
        kernel,
        out_shape=jax.ShapeDtypeStruct((G, nb, 1), jnp.float32),
        grid=(G,),
        in_specs=[pl.BlockSpec((nb, L, Cin), lambda g: (g, 0, 0))]
                 + [_replicated_spec(w) for w in weights],
        out_specs=pl.BlockSpec((1, nb, 1), lambda g: (g, 0, 0)),
        compiler_params=pltpu.CompilerParams(
            dimension_semantics=("parallel",)),   # v7x: one grid step per TC
    )(x, *weights)
    return out.reshape(B, 1)


# ----------------------------------------------------------------------------
# Parameter init (deterministic, synthetic).  Flat per-layer weights are kept
# for the reference; packed / layer-stacked views are built for the kernel.
# ----------------------------------------------------------------------------
def init_params(key, input_dim, cnn_filters, transformer_dim, nhead, num_layers):
    D = transformer_dim
    F = 4 * D                      # module passes dim_feedforward = transformer_dim * 4
    keys = iter(jax.random.split(key, 512))

    def nrm(shape, s=0.1):
        return (s * jax.random.normal(next(keys), shape)).astype(jnp.float32)

    p = {}
    # conv stacks (weight stored as (3, Cin, Cout) == torch conv_w.transpose(2,1,0))
    chans = [(input_dim, cnn_filters), (cnn_filters, cnn_filters),
             (cnn_filters, 2 * cnn_filters)]
    p['convs'] = []
    conv_packed = []
    for cin, cout in chans:
        w = nrm((3, cin, cout))
        bias = nrm((cout,))
        gamma = 1.0 + nrm((cout,))
        beta = nrm((cout,))
        rmean = nrm((cout,))
        rvar = 1.0 + 0.1 * jnp.abs(jax.random.normal(next(keys), (cout,)))
        scale = gamma / jnp.sqrt(rvar + BN_EPS)               # eval-mode BN fold
        shift = (bias - rmean) * scale + beta
        scale = scale.reshape(1, cout).astype(jnp.float32)
        shift = shift.reshape(1, cout).astype(jnp.float32)
        p['convs'].append((w, scale, shift))
        conv_packed.append((w.reshape(3 * cin, cout),                 # fused taps
                            jnp.concatenate([scale, shift], axis=0)))  # (2, cout)

    # input_layer
    p['wi'] = nrm((2 * cnn_filters, D))
    p['bi'] = nrm((1, D))

    # transformer encoder layers (flat, PyTorch-equivalent parameterization)
    p['layers_flat'] = []
    for _ in range(num_layers):
        lp = {'wq': nrm((D, D)), 'wk': nrm((D, D)), 'wv': nrm((D, D)),
              'bq': nrm((1, D)), 'bk': nrm((1, D)), 'bv': nrm((1, D)),
              'wo': nrm((D, D)), 'bo': nrm((1, D)),
              'g1': 1.0 + nrm((1, D)), 'be1': nrm((1, D)),
              'w1': nrm((D, F)), 'b1': nrm((1, F)),
              'w2': nrm((F, D)), 'b2': nrm((1, D)),
              'g2': 1.0 + nrm((1, D)), 'be2': nrm((1, D))}
        p['layers_flat'].append(lp)

    # final fc
    p['wf'] = nrm((D, 1))
    p['bf'] = nrm((1, 1))

    # packed, layer-stacked views for the fused kernel (fewer, deeper matmuls
    # and fewer kernel arguments / DMA descriptors)
    lf = p['layers_flat']
    wqkv = jnp.stack([jnp.concatenate([lp['wq'], lp['wk'], lp['wv']], axis=1)
                      for lp in lf], axis=0)                      # (NL, D, 3D)
    bqkv = jnp.stack([jnp.concatenate([lp['bq'], lp['bk'], lp['bv']], axis=1)
                      for lp in lf], axis=0)                      # (NL, 1, 3D)
    vec = jnp.stack([jnp.concatenate([lp['bo'], lp['g1'], lp['be1'],
                                      lp['b2'], lp['g2'], lp['be2']], axis=0)
                     for lp in lf], axis=0)                       # (NL, 6, D)
    stk = lambda name: jnp.stack([lp[name] for lp in lf], axis=0)
    p['packed'] = {
        'convs': conv_packed,
        'wi': p['wi'], 'bi': p['bi'],
        'wqkv': wqkv, 'bqkv': bqkv,
        'wo': stk('wo'), 'w1': stk('w1'), 'b1': stk('b1'), 'w2': stk('w2'),
        'vec': vec,
        'wf_row': p['wf'].reshape(1, D), 'bf': p['bf'],
    }
    return p


# ----------------------------------------------------------------------------
# Pure-JAX reference (PyTorch-style flat-weight formulation, same eval-mode
# semantics and the same bf16 matmul-operand policy) for correctness check.
# ----------------------------------------------------------------------------
def reference_forward(x, params, nhead, num_layers):
    def em(eq, a, b):
        return jnp.einsum(eq, a.astype(MXU_DTYPE), b.astype(MXU_DTYPE),
                          preferred_element_type=jnp.float32)

    h = x
    for (w, scale, shift) in params['convs']:
        hp = jnp.pad(h, ((0, 0), (1, 1), (0, 0)))
        y = (em('blc,cd->bld', hp[:, :-2], w[0])
             + em('blc,cd->bld', hp[:, 1:-1], w[1])
             + em('blc,cd->bld', hp[:, 2:], w[2]))
        h = jnp.maximum(y * scale + shift, 0.0)
    h = em('blc,cd->bld', h, params['wi']) + params['bi']
    B, L, D = h.shape
    Dh = D // nhead

    def ln(z, g, b):
        mu = z.mean(-1, keepdims=True)
        var = ((z - mu) ** 2).mean(-1, keepdims=True)
        return (z - mu) * jax.lax.rsqrt(var + LN_EPS) * g + b

    for lp in params['layers_flat']:
        q = (em('bld,de->ble', h, lp['wq']) + lp['bq']).reshape(B, L, nhead, Dh).transpose(0, 2, 1, 3)
        k = (em('bld,de->ble', h, lp['wk']) + lp['bk']).reshape(B, L, nhead, Dh).transpose(0, 2, 1, 3)
        v = (em('bld,de->ble', h, lp['wv']) + lp['bv']).reshape(B, L, nhead, Dh).transpose(0, 2, 1, 3)
        s = em('bhld,bhmd->bhlm', q, k) / math.sqrt(Dh)
        a = em('bhlm,bhmd->bhld', jax.nn.softmax(s, axis=-1), v)
        a = em('bld,de->ble', a.transpose(0, 2, 1, 3).reshape(B, L, D), lp['wo']) + lp['bo']
        x1 = ln(h + a, lp['g1'], lp['be1'])
        ff = em('blf,fd->bld',
                jnp.maximum(em('bld,df->blf', x1, lp['w1']) + lp['b1'], 0.0),
                lp['w2']) + lp['b2']
        h = ln(x1 + ff, lp['g2'], lp['be2'])
    m = h.mean(axis=1)
    return em('bd,de->be', m, params['wf']) + params['bf']


if __name__ == "__main__":
    # small shapes consistent with the module
    B, seq_len, input_dim = 2, 16, 4
    cnn_filters, transformer_dim, nhead, num_layers = 8, 32, 4, 2

    key = jax.random.PRNGKey(0)
    kx, kp = jax.random.split(key)
    x = jax.random.normal(kx, (B, seq_len, input_dim), dtype=jnp.float32)
    params = init_params(kp, input_dim, cnn_filters, transformer_dim, nhead, num_layers)

    out = jax.block_until_ready(cnn_transformer_forward(x, params, nhead, num_layers))
    ref = jax.block_until_ready(reference_forward(x, params, nhead, num_layers))

    assert out.shape == (B, 1), out.shape
    assert np.all(np.isfinite(np.asarray(out)))
    np.testing.assert_allclose(np.asarray(out), np.asarray(ref), rtol=1e-2, atol=1e-2)

    # TODO(synk): training-mode Dropout / BatchNorm batch-stats not implemented
    # (eval-mode semantics used); nn.MaxPool1d is defined in the module but unused
    # in forward; the x.dim()==2 unsqueeze branch is not modeled (3-D input assumed).
    print("KERNEL_OK")
</pallas_src>

<mosaic_0001>
module attributes {stable_mosaic.version = 11 : i64} {
  func.func @fused_forward_kernel(%arg0: i32, %arg1: memref<2x16x4xf32, #tpu.memory_space<vmem>>, %arg2: memref<12x8xf32, #tpu.memory_space<vmem>>, %arg3: memref<2x8xf32, #tpu.memory_space<vmem>>, %arg4: memref<24x8xf32, #tpu.memory_space<vmem>>, %arg5: memref<2x8xf32, #tpu.memory_space<vmem>>, %arg6: memref<24x16xf32, #tpu.memory_space<vmem>>, %arg7: memref<2x16xf32, #tpu.memory_space<vmem>>, %arg8: memref<16x32xf32, #tpu.memory_space<vmem>>, %arg9: memref<1x32xf32, #tpu.memory_space<vmem>>, %arg10: memref<2x32x96xf32, #tpu.memory_space<vmem>>, %arg11: memref<2x1x96xf32, #tpu.memory_space<vmem>>, %arg12: memref<2x32x32xf32, #tpu.memory_space<vmem>>, %arg13: memref<2x32x128xf32, #tpu.memory_space<vmem>>, %arg14: memref<2x1x128xf32, #tpu.memory_space<vmem>>, %arg15: memref<2x128x32xf32, #tpu.memory_space<vmem>>, %arg16: memref<2x6x32xf32, #tpu.memory_space<vmem>>, %arg17: memref<1x32xf32, #tpu.memory_space<vmem>>, %arg18: memref<1x1xf32, #tpu.memory_space<vmem>>, %arg19: memref<1x2x1xf32, #tpu.memory_space<vmem>>) attributes {dimension_semantics = [#tpu.dimension_semantics<parallel>], iteration_bounds = array<i64: 1>, scalar_prefetch = 0 : i64, scratch_operands = 0 : i64, tpu.core_type = #tpu.core_type<tc>, window_params = [{transform_indices = @transform_0, window_bounds = array<i64: 2, 16, 4>}, {pipeline_mode = #tpu.pipeline_mode<synchronous>, transform_indices = @transform_1, window_bounds = array<i64: 12, 8>}, {pipeline_mode = #tpu.pipeline_mode<synchronous>, transform_indices = @transform_2, window_bounds = array<i64: 2, 8>}, {pipeline_mode = #tpu.pipeline_mode<synchronous>, transform_indices = @transform_3, window_bounds = array<i64: 24, 8>}, {pipeline_mode = #tpu.pipeline_mode<synchronous>, transform_indices = @transform_4, window_bounds = array<i64: 2, 8>}, {pipeline_mode = #tpu.pipeline_mode<synchronous>, transform_indices = @transform_5, window_bounds = array<i64: 24, 16>}, {pipeline_mode = #tpu.pipeline_mode<synchronous>, transform_indices = @transform_6, window_bounds = array<i64: 2, 16>}, {pipeline_mode = #tpu.pipeline_mode<synchronous>, transform_indices = @transform_7, window_bounds = array<i64: 16, 32>}, {pipeline_mode = #tpu.pipeline_mode<synchronous>, transform_indices = @transform_8, window_bounds = array<i64: 1, 32>}, {pipeline_mode = #tpu.pipeline_mode<synchronous>, transform_indices = @transform_9, window_bounds = array<i64: 2, 32, 96>}, {pipeline_mode = #tpu.pipeline_mode<synchronous>, transform_indices = @transform_10, window_bounds = array<i64: 2, 1, 96>}, {pipeline_mode = #tpu.pipeline_mode<synchronous>, transform_indices = @transform_11, window_bounds = array<i64: 2, 32, 32>}, {pipeline_mode = #tpu.pipeline_mode<synchronous>, transform_indices = @transform_12, window_bounds = array<i64: 2, 32, 128>}, {pipeline_mode = #tpu.pipeline_mode<synchronous>, transform_indices = @transform_13, window_bounds = array<i64: 2, 1, 128>}, {pipeline_mode = #tpu.pipeline_mode<synchronous>, transform_indices = @transform_14, window_bounds = array<i64: 2, 128, 32>}, {pipeline_mode = #tpu.pipeline_mode<synchronous>, transform_indices = @transform_15, window_bounds = array<i64: 2, 6, 32>}, {pipeline_mode = #tpu.pipeline_mode<synchronous>, transform_indices = @transform_16, window_bounds = array<i64: 1, 32>}, {pipeline_mode = #tpu.pipeline_mode<synchronous>, transform_indices = @transform_17, window_bounds = array<i64: 1, 1>}, {transform_indices = @transform_18, window_bounds = array<i64: 1, 2, 1>}]} {
    %c0 = arith.constant 0 : index
    %c0_0 = arith.constant 0 : index
    %c0_1 = arith.constant 0 : index
    %0 = vector.load %arg1[%c0, %c0_0, %c0_1] : memref<2x16x4xf32, #tpu.memory_space<vmem>>, vector<2x16x4xf32>
    %1 = vector.shape_cast %0 : vector<2x16x4xf32> to vector<32x4xf32>
    %2 = tpu.iota {dimensions = array<i32: 0>} : vector<32x1xi32>
    %c16_i32 = arith.constant 16 : i32
    %c0_i32 = arith.constant 0 : i32
    %3 = arith.cmpi eq, %c16_i32, %c0_i32 : i32
    %c1_i32 = arith.constant 1 : i32
    %4 = arith.select %3, %c1_i32, %c16_i32 : i32
    %5 = vector.broadcast %4 : i32 to vector<32x1xi32>
    %6 = arith.remsi %2, %5 : vector<32x1xi32>
    %c0_i32_2 = arith.constant 0 : i32
    %7 = vector.broadcast %c0_i32_2 : i32 to vector<32x1xi32>
    %8 = arith.cmpi ne, %6, %7 : vector<32x1xi32>
    %c0_i32_3 = arith.constant 0 : i32
    %9 = vector.broadcast %c0_i32_3 : i32 to vector<32x1xi32>
    %10 = arith.cmpi slt, %6, %9 : vector<32x1xi32>
    %c0_i32_4 = arith.constant 0 : i32
    %11 = arith.cmpi slt, %4, %c0_i32_4 : i32
    %12 = vector.broadcast %11 : i1 to vector<32x1xi1>
    %13 = vector.broadcast %12 : vector<32x1xi1> to vector<32x1xi1>
    %14 = arith.xori %10, %13 : vector<32x1xi1>
    %15 = arith.andi %14, %8 : vector<32x1xi1>
    %16 = vector.broadcast %4 : i32 to vector<32x1xi32>
    %17 = arith.addi %6, %16 : vector<32x1xi32>
    %18 = arith.select %15, %17, %6 : vector<32x1xi1>, vector<32x1xi32>
    %c0_i32_5 = arith.constant 0 : i32
    %19 = vector.broadcast %c0_i32_5 : i32 to vector<32x1xi32>
    %20 = arith.cmpi eq, %18, %19 : vector<32x1xi32>
    %c16_i32_6 = arith.constant 16 : i32
    %c0_i32_7 = arith.constant 0 : i32
    %21 = arith.cmpi eq, %c16_i32_6, %c0_i32_7 : i32
    %c1_i32_8 = arith.constant 1 : i32
    %22 = arith.select %21, %c1_i32_8, %c16_i32_6 : i32
    %23 = vector.broadcast %22 : i32 to vector<32x1xi32>
    %24 = arith.remsi %2, %23 : vector<32x1xi32>
    %c0_i32_9 = arith.constant 0 : i32
    %25 = vector.broadcast %c0_i32_9 : i32 to vector<32x1xi32>
    %26 = arith.cmpi ne, %24, %25 : vector<32x1xi32>
    %c0_i32_10 = arith.constant 0 : i32
    %27 = vector.broadcast %c0_i32_10 : i32 to vector<32x1xi32>
    %28 = arith.cmpi slt, %24, %27 : vector<32x1xi32>
    %c0_i32_11 = arith.constant 0 : i32
    %29 = arith.cmpi slt, %22, %c0_i32_11 : i32
    %30 = vector.broadcast %29 : i1 to vector<32x1xi1>
    %31 = vector.broadcast %30 : vector<32x1xi1> to vector<32x1xi1>
    %32 = arith.xori %28, %31 : vector<32x1xi1>
    %33 = arith.andi %32, %26 : vector<32x1xi1>
    %34 = vector.broadcast %22 : i32 to vector<32x1xi32>
    %35 = arith.addi %24, %34 : vector<32x1xi32>
    %36 = arith.select %33, %35, %24 : vector<32x1xi1>, vector<32x1xi32>
    %c15_i32 = arith.constant 15 : i32
    %37 = vector.broadcast %c15_i32 : i32 to vector<32x1xi32>
    %38 = arith.cmpi eq, %36, %37 : vector<32x1xi32>
    %c1_i32_12 = arith.constant 1 : i32
    %39 = tpu.dynamic_rotate %1 by %c1_i32_12 dim 0 : vector<32x4xf32>, i32 -> vector<32x4xf32>
    %cst = arith.constant 0.000000e+00 : f32
    %40 = vector.shape_cast %20 : vector<32x1xi1> to vector<32x1xi1>
    %41 = vector.broadcast %40 : vector<32x1xi1> to vector<32x4xi1>
    %42 = vector.broadcast %cst : f32 to vector<32x4xf32>
    %43 = arith.select %41, %42, %39 : vector<32x4xi1>, vector<32x4xf32>
    %c31_i32 = arith.constant 31 : i32
    %44 = tpu.dynamic_rotate %1 by %c31_i32 dim 0 : vector<32x4xf32>, i32 -> vector<32x4xf32>
    %cst_13 = arith.constant 0.000000e+00 : f32
    %45 = vector.shape_cast %38 : vector<32x1xi1> to vector<32x1xi1>
    %46 = vector.broadcast %45 : vector<32x1xi1> to vector<32x4xi1>
    %47 = vector.broadcast %cst_13 : f32 to vector<32x4xf32>
    %48 = arith.select %46, %47, %44 : vector<32x4xi1>, vector<32x4xf32>
    %49 = tpu.concatenate %43, %1, %48 in 1 : vector<32x4xf32>, vector<32x4xf32>, vector<32x4xf32> -> vector<32x12xf32>
    %c0_14 = arith.constant 0 : index
    %c0_15 = arith.constant 0 : index
    %50 = vector.load %arg2[%c0_14, %c0_15] : memref<12x8xf32, #tpu.memory_space<vmem>>, vector<12x8xf32>
    %51 = arith.truncf %49 : vector<32x12xf32> to vector<32x12xbf16>
    %52 = arith.truncf %50 : vector<12x8xf32> to vector<12x8xbf16>
    %cst_16 = arith.constant dense<0.000000e+00> : vector<32x8xf32>
    %53 = tpu.matmul %51, %52, %cst_16 {dimension_numbers = #tpu.dot_dimension_numbers<[1], [0], [0], [1], [0, 0, 1, 1], [], []>} : vector<32x12xbf16>, vector<12x8xbf16>, vector<32x8xf32> -> vector<32x8xf32>
    %c0_17 = arith.constant 0 : index
    %c0_18 = arith.constant 0 : index
    %54 = vector.load %arg3[%c0_17, %c0_18] : memref<2x8xf32, #tpu.memory_space<vmem>>, vector<2x8xf32>
    %55 = vector.extract_strided_slice %54 {offsets = [0, 0], sizes = [1, 8], strides = [1, 1]} : vector<2x8xf32> to vector<1x8xf32>
    %56 = vector.broadcast %55 : vector<1x8xf32> to vector<32x8xf32>
    %57 = arith.mulf %53, %56 : vector<32x8xf32>
    %58 = vector.extract_strided_slice %54 {offsets = [1, 0], sizes = [1, 8], strides = [1, 1]} : vector<2x8xf32> to vector<1x8xf32>
    %59 = vector.broadcast %58 : vector<1x8xf32> to vector<32x8xf32>
    %60 = arith.addf %57, %59 : vector<32x8xf32>
    %cst_19 = arith.constant 0.000000e+00 : f32
    %61 = vector.broadcast %cst_19 : f32 to vector<32x8xf32>
    %62 = arith.maximumf %60, %61 : vector<32x8xf32>
    %c1_i32_20 = arith.constant 1 : i32
    %63 = tpu.dynamic_rotate %62 by %c1_i32_20 dim 0 : vector<32x8xf32>, i32 -> vector<32x8xf32>
    %cst_21 = arith.constant 0.000000e+00 : f32
    %64 = vector.shape_cast %20 : vector<32x1xi1> to vector<32x1xi1>
    %65 = vector.broadcast %64 : vector<32x1xi1> to vector<32x8xi1>
    %66 = vector.broadcast %cst_21 : f32 to vector<32x8xf32>
    %67 = arith.select %65, %66, %63 : vector<32x8xi1>, vector<32x8xf32>
    %c31_i32_22 = arith.constant 31 : i32
    %68 = tpu.dynamic_rotate %62 by %c31_i32_22 dim 0 : vector<32x8xf32>, i32 -> vector<32x8xf32>
    %cst_23 = arith.constant 0.000000e+00 : f32
    %69 = vector.shape_cast %38 : vector<32x1xi1> to vector<32x1xi1>
    %70 = vector.broadcast %69 : vector<32x1xi1> to vector<32x8xi1>
    %71 = vector.broadcast %cst_23 : f32 to vector<32x8xf32>
    %72 = arith.select %70, %71, %68 : vector<32x8xi1>, vector<32x8xf32>
    %73 = tpu.concatenate %67, %62, %72 in 1 : vector<32x8xf32>, vector<32x8xf32>, vector<32x8xf32> -> vector<32x24xf32>
    %c0_24 = arith.constant 0 : index
    %c0_25 = arith.constant 0 : index
    %74 = vector.load %arg4[%c0_24, %c0_25] : memref<24x8xf32, #tpu.memory_space<vmem>>, vector<24x8xf32>
    %75 = arith.truncf %73 : vector<32x24xf32> to vector<32x24xbf16>
    %76 = arith.truncf %74 : vector<24x8xf32> to vector<24x8xbf16>
    %cst_26 = arith.constant dense<0.000000e+00> : vector<32x8xf32>
    %77 = tpu.matmul %75, %76, %cst_26 {dimension_numbers = #tpu.dot_dimension_numbers<[1], [0], [0], [1], [0, 0, 1, 1], [], []>} : vector<32x24xbf16>, vector<24x8xbf16>, vector<32x8xf32> -> vector<32x8xf32>
    %c0_27 = arith.constant 0 : index
    %c0_28 = arith.constant 0 : index
    %78 = vector.load %arg5[%c0_27, %c0_28] : memref<2x8xf32, #tpu.memory_space<vmem>>, vector<2x8xf32>
    %79 = vector.extract_strided_slice %78 {offsets = [0, 0], sizes = [1, 8], strides = [1, 1]} : vector<2x8xf32> to vector<1x8xf32>
    %80 = vector.broadcast %79 : vector<1x8xf32> to vector<32x8xf32>
    %81 = arith.mulf %77, %80 : vector<32x8xf32>
    %82 = vector.extract_strided_slice %78 {offsets = [1, 0], sizes = [1, 8], strides = [1, 1]} : vector<2x8xf32> to vector<1x8xf32>
    %83 = vector.broadcast %82 : vector<1x8xf32> to vector<32x8xf32>
    %84 = arith.addf %81, %83 : vector<32x8xf32>
    %cst_29 = arith.constant 0.000000e+00 : f32
    %85 = vector.broadcast %cst_29 : f32 to vector<32x8xf32>
    %86 = arith.maximumf %84, %85 : vector<32x8xf32>
    %c1_i32_30 = arith.constant 1 : i32
    %87 = tpu.dynamic_rotate %86 by %c1_i32_30 dim 0 : vector<32x8xf32>, i32 -> vector<32x8xf32>
    %cst_31 = arith.constant 0.000000e+00 : f32
    %88 = vector.shape_cast %20 : vector<32x1xi1> to vector<32x1xi1>
    %89 = vector.broadcast %88 : vector<32x1xi1> to vector<32x8xi1>
    %90 = vector.broadcast %cst_31 : f32 to vector<32x8xf32>
    %91 = arith.select %89, %90, %87 : vector<32x8xi1>, vector<32x8xf32>
    %c31_i32_32 = arith.constant 31 : i32
    %92 = tpu.dynamic_rotate %86 by %c31_i32_32 dim 0 : vector<32x8xf32>, i32 -> vector<32x8xf32>
    %cst_33 = arith.constant 0.000000e+00 : f32
    %93 = vector.shape_cast %38 : vector<32x1xi1> to vector<32x1xi1>
    %94 = vector.broadcast %93 : vector<32x1xi1> to vector<32x8xi1>
    %95 = vector.broadcast %cst_33 : f32 to vector<32x8xf32>
    %96 = arith.select %94, %95, %92 : vector<32x8xi1>, vector<32x8xf32>
    %97 = tpu.concatenate %91, %86, %96 in 1 : vector<32x8xf32>, vector<32x8xf32>, vector<32x8xf32> -> vector<32x24xf32>
    %c0_34 = arith.constant 0 : index
    %c0_35 = arith.constant 0 : index
    %98 = vector.load %arg6[%c0_34, %c0_35] : memref<24x16xf32, #tpu.memory_space<vmem>>, vector<24x16xf32>
    %99 = arith.truncf %97 : vector<32x24xf32> to vector<32x24xbf16>
    %100 = arith.truncf %98 : vector<24x16xf32> to vector<24x16xbf16>
    %cst_36 = arith.constant dense<0.000000e+00> : vector<32x16xf32>
    %101 = tpu.matmul %99, %100, %cst_36 {dimension_numbers = #tpu.dot_dimension_numbers<[1], [0], [0], [1], [0, 0, 1, 1], [], []>} : vector<32x24xbf16>, vector<24x16xbf16>, vector<32x16xf32> -> vector<32x16xf32>
    %c0_37 = arith.constant 0 : index
    %c0_38 = arith.constant 0 : index
    %102 = vector.load %arg7[%c0_37, %c0_38] : memref<2x16xf32, #tpu.memory_space<vmem>>, vector<2x16xf32>
    %103 = vector.extract_strided_slice %102 {offsets = [0, 0], sizes = [1, 16], strides = [1, 1]} : vector<2x16xf32> to vector<1x16xf32>
    %104 = vector.broadcast %103 : vector<1x16xf32> to vector<32x16xf32>
    %105 = arith.mulf %101, %104 : vector<32x16xf32>
    %106 = vector.extract_strided_slice %102 {offsets = [1, 0], sizes = [1, 16], strides = [1, 1]} : vector<2x16xf32> to vector<1x16xf32>
    %107 = vector.broadcast %106 : vector<1x16xf32> to vector<32x16xf32>
    %108 = arith.addf %105, %107 : vector<32x16xf32>
    %cst_39 = arith.constant 0.000000e+00 : f32
    %109 = vector.broadcast %cst_39 : f32 to vector<32x16xf32>
    %110 = arith.maximumf %108, %109 : vector<32x16xf32>
    %c0_40 = arith.constant 0 : index
    %c0_41 = arith.constant 0 : index
    %111 = vector.load %arg8[%c0_40, %c0_41] : memref<16x32xf32, #tpu.memory_space<vmem>>, vector<16x32xf32>
    %112 = arith.truncf %110 : vector<32x16xf32> to vector<32x16xbf16>
    %113 = arith.truncf %111 : vector<16x32xf32> to vector<16x32xbf16>
    %cst_42 = arith.constant dense<0.000000e+00> : vector<32x32xf32>
    %114 = tpu.matmul %112, %113, %cst_42 {dimension_numbers = #tpu.dot_dimension_numbers<[1], [0], [0], [1], [0, 0, 1, 1], [], []>} : vector<32x16xbf16>, vector<16x32xbf16>, vector<32x32xf32> -> vector<32x32xf32>
    %c0_43 = arith.constant 0 : index
    %c0_44 = arith.constant 0 : index
    %115 = vector.load %arg9[%c0_43, %c0_44] : memref<1x32xf32, #tpu.memory_space<vmem>>, vector<1x32xf32>
    %116 = vector.broadcast %115 : vector<1x32xf32> to vector<32x32xf32>
    %117 = arith.addf %114, %116 : vector<32x32xf32>
    %c0_45 = arith.constant 0 : index
    %c0_46 = arith.constant 0 : index
    %c0_47 = arith.constant 0 : index
    %118 = vector.load %arg16[%c0_45, %c0_46, %c0_47] : memref<2x6x32xf32, #tpu.memory_space<vmem>>, vector<1x6x32xf32>
    %119 = vector.shape_cast %118 : vector<1x6x32xf32> to vector<6x32xf32>
    %120 = vector.extract_strided_slice %119 {offsets = [0, 0], sizes = [1, 32], strides = [1, 1]} : vector<6x32xf32> to vector<1x32xf32>
    %121 = vector.extract_strided_slice %119 {offsets = [1, 0], sizes = [1, 32], strides = [1, 1]} : vector<6x32xf32> to vector<1x32xf32>
    %122 = vector.extract_strided_slice %119 {offsets = [2, 0], sizes = [1, 32], strides = [1, 1]} : vector<6x32xf32> to vector<1x32xf32>
    %123 = vector.extract_strided_slice %119 {offsets = [3, 0], sizes = [1, 32], strides = [1, 1]} : vector<6x32xf32> to vector<1x32xf32>
    %124 = vector.extract_strided_slice %119 {offsets = [4, 0], sizes = [1, 32], strides = [1, 1]} : vector<6x32xf32> to vector<1x32xf32>
    %125 = vector.extract_strided_slice %119 {offsets = [5, 0], sizes = [1, 32], strides = [1, 1]} : vector<6x32xf32> to vector<1x32xf32>
    %c0_48 = arith.constant 0 : index
    %c0_49 = arith.constant 0 : index
    %c0_50 = arith.constant 0 : index
    %126 = vector.load %arg10[%c0_48, %c0_49, %c0_50] : memref<2x32x96xf32, #tpu.memory_space<vmem>>, vector<1x32x96xf32>
    %127 = vector.shape_cast %126 : vector<1x32x96xf32> to vector<32x96xf32>
    %128 = arith.truncf %117 : vector<32x32xf32> to vector<32x32xbf16>
    %129 = arith.truncf %127 : vector<32x96xf32> to vector<32x96xbf16>
    %cst_51 = arith.constant dense<0.000000e+00> : vector<32x96xf32>
    %130 = tpu.matmul %128, %129, %cst_51 {dimension_numbers = #tpu.dot_dimension_numbers<[1], [0], [0], [1], [0, 0, 1, 1], [], []>} : vector<32x32xbf16>, vector<32x96xbf16>, vector<32x96xf32> -> vector<32x96xf32>
    %c0_52 = arith.constant 0 : index
    %c0_53 = arith.constant 0 : index
    %c0_54 = arith.constant 0 : index
    %131 = vector.load %arg11[%c0_52, %c0_53, %c0_54] : memref<2x1x96xf32, #tpu.memory_space<vmem>>, vector<1x1x96xf32>
    %132 = vector.shape_cast %131 : vector<1x1x96xf32> to vector<1x96xf32>
    %133 = vector.broadcast %132 : vector<1x96xf32> to vector<32x96xf32>
    %134 = arith.addf %130, %133 : vector<32x96xf32>
    %135 = vector.extract_strided_slice %134 {offsets = [0, 0], sizes = [32, 32], strides = [1, 1]} : vector<32x96xf32> to vector<32x32xf32>
    %136 = vector.shape_cast %135 : vector<32x32xf32> to vector<2x16x32xf32>
    %137 = vector.extract_strided_slice %134 {offsets = [0, 32], sizes = [32, 32], strides = [1, 1]} : vector<32x96xf32> to vector<32x32xf32>
    %138 = vector.shape_cast %137 : vector<32x32xf32> to vector<2x16x32xf32>
    %139 = vector.extract_strided_slice %134 {offsets = [0, 64], sizes = [32, 32], strides = [1, 1]} : vector<32x96xf32> to vector<32x32xf32>
    %140 = vector.shape_cast %139 : vector<32x32xf32> to vector<2x16x32xf32>
    %141 = vector.extract_strided_slice %136 {offsets = [0, 0, 0], sizes = [2, 16, 8], strides = [1, 1, 1]} : vector<2x16x32xf32> to vector<2x16x8xf32>
    %142 = vector.extract_strided_slice %138 {offsets = [0, 0, 0], sizes = [2, 16, 8], strides = [1, 1, 1]} : vector<2x16x32xf32> to vector<2x16x8xf32>
    %143 = vector.extract_strided_slice %140 {offsets = [0, 0, 0], sizes = [2, 16, 8], strides = [1, 1, 1]} : vector<2x16x32xf32> to vector<2x16x8xf32>
    %144 = arith.truncf %141 : vector<2x16x8xf32> to vector<2x16x8xbf16>
    %145 = arith.truncf %142 : vector<2x16x8xf32> to vector<2x16x8xbf16>
    "tpu.trace_start"() <{level = 10 : i32, message = "bld,bmd->blm"}> : () -> ()
    %cst_55 = arith.constant dense<0.000000e+00> : vector<2x16x16xf32>
    %146 = tpu.matmul %144, %145, %cst_55 {dimension_numbers = #tpu.dot_dimension_numbers<[2], [2], [1], [1], [0, 0, 0, 1, 1, 1], [0], [0]>} : vector<2x16x8xbf16>, vector<2x16x8xbf16>, vector<2x16x16xf32> -> vector<2x16x16xf32>
    "tpu.trace_stop"() : () -> ()
    %cst_56 = arith.constant 0.353553385 : f32
    %147 = vector.broadcast %cst_56 : f32 to vector<2x16x16xf32>
    %148 = arith.mulf %146, %147 : vector<2x16x16xf32>
    %cst_57 = arith.constant dense<0xFF800000> : vector<2x16xf32>
    %149 = vector.multi_reduction <maximumf>, %148, %cst_57 [2] : vector<2x16x16xf32> to vector<2x16xf32>
    %150 = vector.shape_cast %149 : vector<2x16xf32> to vector<2x16x1xf32>
    %151 = vector.broadcast %150 : vector<2x16x1xf32> to vector<2x16x16xf32>
    %152 = arith.subf %148, %151 : vector<2x16x16xf32>
    %153 = math.exp %152 : vector<2x16x16xf32>
    %cst_58 = arith.constant dense<0.000000e+00> : vector<2x16xf32>
    %154 = vector.multi_reduction <add>, %153, %cst_58 [2] : vector<2x16x16xf32> to vector<2x16xf32>
    %155 = vector.shape_cast %154 : vector<2x16xf32> to vector<2x16x1xf32>
    %156 = tpu.reciprocal %155 {approx = true} : vector<2x16x1xf32> -> vector<2x16x1xf32>
    %157 = vector.broadcast %156 : vector<2x16x1xf32> to vector<2x16x16xf32>
    %158 = arith.mulf %153, %157 : vector<2x16x16xf32>
    %159 = arith.truncf %158 : vector<2x16x16xf32> to vector<2x16x16xbf16>
    %160 = arith.truncf %143 : vector<2x16x8xf32> to vector<2x16x8xbf16>
    "tpu.trace_start"() <{level = 10 : i32, message = "blm,bmd->bld"}> : () -> ()
    %cst_59 = arith.constant dense<0.000000e+00> : vector<2x16x8xf32>
    %161 = tpu.matmul %159, %160, %cst_59 {dimension_numbers = #tpu.dot_dimension_numbers<[2], [1], [1], [2], [0, 0, 0, 1, 1, 2], [0], [0]>} : vector<2x16x16xbf16>, vector<2x16x8xbf16>, vector<2x16x8xf32> -> vector<2x16x8xf32>
    "tpu.trace_stop"() : () -> ()
    %162 = vector.extract_strided_slice %136 {offsets = [0, 0, 8], sizes = [2, 16, 8], strides = [1, 1, 1]} : vector<2x16x32xf32> to vector<2x16x8xf32>
    %163 = vector.extract_strided_slice %138 {offsets = [0, 0, 8], sizes = [2, 16, 8], strides = [1, 1, 1]} : vector<2x16x32xf32> to vector<2x16x8xf32>
    %164 = vector.extract_strided_slice %140 {offsets = [0, 0, 8], sizes = [2, 16, 8], strides = [1, 1, 1]} : vector<2x16x32xf32> to vector<2x16x8xf32>
    %165 = arith.truncf %162 : vector<2x16x8xf32> to vector<2x16x8xbf16>
    %166 = arith.truncf %163 : vector<2x16x8xf32> to vector<2x16x8xbf16>
    "tpu.trace_start"() <{level = 10 : i32, message = "bld,bmd->blm"}> : () -> ()
    %cst_60 = arith.constant dense<0.000000e+00> : vector<2x16x16xf32>
    %167 = tpu.matmul %165, %166, %cst_60 {dimension_numbers = #tpu.dot_dimension_numbers<[2], [2], [1], [1], [0, 0, 0, 1, 1, 1], [0], [0]>} : vector<2x16x8xbf16>, vector<2x16x8xbf16>, vector<2x16x16xf32> -> vector<2x16x16xf32>
    "tpu.trace_stop"() : () -> ()
    %cst_61 = arith.constant 0.353553385 : f32
    %168 = vector.broadcast %cst_61 : f32 to vector<2x16x16xf32>
    %169 = arith.mulf %167, %168 : vector<2x16x16xf32>
    %cst_62 = arith.constant dense<0xFF800000> : vector<2x16xf32>
    %170 = vector.multi_reduction <maximumf>, %169, %cst_62 [2] : vector<2x16x16xf32> to vector<2x16xf32>
    %171 = vector.shape_cast %170 : vector<2x16xf32> to vector<2x16x1xf32>
    %172 = vector.broadcast %171 : vector<2x16x1xf32> to vector<2x16x16xf32>
    %173 = arith.subf %169, %172 : vector<2x16x16xf32>
    %174 = math.exp %173 : vector<2x16x16xf32>
    %cst_63 = arith.constant dense<0.000000e+00> : vector<2x16xf32>
    %175 = vector.multi_reduction <add>, %174, %cst_63 [2] : vector<2x16x16xf32> to vector<2x16xf32>
    %176 = vector.shape_cast %175 : vector<2x16xf32> to vector<2x16x1xf32>
    %177 = tpu.reciprocal %176 {approx = true} : vector<2x16x1xf32> -> vector<2x16x1xf32>
    %178 = vector.broadcast %177 : vector<2x16x1xf32> to vector<2x16x16xf32>
    %179 = arith.mulf %174, %178 : vector<2x16x16xf32>
    %180 = arith.truncf %179 : vector<2x16x16xf32> to vector<2x16x16xbf16>
    %181 = arith.truncf %164 : vector<2x16x8xf32> to vector<2x16x8xbf16>
    "tpu.trace_start"() <{level = 10 : i32, message = "blm,bmd->bld"}> : () -> ()
    %cst_64 = arith.constant dense<0.000000e+00> : vector<2x16x8xf32>
    %182 = tpu.matmul %180, %181, %cst_64 {dimension_numbers = #tpu.dot_dimension_numbers<[2], [1], [1], [2], [0, 0, 0, 1, 1, 2], [0], [0]>} : vector<2x16x16xbf16>, vector<2x16x8xbf16>, vector<2x16x8xf32> -> vector<2x16x8xf32>
    "tpu.trace_stop"() : () -> ()
    %183 = vector.extract_strided_slice %136 {offsets = [0, 0, 16], sizes = [2, 16, 8], strides = [1, 1, 1]} : vector<2x16x32xf32> to vector<2x16x8xf32>
    %184 = vector.extract_strided_slice %138 {offsets = [0, 0, 16], sizes = [2, 16, 8], strides = [1, 1, 1]} : vector<2x16x32xf32> to vector<2x16x8xf32>
    %185 = vector.extract_strided_slice %140 {offsets = [0, 0, 16], sizes = [2, 16, 8], strides = [1, 1, 1]} : vector<2x16x32xf32> to vector<2x16x8xf32>
    %186 = arith.truncf %183 : vector<2x16x8xf32> to vector<2x16x8xbf16>
    %187 = arith.truncf %184 : vector<2x16x8xf32> to vector<2x16x8xbf16>
    "tpu.trace_start"() <{level = 10 : i32, message = "bld,bmd->blm"}> : () -> ()
    %cst_65 = arith.constant dense<0.000000e+00> : vector<2x16x16xf32>
    %188 = tpu.matmul %186, %187, %cst_65 {dimension_numbers = #tpu.dot_dimension_numbers<[2], [2], [1], [1], [0, 0, 0, 1, 1, 1], [0], [0]>} : vector<2x16x8xbf16>, vector<2x16x8xbf16>, vector<2x16x16xf32> -> vector<2x16x16xf32>
    "tpu.trace_stop"() : () -> ()
    %cst_66 = arith.constant 0.353553385 : f32
    %189 = vector.broadcast %cst_66 : f32 to vector<2x16x16xf32>
    %190 = arith.mulf %188, %189 : vector<2x16x16xf32>
    %cst_67 = arith.constant dense<0xFF800000> : vector<2x16xf32>
    %191 = vector.multi_reduction <maximumf>, %190, %cst_67 [2] : vector<2x16x16xf32> to vector<2x16xf32>
    %192 = vector.shape_cast %191 : vector<2x16xf32> to vector<2x16x1xf32>
    %193 = vector.broadcast %192 : vector<2x16x1xf32> to vector<2x16x16xf32>
    %194 = arith.subf %190, %193 : vector<2x16x16xf32>
    %195 = math.exp %194 : vector<2x16x16xf32>
    %cst_68 = arith.constant dense<0.000000e+00> : vector<2x16xf32>
    %196 = vector.multi_reduction <add>, %195, %cst_68 [2] : vector<2x16x16xf32> to vector<2x16xf32>
    %197 = vector.shape_cast %196 : vector<2x16xf32> to vector<2x16x1xf32>
    %198 = tpu.reciprocal %197 {approx = true} : vector<2x16x1xf32> -> vector<2x16x1xf32>
    %199 = vector.broadcast %198 : vector<2x16x1xf32> to vector<2x16x16xf32>
    %200 = arith.mulf %195, %199 : vector<2x16x16xf32>
    %201 = arith.truncf %200 : vector<2x16x16xf32> to vector<2x16x16xbf16>
    %202 = arith.truncf %185 : vector<2x16x8xf32> to vector<2x16x8xbf16>
    "tpu.trace_start"() <{level = 10 : i32, message = "blm,bmd->bld"}> : () -> ()
    %cst_69 = arith.constant dense<0.000000e+00> : vector<2x16x8xf32>
    %203 = tpu.matmul %201, %202, %cst_69 {dimension_numbers = #tpu.dot_dimension_numbers<[2], [1], [1], [2], [0, 0, 0, 1, 1, 2], [0], [0]>} : vector<2x16x16xbf16>, vector<2x16x8xbf16>, vector<2x16x8xf32> -> vector<2x16x8xf32>
    "tpu.trace_stop"() : () -> ()
    %204 = vector.extract_strided_slice %136 {offsets = [0, 0, 24], sizes = [2, 16, 8], strides = [1, 1, 1]} : vector<2x16x32xf32> to vector<2x16x8xf32>
    %205 = vector.extract_strided_slice %138 {offsets = [0, 0, 24], sizes = [2, 16, 8], strides = [1, 1, 1]} : vector<2x16x32xf32> to vector<2x16x8xf32>
    %206 = vector.extract_strided_slice %140 {offsets = [0, 0, 24], sizes = [2, 16, 8], strides = [1, 1, 1]} : vector<2x16x32xf32> to vector<2x16x8xf32>
    %207 = arith.truncf %204 : vector<2x16x8xf32> to vector<2x16x8xbf16>
    %208 = arith.truncf %205 : vector<2x16x8xf32> to vector<2x16x8xbf16>
    "tpu.trace_start"() <{level = 10 : i32, message = "bld,bmd->blm"}> : () -> ()
    %cst_70 = arith.constant dense<0.000000e+00> : vector<2x16x16xf32>
    %209 = tpu.matmul %207, %208, %cst_70 {dimension_numbers = #tpu.dot_dimension_numbers<[2], [2], [1], [1], [0, 0, 0, 1, 1, 1], [0], [0]>} : vector<2x16x8xbf16>, vector<2x16x8xbf16>, vector<2x16x16xf32> -> vector<2x16x16xf32>
    "tpu.trace_stop"() : () -> ()
    %cst_71 = arith.constant 0.353553385 : f32
    %210 = vector.broadcast %cst_71 : f32 to vector<2x16x16xf32>
    %211 = arith.mulf %209, %210 : vector<2x16x16xf32>
    %cst_72 = arith.constant dense<0xFF800000> : vector<2x16xf32>
    %212 = vector.multi_reduction <maximumf>, %211, %cst_72 [2] : vector<2x16x16xf32> to vector<2x16xf32>
    %213 = vector.shape_cast %212 : vector<2x16xf32> to vector<2x16x1xf32>
    %214 = vector.broadcast %213 : vector<2x16x1xf32> to vector<2x16x16xf32>
    %215 = arith.subf %211, %214 : vector<2x16x16xf32>
    %216 = math.exp %215 : vector<2x16x16xf32>
    %cst_73 = arith.constant dense<0.000000e+00> : vector<2x16xf32>
    %217 = vector.multi_reduction <add>, %216, %cst_73 [2] : vector<2x16x16xf32> to vector<2x16xf32>
    %218 = vector.shape_cast %217 : vector<2x16xf32> to vector<2x16x1xf32>
    %219 = tpu.reciprocal %218 {approx = true} : vector<2x16x1xf32> -> vector<2x16x1xf32>
    %220 = vector.broadcast %219 : vector<2x16x1xf32> to vector<2x16x16xf32>
    %221 = arith.mulf %216, %220 : vector<2x16x16xf32>
    %222 = arith.truncf %221 : vector<2x16x16xf32> to vector<2x16x16xbf16>
    %223 = arith.truncf %206 : vector<2x16x8xf32> to vector<2x16x8xbf16>
    "tpu.trace_start"() <{level = 10 : i32, message = "blm,bmd->bld"}> : () -> ()
    %cst_74 = arith.constant dense<0.000000e+00> : vector<2x16x8xf32>
    %224 = tpu.matmul %222, %223, %cst_74 {dimension_numbers = #tpu.dot_dimension_numbers<[2], [1], [1], [2], [0, 0, 0, 1, 1, 2], [0], [0]>} : vector<2x16x16xbf16>, vector<2x16x8xbf16>, vector<2x16x8xf32> -> vector<2x16x8xf32>
    "tpu.trace_stop"() : () -> ()
    %225 = tpu.concatenate %161, %182, %203, %224 in 2 : vector<2x16x8xf32>, vector<2x16x8xf32>, vector<2x16x8xf32>, vector<2x16x8xf32> -> vector<2x16x32xf32>
    %226 = vector.shape_cast %225 : vector<2x16x32xf32> to vector<32x32xf32>
    %c0_75 = arith.constant 0 : index
    %c0_76 = arith.constant 0 : index
    %c0_77 = arith.constant 0 : index
    %227 = vector.load %arg12[%c0_75, %c0_76, %c0_77] : memref<2x32x32xf32, #tpu.memory_space<vmem>>, vector<1x32x32xf32>
    %228 = vector.shape_cast %227 : vector<1x32x32xf32> to vector<32x32xf32>
    %229 = arith.truncf %226 : vector<32x32xf32> to vector<32x32xbf16>
    %230 = arith.truncf %228 : vector<32x32xf32> to vector<32x32xbf16>
    %cst_78 = arith.constant dense<0.000000e+00> : vector<32x32xf32>
    %231 = tpu.matmul %229, %230, %cst_78 {dimension_numbers = #tpu.dot_dimension_numbers<[1], [0], [0], [1], [0, 0, 1, 1], [], []>} : vector<32x32xbf16>, vector<32x32xbf16>, vector<32x32xf32> -> vector<32x32xf32>
    %232 = vector.broadcast %120 : vector<1x32xf32> to vector<32x32xf32>
    %233 = arith.addf %231, %232 : vector<32x32xf32>
    %234 = arith.addf %117, %233 : vector<32x32xf32>
    %cst_79 = arith.constant dense<0.000000e+00> : vector<32xf32>
    %235 = vector.multi_reduction <add>, %234, %cst_79 [1] : vector<32x32xf32> to vector<32xf32>
    %236 = vector.shape_cast %235 : vector<32xf32> to vector<32x1xf32>
    %cst_80 = arith.constant 3.200000e+01 : f32
    %237 = vector.broadcast %cst_80 : f32 to vector<32x1xf32>
    %238 = arith.divf %236, %237 : vector<32x1xf32>
    %239 = vector.broadcast %238 : vector<32x1xf32> to vector<32x32xf32>
    %240 = arith.subf %234, %239 : vector<32x32xf32>
    %241 = arith.mulf %240, %240 : vector<32x32xf32>
    %cst_81 = arith.constant dense<0.000000e+00> : vector<32xf32>
    %242 = vector.multi_reduction <add>, %241, %cst_81 [1] : vector<32x32xf32> to vector<32xf32>
    %243 = vector.shape_cast %242 : vector<32xf32> to vector<32x1xf32>
    %cst_82 = arith.constant 3.200000e+01 : f32
    %244 = vector.broadcast %cst_82 : f32 to vector<32x1xf32>
    %245 = arith.divf %243, %244 : vector<32x1xf32>
    %246 = vector.broadcast %238 : vector<32x1xf32> to vector<32x32xf32>
    %247 = arith.subf %234, %246 : vector<32x32xf32>
    %cst_83 = arith.constant 9.99999974E-6 : f32
    %248 = vector.broadcast %cst_83 : f32 to vector<32x1xf32>
    %249 = arith.addf %245, %248 : vector<32x1xf32>
    %250 = math.rsqrt %249 : vector<32x1xf32>
    %251 = vector.broadcast %250 : vector<32x1xf32> to vector<32x32xf32>
    %252 = arith.mulf %247, %251 : vector<32x32xf32>
    %253 = vector.broadcast %121 : vector<1x32xf32> to vector<32x32xf32>
    %254 = arith.mulf %252, %253 : vector<32x32xf32>
    %255 = vector.broadcast %122 : vector<1x32xf32> to vector<32x32xf32>
    %256 = arith.addf %254, %255 : vector<32x32xf32>
    %c0_84 = arith.constant 0 : index
    %c0_85 = arith.constant 0 : index
    %c0_86 = arith.constant 0 : index
    %257 = vector.load %arg13[%c0_84, %c0_85, %c0_86] : memref<2x32x128xf32, #tpu.memory_space<vmem>>, vector<1x32x128xf32>
    %258 = vector.shape_cast %257 : vector<1x32x128xf32> to vector<32x128xf32>
    %259 = arith.truncf %256 : vector<32x32xf32> to vector<32x32xbf16>
    %260 = arith.truncf %258 : vector<32x128xf32> to vector<32x128xbf16>
    %cst_87 = arith.constant dense<0.000000e+00> : vector<32x128xf32>
    %261 = tpu.matmul %259, %260, %cst_87 {dimension_numbers = #tpu.dot_dimension_numbers<[1], [0], [0], [1], [0, 0, 1, 1], [], []>} : vector<32x32xbf16>, vector<32x128xbf16>, vector<32x128xf32> -> vector<32x128xf32>
    %c0_88 = arith.constant 0 : index
    %c0_89 = arith.constant 0 : index
    %c0_90 = arith.constant 0 : index
    %262 = vector.load %arg14[%c0_88, %c0_89, %c0_90] : memref<2x1x128xf32, #tpu.memory_space<vmem>>, vector<1x1x128xf32>
    %263 = vector.shape_cast %262 : vector<1x1x128xf32> to vector<1x128xf32>
    %264 = vector.broadcast %263 : vector<1x128xf32> to vector<32x128xf32>
    %265 = arith.addf %261, %264 : vector<32x128xf32>
    %cst_91 = arith.constant 0.000000e+00 : f32
    %266 = vector.broadcast %cst_91 : f32 to vector<32x128xf32>
    %267 = arith.maximumf %265, %266 : vector<32x128xf32>
    %c0_92 = arith.constant 0 : index
    %c0_93 = arith.constant 0 : index
    %c0_94 = arith.constant 0 : index
    %268 = vector.load %arg15[%c0_92, %c0_93, %c0_94] : memref<2x128x32xf32, #tpu.memory_space<vmem>>, vector<1x128x32xf32>
    %269 = vector.shape_cast %268 : vector<1x128x32xf32> to vector<128x32xf32>
    %270 = arith.truncf %267 : vector<32x128xf32> to vector<32x128xbf16>
    %271 = arith.truncf %269 : vector<128x32xf32> to vector<128x32xbf16>
    %cst_95 = arith.constant dense<0.000000e+00> : vector<32x32xf32>
    %272 = tpu.matmul %270, %271, %cst_95 {dimension_numbers = #tpu.dot_dimension_numbers<[1], [0], [0], [1], [0, 0, 1, 1], [], []>} : vector<32x128xbf16>, vector<128x32xbf16>, vector<32x32xf32> -> vector<32x32xf32>
    %273 = vector.broadcast %123 : vector<1x32xf32> to vector<32x32xf32>
    %274 = arith.addf %272, %273 : vector<32x32xf32>
    %275 = arith.addf %256, %274 : vector<32x32xf32>
    %cst_96 = arith.constant dense<0.000000e+00> : vector<32xf32>
    %276 = vector.multi_reduction <add>, %275, %cst_96 [1] : vector<32x32xf32> to vector<32xf32>
    %277 = vector.shape_cast %276 : vector<32xf32> to vector<32x1xf32>
    %cst_97 = arith.constant 3.200000e+01 : f32
    %278 = vector.broadcast %cst_97 : f32 to vector<32x1xf32>
    %279 = arith.divf %277, %278 : vector<32x1xf32>
    %280 = vector.broadcast %279 : vector<32x1xf32> to vector<32x32xf32>
    %281 = arith.subf %275, %280 : vector<32x32xf32>
    %282 = arith.mulf %281, %281 : vector<32x32xf32>
    %cst_98 = arith.constant dense<0.000000e+00> : vector<32xf32>
    %283 = vector.multi_reduction <add>, %282, %cst_98 [1] : vector<32x32xf32> to vector<32xf32>
    %284 = vector.shape_cast %283 : vector<32xf32> to vector<32x1xf32>
    %cst_99 = arith.constant 3.200000e+01 : f32
    %285 = vector.broadcast %cst_99 : f32 to vector<32x1xf32>
    %286 = arith.divf %284, %285 : vector<32x1xf32>
    %287 = vector.broadcast %279 : vector<32x1xf32> to vector<32x32xf32>
    %288 = arith.subf %275, %287 : vector<32x32xf32>
    %cst_100 = arith.constant 9.99999974E-6 : f32
    %289 = vector.broadcast %cst_100 : f32 to vector<32x1xf32>
    %290 = arith.addf %286, %289 : vector<32x1xf32>
    %291 = math.rsqrt %290 : vector<32x1xf32>
    %292 = vector.broadcast %291 : vector<32x1xf32> to vector<32x32xf32>
    %293 = arith.mulf %288, %292 : vector<32x32xf32>
    %294 = vector.broadcast %124 : vector<1x32xf32> to vector<32x32xf32>
    %295 = arith.mulf %293, %294 : vector<32x32xf32>
    %296 = vector.broadcast %125 : vector<1x32xf32> to vector<32x32xf32>
    %297 = arith.addf %295, %296 : vector<32x32xf32>
    %c1 = arith.constant 1 : index
    %c0_101 = arith.constant 0 : index
    %c0_102 = arith.constant 0 : index
    %298 = vector.load %arg16[%c1, %c0_101, %c0_102] : memref<2x6x32xf32, #tpu.memory_space<vmem>>, vector<1x6x32xf32>
    %299 = vector.shape_cast %298 : vector<1x6x32xf32> to vector<6x32xf32>
    %300 = vector.extract_strided_slice %299 {offsets = [0, 0], sizes = [1, 32], strides = [1, 1]} : vector<6x32xf32> to vector<1x32xf32>
    %301 = vector.extract_strided_slice %299 {offsets = [1, 0], sizes = [1, 32], strides = [1, 1]} : vector<6x32xf32> to vector<1x32xf32>
    %302 = vector.extract_strided_slice %299 {offsets = [2, 0], sizes = [1, 32], strides = [1, 1]} : vector<6x32xf32> to vector<1x32xf32>
    %303 = vector.extract_strided_slice %299 {offsets = [3, 0], sizes = [1, 32], strides = [1, 1]} : vector<6x32xf32> to vector<1x32xf32>
    %304 = vector.extract_strided_slice %299 {offsets = [4, 0], sizes = [1, 32], strides = [1, 1]} : vector<6x32xf32> to vector<1x32xf32>
    %305 = vector.extract_strided_slice %299 {offsets = [5, 0], sizes = [1, 32], strides = [1, 1]} : vector<6x32xf32> to vector<1x32xf32>
    %c1_103 = arith.constant 1 : index
    %c0_104 = arith.constant 0 : index
    %c0_105 = arith.constant 0 : index
    %306 = vector.load %arg10[%c1_103, %c0_104, %c0_105] : memref<2x32x96xf32, #tpu.memory_space<vmem>>, vector<1x32x96xf32>
    %307 = vector.shape_cast %306 : vector<1x32x96xf32> to vector<32x96xf32>
    %308 = arith.truncf %297 : vector<32x32xf32> to vector<32x32xbf16>
    %309 = arith.truncf %307 : vector<32x96xf32> to vector<32x96xbf16>
    %cst_106 = arith.constant dense<0.000000e+00> : vector<32x96xf32>
    %310 = tpu.matmul %308, %309, %cst_106 {dimension_numbers = #tpu.dot_dimension_numbers<[1], [0], [0], [1], [0, 0, 1, 1], [], []>} : vector<32x32xbf16>, vector<32x96xbf16>, vector<32x96xf32> -> vector<32x96xf32>
    %c1_107 = arith.constant 1 : index
    %c0_108 = arith.constant 0 : index
    %c0_109 = arith.constant 0 : index
    %311 = vector.load %arg11[%c1_107, %c0_108, %c0_109] : memref<2x1x96xf32, #tpu.memory_space<vmem>>, vector<1x1x96xf32>
    %312 = vector.shape_cast %311 : vector<1x1x96xf32> to vector<1x96xf32>
    %313 = vector.broadcast %312 : vector<1x96xf32> to vector<32x96xf32>
    %314 = arith.addf %310, %313 : vector<32x96xf32>
    %315 = vector.extract_strided_slice %314 {offsets = [0, 0], sizes = [32, 32], strides = [1, 1]} : vector<32x96xf32> to vector<32x32xf32>
    %316 = vector.shape_cast %315 : vector<32x32xf32> to vector<2x16x32xf32>
    %317 = vector.extract_strided_slice %314 {offsets = [0, 32], sizes = [32, 32], strides = [1, 1]} : vector<32x96xf32> to vector<32x32xf32>
    %318 = vector.shape_cast %317 : vector<32x32xf32> to vector<2x16x32xf32>
    %319 = vector.extract_strided_slice %314 {offsets = [0, 64], sizes = [32, 32], strides = [1, 1]} : vector<32x96xf32> to vector<32x32xf32>
    %320 = vector.shape_cast %319 : vector<32x32xf32> to vector<2x16x32xf32>
    %321 = vector.extract_strided_slice %316 {offsets = [0, 0, 0], sizes = [2, 16, 8], strides = [1, 1, 1]} : vector<2x16x32xf32> to vector<2x16x8xf32>
    %322 = vector.extract_strided_slice %318 {offsets = [0, 0, 0], sizes = [2, 16, 8], strides = [1, 1, 1]} : vector<2x16x32xf32> to vector<2x16x8xf32>
    %323 = vector.extract_strided_slice %320 {offsets = [0, 0, 0], sizes = [2, 16, 8], strides = [1, 1, 1]} : vector<2x16x32xf32> to vector<2x16x8xf32>
    %324 = arith.truncf %321 : vector<2x16x8xf32> to vector<2x16x8xbf16>
    %325 = arith.truncf %322 : vector<2x16x8xf32> to vector<2x16x8xbf16>
    "tpu.trace_start"() <{level = 10 : i32, message = "bld,bmd->blm"}> : () -> ()
    %cst_110 = arith.constant dense<0.000000e+00> : vector<2x16x16xf32>
    %326 = tpu.matmul %324, %325, %cst_110 {dimension_numbers = #tpu.dot_dimension_numbers<[2], [2], [1], [1], [0, 0, 0, 1, 1, 1], [0], [0]>} : vector<2x16x8xbf16>, vector<2x16x8xbf16>, vector<2x16x16xf32> -> vector<2x16x16xf32>
    "tpu.trace_stop"() : () -> ()
    %cst_111 = arith.constant 0.353553385 : f32
    %327 = vector.broadcast %cst_111 : f32 to vector<2x16x16xf32>
    %328 = arith.mulf %326, %327 : vector<2x16x16xf32>
    %cst_112 = arith.constant dense<0xFF800000> : vector<2x16xf32>
    %329 = vector.multi_reduction <maximumf>, %328, %cst_112 [2] : vector<2x16x16xf32> to vector<2x16xf32>
    %330 = vector.shape_cast %329 : vector<2x16xf32> to vector<2x16x1xf32>
    %331 = vector.broadcast %330 : vector<2x16x1xf32> to vector<2x16x16xf32>
    %332 = arith.subf %328, %331 : vector<2x16x16xf32>
    %333 = math.exp %332 : vector<2x16x16xf32>
    %cst_113 = arith.constant dense<0.000000e+00> : vector<2x16xf32>
    %334 = vector.multi_reduction <add>, %333, %cst_113 [2] : vector<2x16x16xf32> to vector<2x16xf32>
    %335 = vector.shape_cast %334 : vector<2x16xf32> to vector<2x16x1xf32>
    %336 = tpu.reciprocal %335 {approx = true} : vector<2x16x1xf32> -> vector<2x16x1xf32>
    %337 = vector.broadcast %336 : vector<2x16x1xf32> to vector<2x16x16xf32>
    %338 = arith.mulf %333, %337 : vector<2x16x16xf32>
    %339 = arith.truncf %338 : vector<2x16x16xf32> to vector<2x16x16xbf16>
    %340 = arith.truncf %323 : vector<2x16x8xf32> to vector<2x16x8xbf16>
    "tpu.trace_start"() <{level = 10 : i32, message = "blm,bmd->bld"}> : () -> ()
    %cst_114 = arith.constant dense<0.000000e+00> : vector<2x16x8xf32>
    %341 = tpu.matmul %339, %340, %cst_114 {dimension_numbers = #tpu.dot_dimension_numbers<[2], [1], [1], [2], [0, 0, 0, 1, 1, 2], [0], [0]>} : vector<2x16x16xbf16>, vector<2x16x8xbf16>, vector<2x16x8xf32> -> vector<2x16x8xf32>
    "tpu.trace_stop"() : () -> ()
    %342 = vector.extract_strided_slice %316 {offsets = [0, 0, 8], sizes = [2, 16, 8], strides = [1, 1, 1]} : vector<2x16x32xf32> to vector<2x16x8xf32>
    %343 = vector.extract_strided_slice %318 {offsets = [0, 0, 8], sizes = [2, 16, 8], strides = [1, 1, 1]} : vector<2x16x32xf32> to vector<2x16x8xf32>
    %344 = vector.extract_strided_slice %320 {offsets = [0, 0, 8], sizes = [2, 16, 8], strides = [1, 1, 1]} : vector<2x16x32xf32> to vector<2x16x8xf32>
    %345 = arith.truncf %342 : vector<2x16x8xf32> to vector<2x16x8xbf16>
    %346 = arith.truncf %343 : vector<2x16x8xf32> to vector<2x16x8xbf16>
    "tpu.trace_start"() <{level = 10 : i32, message = "bld,bmd->blm"}> : () -> ()
    %cst_115 = arith.constant dense<0.000000e+00> : vector<2x16x16xf32>
    %347 = tpu.matmul %345, %346, %cst_115 {dimension_numbers = #tpu.dot_dimension_numbers<[2], [2], [1], [1], [0, 0, 0, 1, 1, 1], [0], [0]>} : vector<2x16x8xbf16>, vector<2x16x8xbf16>, vector<2x16x16xf32> -> vector<2x16x16xf32>
    "tpu.trace_stop"() : () -> ()
    %cst_116 = arith.constant 0.353553385 : f32
    %348 = vector.broadcast %cst_116 : f32 to vector<2x16x16xf32>
    %349 = arith.mulf %347, %348 : vector<2x16x16xf32>
    %cst_117 = arith.constant dense<0xFF800000> : vector<2x16xf32>
    %350 = vector.multi_reduction <maximumf>, %349, %cst_117 [2] : vector<2x16x16xf32> to vector<2x16xf32>
    %351 = vector.shape_cast %350 : vector<2x16xf32> to vector<2x16x1xf32>
    %352 = vector.broadcast %351 : vector<2x16x1xf32> to vector<2x16x16xf32>
    %353 = arith.subf %349, %352 : vector<2x16x16xf32>
    %354 = math.exp %353 : vector<2x16x16xf32>
    %cst_118 = arith.constant dense<0.000000e+00> : vector<2x16xf32>
    %355 = vector.multi_reduction <add>, %354, %cst_118 [2] : vector<2x16x16xf32> to vector<2x16xf32>
    %356 = vector.shape_cast %355 : vector<2x16xf32> to vector<2x16x1xf32>
    %357 = tpu.reciprocal %356 {approx = true} : vector<2x16x1xf32> -> vector<2x16x1xf32>
    %358 = vector.broadcast %357 : vector<2x16x1xf32> to vector<2x16x16xf32>
    %359 = arith.mulf %354, %358 : vector<2x16x16xf32>
    %360 = arith.truncf %359 : vector<2x16x16xf32> to vector<2x16x16xbf16>
    %361 = arith.truncf %344 : vector<2x16x8xf32> to vector<2x16x8xbf16>
    "tpu.trace_start"() <{level = 10 : i32, message = "blm,bmd->bld"}> : () -> ()
    %cst_119 = arith.constant dense<0.000000e+00> : vector<2x16x8xf32>
    %362 = tpu.matmul %360, %361, %cst_119 {dimension_numbers = #tpu.dot_dimension_numbers<[2], [1], [1], [2], [0, 0, 0, 1, 1, 2], [0], [0]>} : vector<2x16x16xbf16>, vector<2x16x8xbf16>, vector<2x16x8xf32> -> vector<2x16x8xf32>
    "tpu.trace_stop"() : () -> ()
    %363 = vector.extract_strided_slice %316 {offsets = [0, 0, 16], sizes = [2, 16, 8], strides = [1, 1, 1]} : vector<2x16x32xf32> to vector<2x16x8xf32>
    %364 = vector.extract_strided_slice %318 {offsets = [0, 0, 16], sizes = [2, 16, 8], strides = [1, 1, 1]} : vector<2x16x32xf32> to vector<2x16x8xf32>
    %365 = vector.extract_strided_slice %320 {offsets = [0, 0, 16], sizes = [2, 16, 8], strides = [1, 1, 1]} : vector<2x16x32xf32> to vector<2x16x8xf32>
    %366 = arith.truncf %363 : vector<2x16x8xf32> to vector<2x16x8xbf16>
    %367 = arith.truncf %364 : vector<2x16x8xf32> to vector<2x16x8xbf16>
    "tpu.trace_start"() <{level = 10 : i32, message = "bld,bmd->blm"}> : () -> ()
    %cst_120 = arith.constant dense<0.000000e+00> : vector<2x16x16xf32>
    %368 = tpu.matmul %366, %367, %cst_120 {dimension_numbers = #tpu.dot_dimension_numbers<[2], [2], [1], [1], [0, 0, 0, 1, 1, 1], [0], [0]>} : vector<2x16x8xbf16>, vector<2x16x8xbf16>, vector<2x16x16xf32> -> vector<2x16x16xf32>
    "tpu.trace_stop"() : () -> ()
    %cst_121 = arith.constant 0.353553385 : f32
    %369 = vector.broadcast %cst_121 : f32 to vector<2x16x16xf32>
    %370 = arith.mulf %368, %369 : vector<2x16x16xf32>
    %cst_122 = arith.constant dense<0xFF800000> : vector<2x16xf32>
    %371 = vector.multi_reduction <maximumf>, %370, %cst_122 [2] : vector<2x16x16xf32> to vector<2x16xf32>
    %372 = vector.shape_cast %371 : vector<2x16xf32> to vector<2x16x1xf32>
    %373 = vector.broadcast %372 : vector<2x16x1xf32> to vector<2x16x16xf32>
    %374 = arith.subf %370, %373 : vector<2x16x16xf32>
    %375 = math.exp %374 : vector<2x16x16xf32>
    %cst_123 = arith.constant dense<0.000000e+00> : vector<2x16xf32>
    %376 = vector.multi_reduction <add>, %375, %cst_123 [2] : vector<2x16x16xf32> to vector<2x16xf32>
    %377 = vector.shape_cast %376 : vector<2x16xf32> to vector<2x16x1xf32>
    %378 = tpu.reciprocal %377 {approx = true} : vector<2x16x1xf32> -> vector<2x16x1xf32>
    %379 = vector.broadcast %378 : vector<2x16x1xf32> to vector<2x16x16xf32>
    %380 = arith.mulf %375, %379 : vector<2x16x16xf32>
    %381 = arith.truncf %380 : vector<2x16x16xf32> to vector<2x16x16xbf16>
    %382 = arith.truncf %365 : vector<2x16x8xf32> to vector<2x16x8xbf16>
    "tpu.trace_start"() <{level = 10 : i32, message = "blm,bmd->bld"}> : () -> ()
    %cst_124 = arith.constant dense<0.000000e+00> : vector<2x16x8xf32>
    %383 = tpu.matmul %381, %382, %cst_124 {dimension_numbers = #tpu.dot_dimension_numbers<[2], [1], [1], [2], [0, 0, 0, 1, 1, 2], [0], [0]>} : vector<2x16x16xbf16>, vector<2x16x8xbf16>, vector<2x16x8xf32> -> vector<2x16x8xf32>
    "tpu.trace_stop"() : () -> ()
    %384 = vector.extract_strided_slice %316 {offsets = [0, 0, 24], sizes = [2, 16, 8], strides = [1, 1, 1]} : vector<2x16x32xf32> to vector<2x16x8xf32>
    %385 = vector.extract_strided_slice %318 {offsets = [0, 0, 24], sizes = [2, 16, 8], strides = [1, 1, 1]} : vector<2x16x32xf32> to vector<2x16x8xf32>
    %386 = vector.extract_strided_slice %320 {offsets = [0, 0, 24], sizes = [2, 16, 8], strides = [1, 1, 1]} : vector<2x16x32xf32> to vector<2x16x8xf32>
    %387 = arith.truncf %384 : vector<2x16x8xf32> to vector<2x16x8xbf16>
    %388 = arith.truncf %385 : vector<2x16x8xf32> to vector<2x16x8xbf16>
    "tpu.trace_start"() <{level = 10 : i32, message = "bld,bmd->blm"}> : () -> ()
    %cst_125 = arith.constant dense<0.000000e+00> : vector<2x16x16xf32>
    %389 = tpu.matmul %387, %388, %cst_125 {dimension_numbers = #tpu.dot_dimension_numbers<[2], [2], [1], [1], [0, 0, 0, 1, 1, 1], [0], [0]>} : vector<2x16x8xbf16>, vector<2x16x8xbf16>, vector<2x16x16xf32> -> vector<2x16x16xf32>
    "tpu.trace_stop"() : () -> ()
    %cst_126 = arith.constant 0.353553385 : f32
    %390 = vector.broadcast %cst_126 : f32 to vector<2x16x16xf32>
    %391 = arith.mulf %389, %390 : vector<2x16x16xf32>
    %cst_127 = arith.constant dense<0xFF800000> : vector<2x16xf32>
    %392 = vector.multi_reduction <maximumf>, %391, %cst_127 [2] : vector<2x16x16xf32> to vector<2x16xf32>
    %393 = vector.shape_cast %392 : vector<2x16xf32> to vector<2x16x1xf32>
    %394 = vector.broadcast %393 : vector<2x16x1xf32> to vector<2x16x16xf32>
    %395 = arith.subf %391, %394 : vector<2x16x16xf32>
    %396 = math.exp %395 : vector<2x16x16xf32>
    %cst_128 = arith.constant dense<0.000000e+00> : vector<2x16xf32>
    %397 = vector.multi_reduction <add>, %396, %cst_128 [2] : vector<2x16x16xf32> to vector<2x16xf32>
    %398 = vector.shape_cast %397 : vector<2x16xf32> to vector<2x16x1xf32>
    %399 = tpu.reciprocal %398 {approx = true} : vector<2x16x1xf32> -> vector<2x16x1xf32>
    %400 = vector.broadcast %399 : vector<2x16x1xf32> to vector<2x16x16xf32>
    %401 = arith.mulf %396, %400 : vector<2x16x16xf32>
    %402 = arith.truncf %401 : vector<2x16x16xf32> to vector<2x16x16xbf16>
    %403 = arith.truncf %386 : vector<2x16x8xf32> to vector<2x16x8xbf16>
    "tpu.trace_start"() <{level = 10 : i32, message = "blm,bmd->bld"}> : () -> ()
    %cst_129 = arith.constant dense<0.000000e+00> : vector<2x16x8xf32>
    %404 = tpu.matmul %402, %403, %cst_129 {dimension_numbers = #tpu.dot_dimension_numbers<[2], [1], [1], [2], [0, 0, 0, 1, 1, 2], [0], [0]>} : vector<2x16x16xbf16>, vector<2x16x8xbf16>, vector<2x16x8xf32> -> vector<2x16x8xf32>
    "tpu.trace_stop"() : () -> ()
    %405 = tpu.concatenate %341, %362, %383, %404 in 2 : vector<2x16x8xf32>, vector<2x16x8xf32>, vector<2x16x8xf32>, vector<2x16x8xf32> -> vector<2x16x32xf32>
    %406 = vector.shape_cast %405 : vector<2x16x32xf32> to vector<32x32xf32>
    %c1_130 = arith.constant 1 : index
    %c0_131 = arith.constant 0 : index
    %c0_132 = arith.constant 0 : index
    %407 = vector.load %arg12[%c1_130, %c0_131, %c0_132] : memref<2x32x32xf32, #tpu.memory_space<vmem>>, vector<1x32x32xf32>
    %408 = vector.shape_cast %407 : vector<1x32x32xf32> to vector<32x32xf32>
    %409 = arith.truncf %406 : vector<32x32xf32> to vector<32x32xbf16>
    %410 = arith.truncf %408 : vector<32x32xf32> to vector<32x32xbf16>
    %cst_133 = arith.constant dense<0.000000e+00> : vector<32x32xf32>
    %411 = tpu.matmul %409, %410, %cst_133 {dimension_numbers = #tpu.dot_dimension_numbers<[1], [0], [0], [1], [0, 0, 1, 1], [], []>} : vector<32x32xbf16>, vector<32x32xbf16>, vector<32x32xf32> -> vector<32x32xf32>
    %412 = vector.broadcast %300 : vector<1x32xf32> to vector<32x32xf32>
    %413 = arith.addf %411, %412 : vector<32x32xf32>
    %414 = arith.addf %297, %413 : vector<32x32xf32>
    %cst_134 = arith.constant dense<0.000000e+00> : vector<32xf32>
    %415 = vector.multi_reduction <add>, %414, %cst_134 [1] : vector<32x32xf32> to vector<32xf32>
    %416 = vector.shape_cast %415 : vector<32xf32> to vector<32x1xf32>
    %cst_135 = arith.constant 3.200000e+01 : f32
    %417 = vector.broadcast %cst_135 : f32 to vector<32x1xf32>
    %418 = arith.divf %416, %417 : vector<32x1xf32>
    %419 = vector.broadcast %418 : vector<32x1xf32> to vector<32x32xf32>
    %420 = arith.subf %414, %419 : vector<32x32xf32>
    %421 = arith.mulf %420, %420 : vector<32x32xf32>
    %cst_136 = arith.constant dense<0.000000e+00> : vector<32xf32>
    %422 = vector.multi_reduction <add>, %421, %cst_136 [1] : vector<32x32xf32> to vector<32xf32>
    %423 = vector.shape_cast %422 : vector<32xf32> to vector<32x1xf32>
    %cst_137 = arith.constant 3.200000e+01 : f32
    %424 = vector.broadcast %cst_137 : f32 to vector<32x1xf32>
    %425 = arith.divf %423, %424 : vector<32x1xf32>
    %426 = vector.broadcast %418 : vector<32x1xf32> to vector<32x32xf32>
    %427 = arith.subf %414, %426 : vector<32x32xf32>
    %cst_138 = arith.constant 9.99999974E-6 : f32
    %428 = vector.broadcast %cst_138 : f32 to vector<32x1xf32>
    %429 = arith.addf %425, %428 : vector<32x1xf32>
    %430 = math.rsqrt %429 : vector<32x1xf32>
    %431 = vector.broadcast %430 : vector<32x1xf32> to vector<32x32xf32>
    %432 = arith.mulf %427, %431 : vector<32x32xf32>
    %433 = vector.broadcast %301 : vector<1x32xf32> to vector<32x32xf32>
    %434 = arith.mulf %432, %433 : vector<32x32xf32>
    %435 = vector.broadcast %302 : vector<1x32xf32> to vector<32x32xf32>
    %436 = arith.addf %434, %435 : vector<32x32xf32>
    %c1_139 = arith.constant 1 : index
    %c0_140 = arith.constant 0 : index
    %c0_141 = arith.constant 0 : index
    %437 = vector.load %arg13[%c1_139, %c0_140, %c0_141] : memref<2x32x128xf32, #tpu.memory_space<vmem>>, vector<1x32x128xf32>
    %438 = vector.shape_cast %437 : vector<1x32x128xf32> to vector<32x128xf32>
    %439 = arith.truncf %436 : vector<32x32xf32> to vector<32x32xbf16>
    %440 = arith.truncf %438 : vector<32x128xf32> to vector<32x128xbf16>
    %cst_142 = arith.constant dense<0.000000e+00> : vector<32x128xf32>
    %441 = tpu.matmul %439, %440, %cst_142 {dimension_numbers = #tpu.dot_dimension_numbers<[1], [0], [0], [1], [0, 0, 1, 1], [], []>} : vector<32x32xbf16>, vector<32x128xbf16>, vector<32x128xf32> -> vector<32x128xf32>
    %c1_143 = arith.constant 1 : index
    %c0_144 = arith.constant 0 : index
    %c0_145 = arith.constant 0 : index
    %442 = vector.load %arg14[%c1_143, %c0_144, %c0_145] : memref<2x1x128xf32, #tpu.memory_space<vmem>>, vector<1x1x128xf32>
    %443 = vector.shape_cast %442 : vector<1x1x128xf32> to vector<1x128xf32>
    %444 = vector.broadcast %443 : vector<1x128xf32> to vector<32x128xf32>
    %445 = arith.addf %441, %444 : vector<32x128xf32>
    %cst_146 = arith.constant 0.000000e+00 : f32
    %446 = vector.broadcast %cst_146 : f32 to vector<32x128xf32>
    %447 = arith.maximumf %445, %446 : vector<32x128xf32>
    %c1_147 = arith.constant 1 : index
    %c0_148 = arith.constant 0 : index
    %c0_149 = arith.constant 0 : index
    %448 = vector.load %arg15[%c1_147, %c0_148, %c0_149] : memref<2x128x32xf32, #tpu.memory_space<vmem>>, vector<1x128x32xf32>
    %449 = vector.shape_cast %448 : vector<1x128x32xf32> to vector<128x32xf32>
    %450 = arith.truncf %447 : vector<32x128xf32> to vector<32x128xbf16>
    %451 = arith.truncf %449 : vector<128x32xf32> to vector<128x32xbf16>
    %cst_150 = arith.constant dense<0.000000e+00> : vector<32x32xf32>
    %452 = tpu.matmul %450, %451, %cst_150 {dimension_numbers = #tpu.dot_dimension_numbers<[1], [0], [0], [1], [0, 0, 1, 1], [], []>} : vector<32x128xbf16>, vector<128x32xbf16>, vector<32x32xf32> -> vector<32x32xf32>
    %453 = vector.broadcast %303 : vector<1x32xf32> to vector<32x32xf32>
    %454 = arith.addf %452, %453 : vector<32x32xf32>
    %455 = arith.addf %436, %454 : vector<32x32xf32>
    %cst_151 = arith.constant dense<0.000000e+00> : vector<32xf32>
    %456 = vector.multi_reduction <add>, %455, %cst_151 [1] : vector<32x32xf32> to vector<32xf32>
    %457 = vector.shape_cast %456 : vector<32xf32> to vector<32x1xf32>
    %cst_152 = arith.constant 3.200000e+01 : f32
    %458 = vector.broadcast %cst_152 : f32 to vector<32x1xf32>
    %459 = arith.divf %457, %458 : vector<32x1xf32>
    %460 = vector.broadcast %459 : vector<32x1xf32> to vector<32x32xf32>
    %461 = arith.subf %455, %460 : vector<32x32xf32>
    %462 = arith.mulf %461, %461 : vector<32x32xf32>
    %cst_153 = arith.constant dense<0.000000e+00> : vector<32xf32>
    %463 = vector.multi_reduction <add>, %462, %cst_153 [1] : vector<32x32xf32> to vector<32xf32>
    %464 = vector.shape_cast %463 : vector<32xf32> to vector<32x1xf32>
    %cst_154 = arith.constant 3.200000e+01 : f32
    %465 = vector.broadcast %cst_154 : f32 to vector<32x1xf32>
    %466 = arith.divf %464, %465 : vector<32x1xf32>
    %467 = vector.broadcast %459 : vector<32x1xf32> to vector<32x32xf32>
    %468 = arith.subf %455, %467 : vector<32x32xf32>
    %cst_155 = arith.constant 9.99999974E-6 : f32
    %469 = vector.broadcast %cst_155 : f32 to vector<32x1xf32>
    %470 = arith.addf %466, %469 : vector<32x1xf32>
    %471 = math.rsqrt %470 : vector<32x1xf32>
    %472 = vector.broadcast %471 : vector<32x1xf32> to vector<32x32xf32>
    %473 = arith.mulf %468, %472 : vector<32x32xf32>
    %474 = vector.broadcast %304 : vector<1x32xf32> to vector<32x32xf32>
    %475 = arith.mulf %473, %474 : vector<32x32xf32>
    %476 = vector.broadcast %305 : vector<1x32xf32> to vector<32x32xf32>
    %477 = arith.addf %475, %476 : vector<32x32xf32>
    %478 = vector.extract_strided_slice %477 {offsets = [0, 0], sizes = [16, 32], strides = [1, 1]} : vector<32x32xf32> to vector<16x32xf32>
    %cst_156 = arith.constant dense<0.000000e+00> : vector<32xf32>
    %479 = vector.multi_reduction <add>, %478, %cst_156 [0] : vector<16x32xf32> to vector<32xf32>
    %480 = vector.shape_cast %479 : vector<32xf32> to vector<1x32xf32>
    %cst_157 = arith.constant 1.600000e+01 : f32
    %481 = vector.broadcast %cst_157 : f32 to vector<1x32xf32>
    %482 = arith.divf %480, %481 : vector<1x32xf32>
    %483 = vector.extract_strided_slice %477 {offsets = [16, 0], sizes = [16, 32], strides = [1, 1]} : vector<32x32xf32> to vector<16x32xf32>
    %cst_158 = arith.constant dense<0.000000e+00> : vector<32xf32>
    %484 = vector.multi_reduction <add>, %483, %cst_158 [0] : vector<16x32xf32> to vector<32xf32>
    %485 = vector.shape_cast %484 : vector<32xf32> to vector<1x32xf32>
    %cst_159 = arith.constant 1.600000e+01 : f32
    %486 = vector.broadcast %cst_159 : f32 to vector<1x32xf32>
    %487 = arith.divf %485, %486 : vector<1x32xf32>
    %488 = tpu.concatenate %482, %487 in 0 : vector<1x32xf32>, vector<1x32xf32> -> vector<2x32xf32>
    %c0_160 = arith.constant 0 : index
    %c0_161 = arith.constant 0 : index
    %489 = vector.load %arg17[%c0_160, %c0_161] : memref<1x32xf32, #tpu.memory_space<vmem>>, vector<1x32xf32>
    %490 = vector.broadcast %489 : vector<1x32xf32> to vector<2x32xf32>
    %491 = arith.mulf %488, %490 : vector<2x32xf32>
    %cst_162 = arith.constant dense<0.000000e+00> : vector<2xf32>
    %492 = vector.multi_reduction <add>, %491, %cst_162 [1] : vector<2x32xf32> to vector<2xf32>
    %493 = vector.shape_cast %492 : vector<2xf32> to vector<2x1xf32>
    %c0_163 = arith.constant 0 : index
    %c0_164 = arith.constant 0 : index
    %494 = vector.load %arg18[%c0_163, %c0_164] : memref<1x1xf32, #tpu.memory_space<vmem>>, vector<1x1xf32>
    %495 = vector.broadcast %494 : vector<1x1xf32> to vector<2x1xf32>
    %496 = arith.addf %493, %495 : vector<2x1xf32>
    %c0_165 = arith.constant 0 : index
    %c0_166 = arith.constant 0 : index
    %c0_167 = arith.constant 0 : index
    %497 = vector.load %arg19[%c0_165, %c0_166, %c0_167] : memref<1x2x1xf32, #tpu.memory_space<vmem>>, vector<1x2x1xf32>
    %498 = vector.shape_cast %497 : vector<1x2x1xf32> to vector<2x1xf32>
    %499 = vector.shape_cast %496 : vector<2x1xf32> to vector<1x2x1xf32>
    tpu.vector_store %arg19[%c0_165, %c0_166, %c0_167], %499 {strides = array<i32>} : memref<1x2x1xf32, #tpu.memory_space<vmem>>, vector<1x2x1xf32>,
    return
  }
  func.func @transform_0(%arg0: i32) -> (i32, i32, i32) {
    %c0_i32 = arith.constant 0 : i32
    %c0_i32_0 = arith.constant 0 : i32
    %c0_i32_1 = arith.constant 0 : i32
    return %arg0, %c0_i32, %c0_i32_0 : i32, i32, i32
  }
  func.func @transform_1(%arg0: i32) -> (i32, i32) {
    %c0_i32 = arith.constant 0 : i32
    %c0_i32_0 = arith.constant 0 : i32
    %c0_i32_1 = arith.constant 0 : i32
    return %c0_i32, %c0_i32_0 : i32, i32
  }
  func.func @transform_2(%arg0: i32) -> (i32, i32) {
    %c0_i32 = arith.constant 0 : i32
    %c0_i32_0 = arith.constant 0 : i32
    %c0_i32_1 = arith.constant 0 : i32
    return %c0_i32, %c0_i32_0 : i32, i32
  }
  func.func @transform_3(%arg0: i32) -> (i32, i32) {
    %c0_i32 = arith.constant 0 : i32
    %c0_i32_0 = arith.constant 0 : i32
    %c0_i32_1 = arith.constant 0 : i32
    return %c0_i32, %c0_i32_0 : i32, i32
  }
  func.func @transform_4(%arg0: i32) -> (i32, i32) {
    %c0_i32 = arith.constant 0 : i32
    %c0_i32_0 = arith.constant 0 : i32
    %c0_i32_1 = arith.constant 0 : i32
    return %c0_i32, %c0_i32_0 : i32, i32
  }
  func.func @transform_5(%arg0: i32) -> (i32, i32) {
    %c0_i32 = arith.constant 0 : i32
    %c0_i32_0 = arith.constant 0 : i32
    %c0_i32_1 = arith.constant 0 : i32
    return %c0_i32, %c0_i32_0 : i32, i32
  }
  func.func @transform_6(%arg0: i32) -> (i32, i32) {
    %c0_i32 = arith.constant 0 : i32
    %c0_i32_0 = arith.constant 0 : i32
    %c0_i32_1 = arith.constant 0 : i32
    return %c0_i32, %c0_i32_0 : i32, i32
  }
  func.func @transform_7(%arg0: i32) -> (i32, i32) {
    %c0_i32 = arith.constant 0 : i32
    %c0_i32_0 = arith.constant 0 : i32
    %c0_i32_1 = arith.constant 0 : i32
    return %c0_i32, %c0_i32_0 : i32, i32
  }
  func.func @transform_8(%arg0: i32) -> (i32, i32) {
    %c0_i32 = arith.constant 0 : i32
    %c0_i32_0 = arith.constant 0 : i32
    %c0_i32_1 = arith.constant 0 : i32
    return %c0_i32, %c0_i32_0 : i32, i32
  }
  func.func @transform_9(%arg0: i32) -> (i32, i32, i32) {
    %c0_i32 = arith.constant 0 : i32
    %c0_i32_0 = arith.constant 0 : i32
    %c0_i32_1 = arith.constant 0 : i32
    %c0_i32_2 = arith.constant 0 : i32
    return %c0_i32, %c0_i32_0, %c0_i32_1 : i32, i32, i32
  }
  func.func @transform_10(%arg0: i32) -> (i32, i32, i32) {
    %c0_i32 = arith.constant 0 : i32
    %c0_i32_0 = arith.constant 0 : i32
    %c0_i32_1 = arith.constant 0 : i32
    %c0_i32_2 = arith.constant 0 : i32
    return %c0_i32, %c0_i32_0, %c0_i32_1 : i32, i32, i32
  }
  func.func @transform_11(%arg0: i32) -> (i32, i32, i32) {
    %c0_i32 = arith.constant 0 : i32
    %c0_i32_0 = arith.constant 0 : i32
    %c0_i32_1 = arith.constant 0 : i32
    %c0_i32_2 = arith.constant 0 : i32
    return %c0_i32, %c0_i32_0, %c0_i32_1 : i32, i32, i32
  }
  func.func @transform_12(%arg0: i32) -> (i32, i32, i32) {
    %c0_i32 = arith.constant 0 : i32
    %c0_i32_0 = arith.constant 0 : i32
    %c0_i32_1 = arith.constant 0 : i32
    %c0_i32_2 = arith.constant 0 : i32
    return %c0_i32, %c0_i32_0, %c0_i32_1 : i32, i32, i32
  }
  func.func @transform_13(%arg0: i32) -> (i32, i32, i32) {
    %c0_i32 = arith.constant 0 : i32
    %c0_i32_0 = arith.constant 0 : i32
    %c0_i32_1 = arith.constant 0 : i32
    %c0_i32_2 = arith.constant 0 : i32
    return %c0_i32, %c0_i32_0, %c0_i32_1 : i32, i32, i32
  }
  func.func @transform_14(%arg0: i32) -> (i32, i32, i32) {
    %c0_i32 = arith.constant 0 : i32
    %c0_i32_0 = arith.constant 0 : i32
    %c0_i32_1 = arith.constant 0 : i32
    %c0_i32_2 = arith.constant 0 : i32
    return %c0_i32, %c0_i32_0, %c0_i32_1 : i32, i32, i32
  }
  func.func @transform_15(%arg0: i32) -> (i32, i32, i32) {
    %c0_i32 = arith.constant 0 : i32
    %c0_i32_0 = arith.constant 0 : i32
    %c0_i32_1 = arith.constant 0 : i32
    %c0_i32_2 = arith.constant 0 : i32
    return %c0_i32, %c0_i32_0, %c0_i32_1 : i32, i32, i32
  }
  func.func @transform_16(%arg0: i32) -> (i32, i32) {
    %c0_i32 = arith.constant 0 : i32
    %c0_i32_0 = arith.constant 0 : i32
    %c0_i32_1 = arith.constant 0 : i32
    return %c0_i32, %c0_i32_0 : i32, i32
  }
  func.func @transform_17(%arg0: i32) -> (i32, i32) {
    %c0_i32 = arith.constant 0 : i32
    %c0_i32_0 = arith.constant 0 : i32
    %c0_i32_1 = arith.constant 0 : i32
    return %c0_i32, %c0_i32_0 : i32, i32
  }
  func.func @transform_18(%arg0: i32) -> (i32, i32, i32) {
    %c0_i32 = arith.constant 0 : i32
    %c0_i32_0 = arith.constant 0 : i32
    %c0_i32_1 = arith.constant 0 : i32
    return %arg0, %c0_i32, %c0_i32_0 : i32, i32, i32
  }
}

</mosaic_0001>

<bundles_post_ra>
// kernel: tpu_custom_call.1
= control target key start
LH: loop header
LB: loop body
LE: loop exit
PB: predicated region body
PF: predicated region fallthrough
CT: control target
= control target key end

     0   :  { %v66_v0 = vlaneseq  ;;  %s4503_s26 = smov 4   ;;  %vm223_vm2 = vcmask 1045504   ;;  %s5611_s27 = smov 8   ;;  %vm201_vm6 = vcmask 31744   ;;  %vm206_vm8 = vcmask 64512   ;;  %s5586_s0 = inlined_call_operand.vmem [shape: f32[2,16,4], index: 0, kind: input, shape index: {}]   ;;  %s5587_s1 = inlined_call_operand.vmem [shape: f32[12,8], index: 1, kind: input, shape index: {}]   ;;  %s5588_s2 = inlined_call_operand.vmem [shape: f32[2,8], index: 2, kind: input, shape index: {}]   ;;  %s5589_s3 = inlined_call_operand.vmem [shape: f32[24,8], index: 3, kind: input, shape index: {}]   ;;  %s5590_s4 = inlined_call_operand.vmem [shape: f32[2,8], index: 4, kind: input, shape index: {}]   ;;  %s5591_s5 = inlined_call_operand.vmem [shape: f32[24,16], index: 5, kind: input, shape index: {}]   ;;  %s5592_s7 = inlined_call_operand.vmem [shape: f32[16,32], index: 7, kind: input, shape index: {}]   ;;  %s5593_s6 = inlined_call_operand.vmem [shape: f32[2,16], index: 6, kind: input, shape index: {}]   ;;  %s5594_s9 = inlined_call_operand.vmem [shape: f32[2,32,96], index: 9, kind: input, shape index: {}]   ;;  %s5595_s8 = inlined_call_operand.vmem [shape: f32[1,32], index: 8, kind: input, shape index: {}]   ;;  %s5596_s10 = inlined_call_operand.vmem [shape: f32[2,1,96], index: 10, kind: input, shape index: {}]   ;;  %s5597_s11 = inlined_call_operand.vmem [shape: f32[2,32,32], index: 11, kind: input, shape index: {}]   ;;  %s5598_s15 = inlined_call_operand.vmem [shape: f32[2,6,32], index: 15, kind: input, shape index: {}]   ;;  %s5599_s12 = inlined_call_operand.vmem [shape: f32[2,32,128], index: 12, kind: input, shape index: {}]   ;;  %s5600_s14 = inlined_call_operand.vmem [shape: f32[2,128,32], index: 14, kind: input, shape index: {}]   ;;  %s5601_s13 = inlined_call_operand.vmem [shape: f32[2,1,128], index: 13, kind: input, shape index: {}]   ;;  %s5602_s17 = inlined_call_operand.<no memory space> [shape: f32[1,1], index: 17, kind: input, shape index: {}]   ;;  %s5603_s16 = inlined_call_operand.vmem [shape: f32[1,32], index: 16, kind: input, shape index: {}]   ;;  %s5604_s18 = inlined_call_operand.vmem [shape: f32[1,2,1], index: 18, kind: output, shape index: {}]  }
   0x1   :  { %5613 = sst [smem:[#allocation3_spill]] %s5586_s0  ;;  %vm216_vm9 = vcmask 97280   ;;  %vm376_vm10 = vcmask 1043456   ;;  %vm357_vm11 = vcmask 130048   ;;  %vm369_vm12 = vcmask 195584   ;;  %s4511_s0 = smov 120  }
   0x2   :  { %5614 = sst [smem:[#allocation4_spill]] %s5587_s1  ;;  %s5616_s29 = sld [smem:[#allocation3_spill]]  ;;  %v4630_v10 = vshrl.u32 %v66_v0, 7  ;;  %vm683_vm13 = vcmask 261120   ;;  %vm4507_vm14 = vmmov 0   ;;  %vm3655_vm15 = vcmask 1040384  }
   0x3   :  { %5615 = sst [smem:[#allocation5_spill]] %s5588_s2  ;;  %s5617_s23 = sld [smem:[#allocation4_spill]] }
   0x4   :  { %v68_v17 = vadd.s32 8, %v4630_v10  ;;  %vm152_vm0 = vcmp.lt.s32.totalorder %v4630_v10, 7  ;;  %v70_v18 = vadd.s32 24, %v4630_v10  ;;  %vm131_vm1 = vcmp.lt.s32.totalorder %v4630_v10, 1  ;;  %s5626_s30 = sld [smem:[#allocation5_spill]]  ;;  %s4512_s19 = smov 56  }
   0x5   :  { %v69_v38 = vadd.s32 16, %v4630_v10  ;;  %v75_v39 = vand.u32 15, %v4630_v10  ;;  %s4513_s1 = smov 80   ;;  %s4514_s20 = smov 112  }
   0x6   :  { %v82_v22 = vand.u32 15, %v68_v17  ;;  %v96_v23 = vand.u32 15, %v70_v18  ;;  %s4517_s21 = smov 104   ;;  %s4518_s22 = smov 40  }
   0x7   :  { %v89_v41 = vand.u32 15, %v69_v38  ;;  %vm4671_vm5 = vcmp.eq.s32.totalorder %v75_v39, 0  ;;  %s5607_s2 = smov 24  }
   0x8   :  { %v62_v1 = vld [vmem:[%s5616_s29] sm:$0xff]  ;;  %v63_v2 = vld [vmem:[%s5616_s29 + $0x8] sm:$0xff]  ;;  %v64_v3 = vld [vmem:[%s5616_s29 + $0x10] sm:$0xff]  ;;  %vm4649_vm3 = vcmp.eq.s32.totalorder %v82_v22, 15  ;;  %vm4653_vm4 = vcmp.eq.s32.totalorder %v96_v23, 15 }
   0x9   :  { %v149_v4 = vrot.slane %v63_v2, 1  ;;  %v4223_v5 = vpack.i.bf16 %v63_v2, %v62_v1  ;;  %v65_v6 = vld [vmem:[%s5616_s29 + $0x18] sm:$0xff]  ;;  %v211_v7 = vld [vmem:[%s5617_s23] sm:$0xff]  ;;  %v128_v8 = vrot.slane %v63_v2, 7  ;;  %v127_v9 = vrot.slane %v62_v1, 7  ;;  %v364_v22 = vld [vmem:[%s5589_s3 + $0x10] sm:$0xff] }
   0xa   :  { %v150_v11 = vrot.slane %v64_v3, 1  ;;  %v212_v12 = vld [vmem:[%s5617_s23 + $0x8] sm:$0xf]  ;;  %v148_v13 = vrot.slane %v62_v1, 1  ;;  %v129_v14 = vrot.slane %v64_v3, 7  ;;  %v151_v15 = vrot.slane %v65_v6, 1 }
   0xb   :  { %4224 = vrot.lane.b32.xlu0 %v4223_v5, %s4503_s26  ;;  %v4228_v16 = vpack.i.bf16 %v65_v6, %v64_v3  ;;  %v215_v19 = vpack.c.bf16 %v212_v12, %v211_v7  ;;  %v130_v21 = vrot.slane %v65_v6, 7  ;;  %v134_v30 = vsel %vm131_vm1, %v127_v9, %v128_v8  ;;  %s4508_s29 = smov 96  }
   0xc   :  { %v154_v20 = vsel %vm152_vm0, %v149_v4, %v150_v11  ;;  %v156_v24 = vsel %vm152_vm0, %v151_v15, %v148_v13  ;;  %v155_v25 = vsel %vm152_vm0, %v148_v13, %v149_v4  ;;  %v133_v27 = vsel %vm131_vm1, %v128_v8, %v129_v14  ;;  %v276_v4 = vld [vmem:[%s5626_s30] sm:$0x3]  ;;  %s4510_s30 = smov 88  }
   0xd   :  { %v132_v26 = vsel %vm131_vm1, %v129_v14, %v130_v21  ;;  %4203 = vmatprep.subr.msk.bf16.mxu1 %vm223_vm2, %v215_v19  ;;  %v166_v31 = vsel %vm4649_vm3, 0.0, %v154_v20  ;;  %v153_v32 = vsel %vm152_vm0, %v150_v11, %v151_v15  ;;  %v168_v33 = vsel %vm4653_vm4, 0.0, %v156_v24  ;;  %v363_v11 = vld [vmem:[%s5589_s3 + $0x8] sm:$0xff] }
   0xe   :  { %v4233_v34 = vpack.i.bf16 %v166_v31, %v155_v25  ;;  %v135_v35 = vsel %vm131_vm1, %v130_v21, %v127_v9  ;;  %v225_v36 = vsel %vm223_vm2, %v215_v19, 0  ;;  %v4238_v37 = vpack.i.bf16 %v168_v33, %v153_v32  ;;  %v362_v9 = vld [vmem:[%s5589_s3] sm:$0xff]  ;;  %s5609_s3 = smov 16  }
   0xf   :  { %4229 = vrot.lane.b32.xlu0 %v4228_v16, %s4503_s26  ;;  %3896 = vmatpush3.bf16.msra.mxu1 %v225_v36  ;;  %v144_v46 = vsel %vm4671_vm5, 0.0, %v135_v35  ;;  %vm4677_vm7 = vcmp.eq.s32.totalorder %v89_v41, 0  ;;  %v4692_v3 = vsub.s32 0, %v4630_v10  ;;  %v4698_v5 = vsub.s32 1, %v4630_v10 }
  0x10   :  { %4234 = vrot.lane.b32.xlu1 %v4233_v34, %s5611_s27  ;;  %v146_v55 = vsel %vm4677_vm7, 0.0, %v133_v27  ;;  %v367_v14 = vpack.c.bf16 %v363_v11, %v362_v9  ;;  %v368_v25 = vpack.c.bf16 %v364_v22, %v364_v22 }
  0x11   :  { %v280_v6 = vrot.slane %v276_v4, %v4692_v3  ;;  %v288_v7 = vrot.slane %v276_v4, %v4698_v5 }
  0x12   :  { %3901 = vmatprep.subr.bf16.mxu1 %v367_v14  ;;  %v378_v31 = vsel %vm376_vm10, %v368_v25, 0 }
  0x14   :  { %4239 = vrot.lane.b32.xlu1 %v4238_v37, %s5611_s27 }
  0x7d   :  { %v4225_v40 = vpop.permute.xlu0 %4224 }
  0x7e   :  { %v4227_v43 = vunpack.i.h.bf16 %v4225_v40  ;;  %v4226_v44 = vunpack.i.l.bf16 %v4225_v40 }
  0x80   :  { %v202_v51 = vsel %vm201_vm6, %v144_v46, %v4226_v44  ;;  %v203_v52 = vsel %vm201_vm6, %v134_v30, %v4227_v43 }
  0x81   :  { %v4230_v45 = vpop.permute.xlu0 %4229 }
  0x82   :  { %v4235_v48 = vpop.permute.xlu1 %4234  ;;  %v4232_v49 = vunpack.i.h.bf16 %v4230_v45  ;;  %v4231_v50 = vunpack.i.l.bf16 %v4230_v45 }
  0x83   :  { %v4237_v53 = vunpack.i.h.bf16 %v4235_v48  ;;  %v4236_v54 = vunpack.i.l.bf16 %v4235_v48 }
  0x84   :  { %v205_v58 = vsel %vm201_vm6, %v132_v26, %v4232_v49  ;;  %v204_v59 = vsel %vm201_vm6, %v146_v55, %v4231_v50 }
  0x85   :  { %v207_v56 = vsel %vm206_vm8, %v202_v51, %v4236_v54  ;;  %v208_v57 = vsel %vm206_vm8, %v203_v52, %v4237_v53 }
  0x86   :  { %v4240_v60 = vpop.permute.xlu1 %4239  ;;  %v213_v61 = vpack.c.bf16 %v208_v57, %v207_v56 }
  0x87   :  { %v4242_v62 = vunpack.i.h.bf16 %v4240_v60  ;;  %v4241_v63 = vunpack.i.l.bf16 %v4240_v60 }
  0x88   :  { %3897 = vmatprep.mubr.msk.bf16.mxu1 %vm216_vm9, %v213_v61 }
  0x89   :  { %v210_v0 = vsel %vm206_vm8, %v205_v58, %v4242_v62  ;;  %v209_v1 = vsel %vm206_vm8, %v204_v59, %v4241_v63 }
  0x8a   :  { %v214_v2 = vpack.c.bf16 %v210_v0, %v209_v1 }
  0x8c   :  { %3898 = vmatmul.mubr.msk.bf16.vlgmr.msra.gmra.mrb[0].mxu1 %vm216_vm9, %v214_v2 }
  0x8d   :  { %3902 = vmatpush3.bf16.msra.mxu1 %v367_v14 }
  0x8e   :  { %4204 = vmatprep.subr.msk.bf16.mxu1 %vm376_vm10, %v368_v25  ;;  %v515_v25 = vld [vmem:[%s5591_s5 + $0x8] sm:$0xff] }
  0x91   :  { %3904 = vmatpush3.bf16.msra.mxu1 %v378_v31 }
 0x15f   :  { %v3899_v8 = vpop.f32.mrb[0].mxu1 }
 0x160   :  { %v283_v12 = vmul.f32 %v3899_v8, %v280_v6  ;;  %v261_v13 = vpop.f32.mrb[1].mxu1 }
 0x161   :  { %v281_v15 = vmul.f32 %v280_v6, %v261_v13  ;;  %v3900_v16 = vpop.f32.mrb[2].mxu1 }
 0x162   :  { %v291_v17 = vadd.f32 %v288_v7, %v283_v12  ;;  %v284_v18 = vmul.f32 %v3900_v16, %v280_v6  ;;  %v264_v19 = vpop.f32.mrb[3].mxu1 }
 0x163   :  { %v289_v20 = vadd.f32 %v288_v7, %v281_v15  ;;  %v282_v21 = vmul.f32 %v280_v6, %v264_v19 }
 0x164   :  { %v295_v23 = vmax.f32 %v291_v17, 0.0  ;;  %v292_v24 = vadd.f32 %v288_v7, %v284_v18 }
 0x165   :  { %v293_v26 = vmax.f32 %v289_v20, 0.0  ;;  %v290_v27 = vadd.f32 %v288_v7, %v282_v21  ;;  %v429_v20 = vld [vmem:[%s5590_s4] sm:$0x3] }
 0x166   :  { %v296_v30 = vmax.f32 %v292_v24, 0.0  ;;  %v299_v32 = vrot.slane %v295_v23, 7  ;;  %v311_v36 = vrot.slane %v295_v23, 1  ;;  %v433_v21 = vrot.slane %v429_v20, %v4692_v3  ;;  %v514_v24 = vld [vmem:[%s5591_s5] sm:$0xff] }
 0x167   :  { %v297_v33 = vrot.slane %v293_v26, 7  ;;  %v309_v34 = vrot.slane %v293_v26, 1  ;;  %v294_v35 = vmax.f32 %v290_v27, 0.0  ;;  %v441_v22 = vrot.slane %v429_v20, %v4698_v5 }
 0x168   :  { %v300_v37 = vrot.slane %v296_v30, 7  ;;  %v312_v38 = vrot.slane %v296_v30, 1  ;;  %v4243_v39 = vpack.i.bf16 %v296_v30, %v295_v23  ;;  %v519_v30 = vpack.c.bf16 %v515_v25, %v514_v24 }
 0x169   :  { %v298_v40 = vrot.slane %v294_v35, 7  ;;  %v310_v41 = vrot.slane %v294_v35, 1  ;;  %v4248_v43 = vpack.i.bf16 %v294_v35, %v293_v26 }
 0x16a   :  { %4244 = vrot.lane.b32.xlu1 %v4243_v39, %s5611_s27  ;;  %v313_v44 = vsel %vm152_vm0, %v311_v36, %v312_v38  ;;  %v316_v45 = vsel %vm152_vm0, %v312_v38, %v309_v34  ;;  %v301_v46 = vsel %vm131_vm1, %v299_v32, %v300_v37  ;;  %v304_v48 = vsel %vm131_vm1, %v300_v37, %v297_v33  ;;  %v516_v38 = vld [vmem:[%s5591_s5 + $0x10] sm:$0xff]  ;;  %s4509_s5 = smov 64  }
 0x16b   :  { %4249 = vrot.lane.b32.xlu0 %v4248_v43, %s5611_s27  ;;  %v320_v49 = vsel %vm4653_vm4, 0.0, %v316_v45  ;;  %v314_v50 = vsel %vm152_vm0, %v310_v41, %v311_v36  ;;  %v315_v51 = vsel %vm152_vm0, %v309_v34, %v310_v41  ;;  %v302_v52 = vsel %vm131_vm1, %v298_v40, %v299_v32  ;;  %3909 = vmatprep.subr.bf16.mxu1 %v519_v30 }
 0x16c   :  { %v4258_v53 = vpack.i.bf16 %v320_v49, %v313_v44  ;;  %v318_v54 = vsel %vm4649_vm3, 0.0, %v314_v50  ;;  %v303_v56 = vsel %vm131_vm1, %v297_v33, %v298_v40  ;;  %v307_v0 = vsel %vm4677_vm7, 0.0, %v302_v52 }
 0x16d   :  { %v4253_v55 = vpack.i.bf16 %v318_v54, %v315_v51  ;;  %v305_v1 = vsel %vm4671_vm5, 0.0, %v304_v48  ;;  %v520_v41 = vpack.c.bf16 %v516_v38, %v516_v38 }
 0x16e   :  { %4259 = vrot.lane.b32.xlu1 %v4258_v53, %s5609_s3 }
 0x16f   :  { %4254 = vrot.lane.b32.xlu0 %v4253_v55, %s5609_s3 }
 0x1dc   :  { %v4245_v57 = vpop.permute.xlu1 %4244 }
 0x1dd   :  { %v4250_v58 = vpop.permute.xlu0 %4249  ;;  %v4247_v59 = vunpack.i.h.bf16 %v4245_v57  ;;  %v4246_v60 = vunpack.i.l.bf16 %v4245_v57 }
 0x1de   :  { %v4252_v61 = vunpack.i.h.bf16 %v4250_v58  ;;  %v4251_v62 = vunpack.i.l.bf16 %v4250_v58 }
 0x1df   :  { %v355_v7 = vsel %vm206_vm8, %v307_v0, %v4246_v60  ;;  %v356_v8 = vsel %vm206_vm8, %v301_v46, %v4247_v59  ;;  %v528_v46 = vsel %vm376_vm10, %v520_v41, 0 }
 0x1e0   :  { %v4260_v63 = vpop.permute.xlu1 %4259  ;;  %v353_v12 = vsel %vm206_vm8, %v305_v1, %v4251_v62  ;;  %v354_v13 = vsel %vm206_vm8, %v303_v56, %v4252_v61 }
 0x1e1   :  { %v4262_v2 = vunpack.i.h.bf16 %v4260_v63  ;;  %v4261_v4 = vunpack.i.l.bf16 %v4260_v63  ;;  %v4255_v6 = vpop.permute.xlu0 %4254 }
 0x1e2   :  { %v4257_v9 = vunpack.i.h.bf16 %v4255_v6  ;;  %v4256_v11 = vunpack.i.l.bf16 %v4255_v6 }
 0x1e3   :  { %v360_v14 = vsel %vm357_vm11, %v355_v7, %v4261_v4  ;;  %v361_v15 = vsel %vm357_vm11, %v356_v8, %v4262_v2 }
 0x1e4   :  { %v366_v16 = vpack.c.bf16 %v361_v15, %v360_v14  ;;  %v358_v17 = vsel %vm357_vm11, %v353_v12, %v4256_v11  ;;  %v359_v18 = vsel %vm357_vm11, %v354_v13, %v4257_v9 }
 0x1e5   :  { %v365_v19 = vpack.c.bf16 %v359_v18, %v358_v17 }
 0x1e7   :  { %3905 = vmatprep.mubr.msk.bf16.mxu1 %vm369_vm12, %v365_v19 }
 0x1e8   :  { %3906 = vmatmul.mubr.msk.bf16.vlgmr.msra.gmra.mrb[4].mxu1 %vm369_vm12, %v366_v16 }
 0x1e9   :  { %3910 = vmatpush3.bf16.msra.mxu1 %v519_v30 }
 0x1ea   :  { %4205 = vmatprep.subr.msk.bf16.mxu1 %vm376_vm10, %v520_v41 }
 0x1ed   :  { %3912 = vmatpush3.bf16.msra.mxu1 %v528_v46 }
 0x2bb   :  { %v3907_v23 = vpop.f32.mrb[4].mxu1 }
 0x2bc   :  { %v436_v26 = vmul.f32 %v3907_v23, %v433_v21  ;;  %v414_v27 = vpop.f32.mrb[5].mxu1 }
 0x2bd   :  { %v434_v31 = vmul.f32 %v433_v21, %v414_v27  ;;  %v3908_v32 = vpop.f32.mrb[6].mxu1 }
 0x2be   :  { %v444_v33 = vadd.f32 %v441_v22, %v436_v26  ;;  %v437_v34 = vmul.f32 %v3908_v32, %v433_v21  ;;  %v417_v35 = vpop.f32.mrb[7].mxu1  ;;  %v600_v32 = vld [vmem:[%s5592_s7] sm:$0xff] }
 0x2bf   :  { %v442_v36 = vadd.f32 %v441_v22, %v434_v31  ;;  %v435_v37 = vmul.f32 %v433_v21, %v417_v35  ;;  %v579_v35 = vld [vmem:[%s5593_s6] sm:$0x3]  ;;  %s4515_s6 = smov 48  }
 0x2c0   :  { %v448_v39 = vmax.f32 %v444_v33, 0.0  ;;  %v445_v40 = vadd.f32 %v441_v22, %v437_v34  ;;  %v601_v33 = vld [vmem:[%s5592_s7 + $0x8] sm:$0xff]  ;;  %s4516_s7 = smov 72  }
 0x2c1   :  { %v446_v43 = vmax.f32 %v442_v36, 0.0  ;;  %v443_v44 = vadd.f32 %v441_v22, %v435_v37  ;;  %v604_v34 = vpack.c.bf16 %v601_v33, %v600_v32  ;;  %v583_v36 = vrot.slane %v579_v35, %v4692_v3 }
 0x2c2   :  { %v449_v45 = vmax.f32 %v445_v40, 0.0  ;;  %v452_v48 = vrot.slane %v448_v39, 7  ;;  %v464_v52 = vrot.slane %v448_v39, 1  ;;  %v591_v37 = vrot.slane %v579_v35, %v4698_v5 }
 0x2c3   :  { %v450_v49 = vrot.slane %v446_v43, 7  ;;  %v462_v50 = vrot.slane %v446_v43, 1  ;;  %v447_v51 = vmax.f32 %v443_v44, 0.0  ;;  %3917 = vmatprep.subr.bf16.mxu1 %v604_v34 }
 0x2c4   :  { %v453_v53 = vrot.slane %v449_v45, 7  ;;  %v465_v54 = vrot.slane %v449_v45, 1  ;;  %v4263_v55 = vpack.i.bf16 %v449_v45, %v448_v39 }
 0x2c5   :  { %v451_v56 = vrot.slane %v447_v51, 7  ;;  %v463_v57 = vrot.slane %v447_v51, 1  ;;  %v4268_v58 = vpack.i.bf16 %v447_v51, %v446_v43 }
 0x2c6   :  { %4264 = vrot.lane.b32.xlu1 %v4263_v55, %s5611_s27  ;;  %v466_v59 = vsel %vm152_vm0, %v464_v52, %v465_v54  ;;  %v469_v60 = vsel %vm152_vm0, %v465_v54, %v462_v50  ;;  %v454_v61 = vsel %vm131_vm1, %v452_v48, %v453_v53  ;;  %v457_v62 = vsel %vm131_vm1, %v453_v53, %v450_v49 }
 0x2c7   :  { %4269 = vrot.lane.b32.xlu0 %v4268_v58, %s5611_s27  ;;  %v473_v63 = vsel %vm4653_vm4, 0.0, %v469_v60  ;;  %v467_v0 = vsel %vm152_vm0, %v463_v57, %v464_v52  ;;  %v468_v1 = vsel %vm152_vm0, %v462_v50, %v463_v57  ;;  %v455_v2 = vsel %vm131_vm1, %v451_v56, %v452_v48  ;;  %v668_v58 = vld [vmem:[%s5594_s9] sm:$0xff] }
 0x2c8   :  { %v4278_v4 = vpack.i.bf16 %v473_v63, %v466_v59  ;;  %v471_v6 = vsel %vm4649_vm3, 0.0, %v467_v0  ;;  %v456_v8 = vsel %vm131_vm1, %v450_v49, %v451_v56  ;;  %v460_v16 = vsel %vm4677_vm7, 0.0, %v455_v2  ;;  %v669_v59 = vld [vmem:[%s5594_s9 + $0x8] sm:$0xff] }
 0x2c9   :  { %v4273_v7 = vpack.i.bf16 %v471_v6, %v468_v1  ;;  %v458_v28 = vsel %vm4671_vm5, 0.0, %v457_v62  ;;  %v674_v60 = vpack.c.bf16 %v669_v59, %v668_v58  ;;  %v671_v62 = vld [vmem:[%s5594_s9 + $0x18] sm:$0xff]  ;;  %v3689_v1 = vld [vmem:[%s5595_s8] ss:$0 sm:$0xff]  ;;  %vm3665_vm0 = vcmask 254976  }
 0x2ca   :  { %4279 = vrot.lane.b32.xlu1 %v4278_v4, %s5609_s3  ;;  %vm3677_vm1 = vcmask 1024  }
 0x2cb   :  { %4274 = vrot.lane.b32.xlu0 %v4273_v7, %s5609_s3  ;;  %3923 = vmatprep.subr.bf16.mxu0 %v674_v60 }
 0x2cc   :  { %3924 = vmatpush3.bf16.msra.mxu0 %v674_v60 }
 0x338   :  { %v4265_v29 = vpop.permute.xlu1 %4264 }
 0x339   :  { %v4270_v9 = vpop.permute.xlu0 %4269  ;;  %v4267_v11 = vunpack.i.h.bf16 %v4265_v29  ;;  %v4266_v12 = vunpack.i.l.bf16 %v4265_v29 }
 0x33a   :  { %v4272_v13 = vunpack.i.h.bf16 %v4270_v9  ;;  %v4271_v14 = vunpack.i.l.bf16 %v4270_v9 }
 0x33b   :  { %v508_v20 = vsel %vm206_vm8, %v460_v16, %v4266_v12  ;;  %v509_v21 = vsel %vm206_vm8, %v454_v61, %v4267_v11  ;;  %v670_v61 = vld [vmem:[%s5594_s9 + $0x10] sm:$0xff] }
 0x33c   :  { %v4280_v15 = vpop.permute.xlu1 %4279  ;;  %v506_v24 = vsel %vm206_vm8, %v458_v28, %v4271_v14  ;;  %v507_v25 = vsel %vm206_vm8, %v456_v8, %v4272_v13  ;;  %v675_v63 = vpack.c.bf16 %v671_v62, %v670_v61  ;;  %v4506_v13 = vmov 0.0  }
 0x33d   :  { %v4282_v17 = vunpack.i.h.bf16 %v4280_v15  ;;  %v4281_v18 = vunpack.i.l.bf16 %v4280_v15  ;;  %v4275_v19 = vpop.permute.xlu0 %4274  ;;  %v3692_v15 = vld [vmem:[%s5596_s10] ss:$0 sm:$0xff] }
 0x33e   :  { %v4277_v22 = vunpack.i.h.bf16 %v4275_v19  ;;  %v4276_v23 = vunpack.i.l.bf16 %v4275_v19  ;;  %3925 = vmatprep.subr.bf16.mxu0 %v675_v63 }
 0x33f   :  { %v512_v26 = vsel %vm357_vm11, %v508_v20, %v4281_v18  ;;  %v513_v47 = vsel %vm357_vm11, %v509_v21, %v4282_v17  ;;  %3926 = vmatpush3.bf16.msra.mxu0 %v675_v63 }
 0x340   :  { %v518_v27 = vpack.c.bf16 %v513_v47, %v512_v26  ;;  %v510_v42 = vsel %vm357_vm11, %v506_v24, %v4276_v23  ;;  %v511_v30 = vsel %vm357_vm11, %v507_v25, %v4277_v22  ;;  %3937 = vmatprep.subr.bf16.mxu0 %v4506_v13 }
 0x341   :  { %v517_v31 = vpack.c.bf16 %v511_v30, %v510_v42 }
 0x343   :  { %3913 = vmatprep.mubr.msk.bf16.mxu1 %vm369_vm12, %v517_v31 }
 0x344   :  { %3914 = vmatmul.mubr.msk.bf16.vlgmr.msra.gmra.mrb[8].mxu1 %vm369_vm12, %v518_v27 }
 0x345   :  { %3918 = vmatpush3.bf16.msra.mxu1 %v604_v34 }
 0x346   :  { %3931 = vmatprep.subr.bf16.mxu1 %v4506_v13 }
 0x417   :  { %v3915_v38 = vpop.f32.mrb[8].mxu1 }
 0x418   :  { %v586_v39 = vmul.f32 %v3915_v38, %v583_v36  ;;  %v564_v40 = vpop.f32.mrb[9].mxu1 }
 0x419   :  { %v584_v41 = vmul.f32 %v583_v36, %v564_v40  ;;  %v3916_v43 = vpop.f32.mrb[10].mxu1 }
 0x41a   :  { %v594_v44 = vadd.f32 %v591_v37, %v586_v39  ;;  %v587_v45 = vmul.f32 %v3916_v43, %v583_v36  ;;  %v567_v46 = vpop.f32.mrb[11].mxu1 }
 0x41b   :  { %v592_v48 = vadd.f32 %v591_v37, %v584_v41  ;;  %v585_v49 = vmul.f32 %v583_v36, %v567_v46 }
 0x41c   :  { %v595_v50 = vadd.f32 %v591_v37, %v587_v45  ;;  %v598_v52 = vmax.f32 %v594_v44, 0.0 }
 0x41d   :  { %v593_v51 = vadd.f32 %v591_v37, %v585_v49  ;;  %v596_v54 = vmax.f32 %v592_v48, 0.0 }
 0x41e   :  { %v599_v53 = vmax.f32 %v595_v50, 0.0 }
 0x41f   :  { %v597_v55 = vmax.f32 %v593_v51, 0.0 }
 0x420   :  { %v603_v56 = vpack.c.bf16 %v599_v53, %v598_v52 }
 0x421   :  { %v602_v57 = vpack.c.bf16 %v597_v55, %v596_v54 }
 0x423   :  { %3919 = vmatprep.mubr.msk.bf16.mxu1 %vm357_vm11, %v602_v57 }
 0x424   :  { %3920 = vmatmul.mubr.msk.bf16.vlgmr.msra.gmra.mrb[12].mxu1 %vm357_vm11, %v603_v56 }
 0x425   :  { %3933 = vmatprep.mubr.msk.bf16.mxu1 %vm4507_vm14, %v4506_v13 }
 0x4f7   :  { %v3921_v0 = vpop.f32.mrb[12].mxu1 }
 0x4f8   :  { %v652_v2 = vpop.f32.mrb[13].mxu1  ;;  %v4839_v9 = vadd.f32 %v3921_v0, %v3689_v1 }
 0x4f9   :  { %v3922_v4 = vpop.f32.mrb[14].mxu1  ;;  %v4835_v8 = vadd.f32 %v3689_v1, %v652_v2 }
 0x4fa   :  { %v4833_v6 = vadd.f32 %v3922_v4, %v3689_v1  ;;  %v655_v7 = vpop.f32.mrb[15].mxu1 }
 0x4fb   :  { %v4837_v29 = vadd.f32 %v3689_v1, %v655_v7 }
 0x4fc   :  { %v673_v12 = vpack.c.bf16 %v4833_v6, %v4839_v9 }
 0x4fd   :  { %v672_v11 = vpack.c.bf16 %v4837_v29, %v4835_v8 }
 0x4ff   :  { %3927 = vmatprep.mubr.msk.bf16.mxu0 %vm683_vm13, %v672_v11 }
 0x500   :  { %3928 = vmatmul.mubr.msk.bf16.vlgmr.msra.gmra.mrb[0].mxu0 %vm683_vm13, %v673_v12 }
 0x501   :  { %3939 = vmatprep.mubr.msk.bf16.mxu0 %vm4507_vm14, %v4506_v13 }
 0x5d3   :  { %v3929_v14 = vpop.f32.mrb[0].mxu0 }
 0x5d4   :  { %v724_v16 = vpop.f32.mrb[1].mxu0  ;;  %v733_v17 = vadd.f32 %v3929_v14, %v3692_v15 }
 0x5d5   :  { %v3930_v28 = vpop.f32.mrb[2].mxu0  ;;  %v725_v20 = vadd.f32 %v3692_v15, %v724_v16 }
 0x5d6   :  { %v736_v18 = vadd.f32 %v3930_v28, %v3692_v15  ;;  %v727_v19 = vpop.f32.mrb[3].mxu0 }
 0x5d7   :  { %v728_v21 = vadd.f32 %v3692_v15, %v727_v19 }
 0x5d8   :  { %v4856_v22 = vpack.c.bf16 %v736_v18, %v733_v17 }
 0x5d9   :  { %v4858_v23 = vpack.c.bf16 %v728_v21, %v725_v20 }
 0x5da   :  { %792 = vrot.lane.b32.xlu1 %v4856_v22, %s4508_s29 }
 0x5db   :  { %742 = vrot.lane.b32.xlu0 %v4858_v23, %s4508_s29 }
 0x64c   :  { %v793_v24 = vpop.permute.xlu1 %792 }
 0x64d   :  { %v798_v25 = vsel %vm206_vm8, %v793_v24, 0  ;;  %v743_v26 = vpop.permute.xlu0 %742 }
 0x64e   :  { %v748_v47 = vsel %vm206_vm8, %v743_v26, 0  ;;  %3938 = vmatpush3.bf16.xpose.msra.mxu0 %v798_v25 }
 0x64f   :  { %3932 = vmatpush3.bf16.xpose.msra.mxu1 %v748_v47  ;;  %3949 = vmatprep.subr.bf16.mxu0 %v4506_v13 }
 0x650   :  { %3943 = vmatprep.subr.bf16.mxu1 %v4506_v13 }
 0x655   :  { %3940 = vmatmul.mubr.msk.bf16.vlgmr.msra.gmra.mrb[4].mxu0 %vm206_vm8, %v4856_v22 }
 0x656   :  { %3934 = vmatmul.mubr.msk.bf16.vlgmr.msra.gmra.mrb[16].mxu1 %vm206_vm8, %v4858_v23  ;;  %3951 = vmatprep.mubr.msk.bf16.mxu0 %vm4507_vm14, %v4506_v13 }
 0x657   :  { %3945 = vmatprep.mubr.msk.bf16.mxu1 %vm4507_vm14, %v4506_v13 }
 0x728   :  { %v834_v27 = vpop.f32.mrb[4].mxu0 }
 0x729   :  { %v784_v42 = vpop.f32.mrb[16].mxu1  ;;  %v3941_v30 = vpop.f32.mrb[5].mxu0  ;;  %v843_v36 = vmul.f32 0.35355338, %v834_v27 }
 0x72a   :  { %v841_v31 = vmul.f32 0.35355338, %v784_v42  ;;  %v3935_v32 = vpop.f32.mrb[17].mxu1  ;;  %v837_v33 = vpop.f32.mrb[6].mxu0 }
 0x72b   :  { %v787_v34 = vpop.f32.mrb[18].mxu1  ;;  %v3942_v35 = vpop.f32.mrb[7].mxu0  ;;  %v844_v41 = vmul.f32 0.35355338, %v837_v33  ;;  %v851_v43 = vsel %vm357_vm11, %v843_v36, -inf }
 0x72c   :  { %v842_v37 = vmul.f32 0.35355338, %v787_v34  ;;  %v3936_v38 = vpop.f32.mrb[19].mxu1  ;;  %v845_v39 = vsel %vm357_vm11, %v841_v31, -inf }
 0x72d   :  { %846 = vmax.xlane.f32.xlu0 %v845_v39  ;;  %v854_v44 = vsel %vm357_vm11, %v844_v41, -inf }
 0x72e   :  { %v848_v40 = vsel %vm357_vm11, %v842_v37, -inf }
 0x72f   :  { %849 = vmax.xlane.f32.xlu1 %v848_v40 }
 0x731   :  { %852 = vmax.xlane.f32.xlu0 %v851_v43 }
 0x735   :  { %855 = vmax.xlane.f32.xlu0 %v854_v44 }
 0x740   :  { %891 = vrot.lane.b32.xlu1 %v4858_v23, %s4509_s5 }
 0x7ba   :  { %v847_v45 = vpop.xlane.xlu0 %846 }
 0x7bb   :  { %v857_v48 = vsub.f32 %v841_v31, %v847_v45 }
 0x7bc   :  { %v850_v46 = vpop.xlane.xlu1 %849 }
 0x7bd   :  { %v861_v52 = vmul.f32 1.442695, %v857_v48  ;;  %v858_v53 = vsub.f32 %v842_v37, %v850_v46 }
 0x7be   :  { %v853_v49 = vpop.xlane.xlu0 %852 }
 0x7bf   :  { %v859_v50 = vsub.f32 %v843_v36, %v853_v49  ;;  %v863_v57 = vmul.f32 1.442695, %v858_v53 }
 0x7c0   :  { %v892_v51 = vpop.permute.xlu1 %891 }
 0x7c1   :  { %v865_v54 = vmul.f32 1.442695, %v859_v50  ;;  %3944 = vmatpush3.bf16.msra.mxu1 %v892_v51 }
 0x7c2   :  { %v856_v55 = vpop.xlane.xlu0 %855  ;;  %3955 = vmatprep.subr.bf16.mxu1 %v4506_v13 }
 0x7c3   :  { %4343 = vpow2.f32 %v865_v54  ;;  %v860_v56 = vsub.f32 %v844_v41, %v856_v55 }
 0x7c4   :  { %4345 = vpow2.f32 %v861_v52 }
 0x7c5   :  { %v867_v58 = vmul.f32 1.442695, %v860_v56 }
 0x7c7   :  { %4347 = vpow2.f32 %v867_v58 }
 0x7c8   :  { %4349 = vpow2.f32 %v863_v57 }
 0x7cd   :  { %v4344_v59 = vpop.eup %4343 }
 0x7ce   :  { %v875_v60 = vsel %vm357_vm11, %v4344_v59, 0.0  ;;  %v4346_v61 = vpop.eup %4345 }
 0x7cf   :  { %876 = vadd.xlane.f32.xlu1 %v875_v60  ;;  %v869_v0 = vsel %vm357_vm11, %v4346_v61, 0.0 }
 0x7d1   :  { %v4348_v62 = vpop.eup %4347 }
 0x7d2   :  { %v878_v63 = vsel %vm357_vm11, %v4348_v62, 0.0  ;;  %v4350_v1 = vpop.eup %4349 }
 0x7d3   :  { %879 = vadd.xlane.f32.xlu0 %v878_v63  ;;  %870 = vadd.xlane.f32.xlu1 %v869_v0  ;;  %v872_v2 = vsel %vm357_vm11, %v4350_v1, 0.0 }
 0x7d7   :  { %873 = vadd.xlane.f32.xlu0 %v872_v2 }
 0x7e4   :  { %987 = vrot.lane.b32.xlu1 %v4858_v23, %s4510_s30 }
 0x7e8   :  { %1038 = vrot.lane.b32.xlu1 %v4856_v22, %s4510_s30 }
 0x7ec   :  { %1036 = vrot.lane.b32.xlu1 %v4856_v22, %s4511_s0 }
 0x7ed   :  { %938 = vrot.lane.b32.xlu0 %v4856_v22, %s4509_s5 }
 0x7f1   :  { %985 = vrot.lane.b32.xlu0 %v4858_v23, %s4511_s0 }
 0x85c   :  { %v877_v4 = vpop.xlane.xlu1 %876 }
 0x85d   :  { %4351 = vrcp.f32 %v877_v4 }
 0x860   :  { %v880_v7 = vpop.xlane.xlu0 %879  ;;  %v871_v11 = vpop.xlane.xlu1 %870 }
 0x861   :  { %4353 = vrcp.f32 %v880_v7 }
 0x862   :  { %4355 = vrcp.f32 %v871_v11 }
 0x864   :  { %v874_v12 = vpop.xlane.xlu0 %873  ;;  %v988_v14 = vpop.permute.xlu1 %987 }
 0x865   :  { %4357 = vrcp.f32 %v874_v12  ;;  %v993_v42 = vsel %vm206_vm8, %v988_v14, 0 }
 0x867   :  { %v4352_v16 = vpop.eup %4351 }
 0x868   :  { %v939_v15 = vpop.permute.xlu0 %938  ;;  %v887_v17 = vmul.f32 %v4352_v16, %v4344_v59  ;;  %v1039_v20 = vpop.permute.xlu1 %1038 }
 0x869   :  { %3950 = vmatpush3.bf16.msra.mxu0 %v939_v15  ;;  %v1044_v47 = vsel %vm206_vm8, %v1039_v20, 0 }
 0x86a   :  { %3961 = vmatprep.subr.bf16.mxu0 %v4506_v13 }
 0x86b   :  { %v4354_v28 = vpop.eup %4353 }
 0x86c   :  { %v888_v18 = vmul.f32 %v4354_v28, %v4348_v62  ;;  %v4356_v19 = vpop.eup %4355  ;;  %v1037_v30 = vpop.permute.xlu1 %1036 }
 0x86d   :  { %v885_v25 = vmul.f32 %v4356_v19, %v4346_v61  ;;  %v986_v31 = vpop.permute.xlu0 %985 }
 0x86e   :  { %v890_v21 = vpack.c.bf16 %v888_v18, %v887_v17 }
 0x86f   :  { %v4358_v24 = vpop.eup %4357 }
 0x870   :  { %v886_v26 = vmul.f32 %v4358_v24, %v4350_v1  ;;  %3952 = vmatmul.mubr.msk.bf16.vlgmr.msra.gmra.mrb[8].mxu0 %vm357_vm11, %v890_v21 }
 0x871   :  { %3963 = vmatprep.mubr.msk.bf16.mxu0 %vm4507_vm14, %v4506_v13 }
 0x872   :  { %3962 = vmatpush3.bf16.xpose.msra.mxu0 %v1044_v47  ;;  %v889_v27 = vpack.c.bf16 %v886_v26, %v885_v25 }
 0x873   :  { %3973 = vmatprep.subr.bf16.mxu0 %v4506_v13 }
 0x874   :  { %3946 = vmatmul.mubr.msk.bf16.vlgmr.msra.gmra.mrb[20].mxu1 %vm357_vm11, %v889_v27 }
 0x875   :  { %3956 = vmatpush3.bf16.xpose.msra.mxu1 %v993_v42  ;;  %3957 = vmatprep.mubr.msk.bf16.mxu1 %vm4507_vm14, %v4506_v13 }
 0x876   :  { %3967 = vmatprep.subr.bf16.mxu1 %v4506_v13 }
 0x879   :  { %3964 = vmatmul.mubr.msk.bf16.vlgmr.msra.gmra.mrb[12].mxu0 %vm206_vm8, %v1037_v30 }
 0x87a   :  { %3975 = vmatprep.mubr.msk.bf16.mxu0 %vm4507_vm14, %v4506_v13 }
 0x87c   :  { %3958 = vmatmul.mubr.msk.bf16.vlgmr.msra.gmra.mrb[24].mxu1 %vm206_vm8, %v986_v31 }
 0x87d   :  { %3969 = vmatprep.mubr.msk.bf16.mxu1 %vm4507_vm14, %v4506_v13 }
 0x943   :  { %v4914_v32 = vpop.f32.mrb[8].mxu0 }
 0x944   :  { %v3953_v33 = vpop.f32.mrb[9].mxu0 }
 0x945   :  { %v4916_v34 = vpop.f32.mrb[10].mxu0 }
 0x946   :  { %v3954_v35 = vpop.f32.mrb[11].mxu0 }
 0x947   :  { %v4918_v36 = vpop.f32.mrb[20].mxu1 }
 0x948   :  { %v3947_v37 = vpop.f32.mrb[21].mxu1 }
 0x949   :  { %v4920_v38 = vpop.f32.mrb[22].mxu1 }
 0x94a   :  { %v3948_v39 = vpop.f32.mrb[23].mxu1 }
 0x94c   :  { %v1080_v40 = vpop.f32.mrb[12].mxu0 }
 0x94d   :  { %v3965_v41 = vpop.f32.mrb[13].mxu0  ;;  %v1089_v50 = vmul.f32 0.35355338, %v1080_v40 }
 0x94e   :  { %v1083_v43 = vpop.f32.mrb[14].mxu0 }
 0x94f   :  { %v1029_v44 = vpop.f32.mrb[24].mxu1  ;;  %v3966_v45 = vpop.f32.mrb[15].mxu0  ;;  %v1090_v55 = vmul.f32 0.35355338, %v1083_v43  ;;  %v1097_v56 = vsel %vm357_vm11, %v1089_v50, -inf }
 0x950   :  { %v1087_v46 = vmul.f32 0.35355338, %v1029_v44  ;;  %v3959_v48 = vpop.f32.mrb[25].mxu1 }
 0x951   :  { %v1032_v49 = vpop.f32.mrb[26].mxu1  ;;  %v1100_v57 = vsel %vm357_vm11, %v1090_v55, -inf }
 0x952   :  { %v1088_v51 = vmul.f32 0.35355338, %v1032_v49  ;;  %v3960_v52 = vpop.f32.mrb[27].mxu1  ;;  %v1091_v53 = vsel %vm357_vm11, %v1087_v46, -inf }
 0x953   :  { %1092 = vmax.xlane.f32.xlu0 %v1091_v53 }
 0x954   :  { %v1094_v54 = vsel %vm357_vm11, %v1088_v51, -inf }
 0x955   :  { %1095 = vmax.xlane.f32.xlu1 %v1094_v54 }
 0x957   :  { %1098 = vmax.xlane.f32.xlu0 %v1097_v56 }
 0x95b   :  { %1101 = vmax.xlane.f32.xlu0 %v1100_v57 }
 0x966   :  { %1137 = vrot.lane.b32.xlu1 %v4858_v23, %s4512_s19 }
 0x9e0   :  { %v1093_v58 = vpop.xlane.xlu0 %1092 }
 0x9e1   :  { %v1103_v60 = vsub.f32 %v1087_v46, %v1093_v58 }
 0x9e2   :  { %v1096_v59 = vpop.xlane.xlu1 %1095 }
 0x9e3   :  { %v1107_v0 = vmul.f32 1.442695, %v1103_v60  ;;  %v1104_v1 = vsub.f32 %v1088_v51, %v1096_v59 }
 0x9e4   :  { %v1099_v61 = vpop.xlane.xlu0 %1098 }
 0x9e5   :  { %v1105_v62 = vsub.f32 %v1089_v50, %v1099_v61  ;;  %v1109_v11 = vmul.f32 1.442695, %v1104_v1 }
 0x9e6   :  { %v1138_v63 = vpop.permute.xlu1 %1137 }
 0x9e7   :  { %v1111_v2 = vmul.f32 1.442695, %v1105_v62  ;;  %3968 = vmatpush3.bf16.msra.mxu1 %v1138_v63 }
 0x9e8   :  { %v1102_v4 = vpop.xlane.xlu0 %1101  ;;  %3979 = vmatprep.subr.bf16.mxu1 %v4506_v13 }
 0x9e9   :  { %4359 = vpow2.f32 %v1111_v2  ;;  %v1106_v7 = vsub.f32 %v1090_v55, %v1102_v4 }
 0x9ea   :  { %4361 = vpow2.f32 %v1107_v0 }
 0x9eb   :  { %v1113_v12 = vmul.f32 1.442695, %v1106_v7 }
 0x9ed   :  { %4363 = vpow2.f32 %v1113_v12 }
 0x9ee   :  { %4365 = vpow2.f32 %v1109_v11 }
 0x9f3   :  { %v4360_v14 = vpop.eup %4359 }
 0x9f4   :  { %v1121_v15 = vsel %vm357_vm11, %v4360_v14, 0.0  ;;  %v4362_v16 = vpop.eup %4361 }
 0x9f5   :  { %1122 = vadd.xlane.f32.xlu1 %v1121_v15  ;;  %v1115_v18 = vsel %vm357_vm11, %v4362_v16, 0.0 }
 0x9f7   :  { %v4364_v28 = vpop.eup %4363 }
 0x9f8   :  { %v1124_v17 = vsel %vm357_vm11, %v4364_v28, 0.0  ;;  %v4366_v19 = vpop.eup %4365 }
 0x9f9   :  { %1125 = vadd.xlane.f32.xlu0 %v1124_v17  ;;  %1116 = vadd.xlane.f32.xlu1 %v1115_v18  ;;  %v1118_v20 = vsel %vm357_vm11, %v4366_v19, 0.0 }
 0x9fd   :  { %1119 = vadd.xlane.f32.xlu0 %v1118_v20 }
 0xa0a   :  { %1233 = vrot.lane.b32.xlu1 %v4858_v23, %s4513_s1 }
 0xa0e   :  { %1284 = vrot.lane.b32.xlu1 %v4856_v22, %s4513_s1 }
 0xa12   :  { %1282 = vrot.lane.b32.xlu1 %v4856_v22, %s4514_s20 }
 0xa13   :  { %1184 = vrot.lane.b32.xlu0 %v4856_v22, %s4512_s19 }
 0xa17   :  { %1231 = vrot.lane.b32.xlu0 %v4858_v23, %s4514_s20 }
 0xa82   :  { %v1123_v21 = vpop.xlane.xlu1 %1122 }
 0xa83   :  { %4367 = vrcp.f32 %v1123_v21 }
 0xa86   :  { %v1126_v24 = vpop.xlane.xlu0 %1125  ;;  %v1117_v25 = vpop.xlane.xlu1 %1116 }
 0xa87   :  { %4369 = vrcp.f32 %v1126_v24 }
 0xa88   :  { %4371 = vrcp.f32 %v1117_v25 }
 0xa8a   :  { %v1120_v26 = vpop.xlane.xlu0 %1119  ;;  %v1234_v47 = vpop.permute.xlu1 %1233 }
 0xa8b   :  { %4373 = vrcp.f32 %v1120_v26  ;;  %v1239_v46 = vsel %vm206_vm8, %v1234_v47, 0 }
 0xa8d   :  { %v4368_v42 = vpop.eup %4367 }
 0xa8e   :  { %v1185_v27 = vpop.permute.xlu0 %1184  ;;  %v1133_v31 = vmul.f32 %v4368_v42, %v4360_v14  ;;  %v1285_v37 = vpop.permute.xlu1 %1284 }
 0xa8f   :  { %3974 = vmatpush3.bf16.msra.mxu0 %v1185_v27  ;;  %v1290_v44 = vsel %vm206_vm8, %v1285_v37, 0 }
 0xa90   :  { %3985 = vmatprep.subr.bf16.mxu0 %v4506_v13 }
 0xa91   :  { %v4370_v30 = vpop.eup %4369 }
 0xa92   :  { %v1134_v33 = vmul.f32 %v4370_v30, %v4364_v28  ;;  %v4372_v35 = vpop.eup %4371  ;;  %v1283_v48 = vpop.permute.xlu1 %1282 }
 0xa93   :  { %v1131_v41 = vmul.f32 %v4372_v35, %v4362_v16  ;;  %v1232_v49 = vpop.permute.xlu0 %1231 }
 0xa94   :  { %v1136_v39 = vpack.c.bf16 %v1134_v33, %v1133_v31 }
 0xa95   :  { %v4374_v40 = vpop.eup %4373 }
 0xa96   :  { %v1132_v43 = vmul.f32 %v4374_v40, %v4366_v19  ;;  %3976 = vmatmul.mubr.msk.bf16.vlgmr.msra.gmra.mrb[16].mxu0 %vm357_vm11, %v1136_v39 }
 0xa97   :  { %3987 = vmatprep.mubr.msk.bf16.mxu0 %vm4507_vm14, %v4506_v13 }
 0xa98   :  { %3986 = vmatpush3.bf16.xpose.msra.mxu0 %v1290_v44  ;;  %v1135_v45 = vpack.c.bf16 %v1132_v43, %v1131_v41 }
 0xa99   :  { %3997 = vmatprep.subr.bf16.mxu0 %v4506_v13 }
 0xa9a   :  { %3970 = vmatmul.mubr.msk.bf16.vlgmr.msra.gmra.mrb[28].mxu1 %vm357_vm11, %v1135_v45 }
 0xa9b   :  { %3980 = vmatpush3.bf16.xpose.msra.mxu1 %v1239_v46  ;;  %3981 = vmatprep.mubr.msk.bf16.mxu1 %vm4507_vm14, %v4506_v13 }
 0xa9c   :  { %3991 = vmatprep.subr.bf16.mxu1 %v4506_v13 }
 0xa9f   :  { %3988 = vmatmul.mubr.msk.bf16.vlgmr.msra.gmra.mrb[20].mxu0 %vm206_vm8, %v1283_v48 }
 0xaa0   :  { %3999 = vmatprep.mubr.msk.bf16.mxu0 %vm4507_vm14, %v4506_v13 }
 0xaa2   :  { %3982 = vmatmul.mubr.msk.bf16.vlgmr.msra.gmra.mrb[32].mxu1 %vm206_vm8, %v1232_v49 }
 0xaa3   :  { %3993 = vmatprep.mubr.msk.bf16.mxu1 %vm4507_vm14, %v4506_v13 }
 0xb69   :  { %v4960_v50 = vpop.f32.mrb[16].mxu0 }
 0xb6a   :  { %v3977_v51 = vpop.f32.mrb[17].mxu0 }
 0xb6b   :  { %v4962_v52 = vpop.f32.mrb[18].mxu0 }
 0xb6c   :  { %v4288_v53 = vpack.i.bf16 %v4962_v52, %v4960_v50  ;;  %v3978_v54 = vpop.f32.mrb[19].mxu0 }
 0xb6d   :  { %v4966_v55 = vpop.f32.mrb[28].mxu1 }
 0xb6e   :  { %v3971_v56 = vpop.f32.mrb[29].mxu1 }
 0xb6f   :  { %v4968_v57 = vpop.f32.mrb[30].mxu1 }
 0xb70   :  { %v4283_v58 = vpack.i.bf16 %v4968_v57, %v4966_v55  ;;  %v3972_v59 = vpop.f32.mrb[31].mxu1 }
 0xb72   :  { %v1326_v60 = vpop.f32.mrb[20].mxu0 }
 0xb73   :  { %v3989_v61 = vpop.f32.mrb[21].mxu0  ;;  %v1335_v7 = vmul.f32 0.35355338, %v1326_v60 }
 0xb74   :  { %v1329_v62 = vpop.f32.mrb[22].mxu0 }
 0xb75   :  { %v1275_v63 = vpop.f32.mrb[32].mxu1  ;;  %v3990_v0 = vpop.f32.mrb[23].mxu0  ;;  %v1336_v16 = vmul.f32 0.35355338, %v1329_v62  ;;  %v1343_v28 = vsel %vm357_vm11, %v1335_v7, -inf }
 0xb76   :  { %v1333_v1 = vmul.f32 0.35355338, %v1275_v63  ;;  %v3983_v2 = vpop.f32.mrb[33].mxu1 }
 0xb77   :  { %v1278_v4 = vpop.f32.mrb[34].mxu1  ;;  %v1346_v17 = vsel %vm357_vm11, %v1336_v16, -inf }
 0xb78   :  { %v1334_v11 = vmul.f32 0.35355338, %v1278_v4  ;;  %v3984_v12 = vpop.f32.mrb[35].mxu1  ;;  %v1337_v14 = vsel %vm357_vm11, %v1333_v1, -inf }
 0xb79   :  { %1338 = vmax.xlane.f32.xlu0 %v1337_v14 }
 0xb7a   :  { %v1340_v15 = vsel %vm357_vm11, %v1334_v11, -inf }
 0xb7b   :  { %1341 = vmax.xlane.f32.xlu1 %v1340_v15 }
 0xb7d   :  { %1344 = vmax.xlane.f32.xlu0 %v1343_v28 }
 0xb81   :  { %1347 = vmax.xlane.f32.xlu0 %v1346_v17 }
 0xb8c   :  { %1383 = vrot.lane.b32.xlu1 %v4858_v23, %s4515_s6 }
 0xc06   :  { %v1339_v18 = vpop.xlane.xlu0 %1338 }
 0xc07   :  { %v1349_v20 = vsub.f32 %v1333_v1, %v1339_v18 }
 0xc08   :  { %v1342_v19 = vpop.xlane.xlu1 %1341 }
 0xc09   :  { %v1353_v26 = vmul.f32 1.442695, %v1349_v20  ;;  %v1350_v47 = vsub.f32 %v1334_v11, %v1342_v19 }
 0xc0a   :  { %v1345_v21 = vpop.xlane.xlu0 %1344 }
 0xc0b   :  { %v1351_v24 = vsub.f32 %v1335_v7, %v1345_v21  ;;  %v1355_v31 = vmul.f32 1.442695, %v1350_v47 }
 0xc0c   :  { %v1384_v25 = vpop.permute.xlu1 %1383 }
 0xc0d   :  { %v1357_v27 = vmul.f32 1.442695, %v1351_v24  ;;  %3992 = vmatpush3.bf16.msra.mxu1 %v1384_v25 }
 0xc0e   :  { %v1348_v42 = vpop.xlane.xlu0 %1347  ;;  %4003 = vmatprep.subr.bf16.mxu1 %v4506_v13 }
 0xc0f   :  { %4375 = vpow2.f32 %v1357_v27  ;;  %v1352_v30 = vsub.f32 %v1336_v16, %v1348_v42 }
 0xc10   :  { %4377 = vpow2.f32 %v1353_v26 }
 0xc11   :  { %v1359_v33 = vmul.f32 1.442695, %v1352_v30 }
 0xc13   :  { %4379 = vpow2.f32 %v1359_v33 }
 0xc14   :  { %4381 = vpow2.f32 %v1355_v31 }
 0xc19   :  { %v4376_v35 = vpop.eup %4375 }
 0xc1a   :  { %v1367_v37 = vsel %vm357_vm11, %v4376_v35, 0.0  ;;  %v4378_v39 = vpop.eup %4377 }
 0xc1b   :  { %1368 = vadd.xlane.f32.xlu1 %v1367_v37  ;;  %v1361_v43 = vsel %vm357_vm11, %v4378_v39, 0.0 }
 0xc1d   :  { %v4380_v40 = vpop.eup %4379 }
 0xc1e   :  { %v1370_v41 = vsel %vm357_vm11, %v4380_v40, 0.0  ;;  %v4382_v44 = vpop.eup %4381 }
 0xc1f   :  { %1371 = vadd.xlane.f32.xlu0 %v1370_v41  ;;  %1362 = vadd.xlane.f32.xlu1 %v1361_v43  ;;  %v1364_v45 = vsel %vm357_vm11, %v4382_v44, 0.0 }
 0xc23   :  { %1365 = vadd.xlane.f32.xlu0 %v1364_v45 }
 0xc30   :  { %1479 = vrot.lane.b32.xlu1 %v4858_v23, %s4516_s7 }
 0xc34   :  { %1530 = vrot.lane.b32.xlu1 %v4856_v22, %s4516_s7 }
 0xc38   :  { %1528 = vrot.lane.b32.xlu1 %v4856_v22, %s4517_s21 }
 0xc39   :  { %1430 = vrot.lane.b32.xlu0 %v4856_v22, %s4515_s6 }
 0xc3d   :  { %1477 = vrot.lane.b32.xlu0 %v4858_v23, %s4517_s21 }
 0xca8   :  { %v1369_v46 = vpop.xlane.xlu1 %1368 }
 0xca9   :  { %4383 = vrcp.f32 %v1369_v46 }
 0xcac   :  { %v1372_v48 = vpop.xlane.xlu0 %1371  ;;  %v1363_v49 = vpop.xlane.xlu1 %1362 }
 0xcad   :  { %4385 = vrcp.f32 %v1372_v48 }
 0xcae   :  { %4387 = vrcp.f32 %v1363_v49 }
 0xcb0   :  { %v1366_v51 = vpop.xlane.xlu0 %1365  ;;  %v1480_v54 = vpop.permute.xlu1 %1479 }
 0xcb1   :  { %4389 = vrcp.f32 %v1366_v51  ;;  %v1485_v14 = vsel %vm206_vm8, %v1480_v54, 0 }
 0xcb3   :  { %v4384_v59 = vpop.eup %4383 }
 0xcb4   :  { %v1431_v56 = vpop.permute.xlu0 %1430  ;;  %v1379_v61 = vmul.f32 %v4384_v59, %v4376_v35  ;;  %v1531_v0 = vpop.permute.xlu1 %1530 }
 0xcb5   :  { %3998 = vmatpush3.bf16.msra.mxu0 %v1431_v56  ;;  %v1536_v11 = vsel %vm206_vm8, %v1531_v0, 0 }
 0xcb6   :  { %4009 = vmatprep.subr.bf16.mxu0 %v4506_v13 }
 0xcb7   :  { %v4386_v60 = vpop.eup %4385 }
 0xcb8   :  { %v1380_v62 = vmul.f32 %v4386_v60, %v4380_v40  ;;  %v4388_v63 = vpop.eup %4387  ;;  %v1529_v15 = vpop.permute.xlu1 %1528 }
 0xcb9   :  { %v1377_v4 = vmul.f32 %v4388_v63, %v4378_v39  ;;  %v1478_v16 = vpop.permute.xlu0 %1477 }
 0xcba   :  { %v1382_v1 = vpack.c.bf16 %v1380_v62, %v1379_v61 }
 0xcbb   :  { %v4390_v2 = vpop.eup %4389 }
 0xcbc   :  { %v1378_v7 = vmul.f32 %v4390_v2, %v4382_v44  ;;  %4000 = vmatmul.mubr.msk.bf16.vlgmr.msra.gmra.mrb[24].mxu0 %vm357_vm11, %v1382_v1 }
 0xcbd   :  { %4011 = vmatprep.mubr.msk.bf16.mxu0 %vm4507_vm14, %v4506_v13 }
 0xcbe   :  { %4010 = vmatpush3.bf16.xpose.msra.mxu0 %v1536_v11  ;;  %v1381_v12 = vpack.c.bf16 %v1378_v7, %v1377_v4 }
 0xcbf   :  { %4021 = vmatprep.subr.bf16.mxu0 %v4506_v13 }
 0xcc0   :  { %3994 = vmatmul.mubr.msk.bf16.vlgmr.msra.gmra.mrb[36].mxu1 %vm357_vm11, %v1381_v12 }
 0xcc1   :  { %4004 = vmatpush3.bf16.xpose.msra.mxu1 %v1485_v14  ;;  %4005 = vmatprep.mubr.msk.bf16.mxu1 %vm4507_vm14, %v4506_v13 }
 0xcc2   :  { %4015 = vmatprep.subr.bf16.mxu1 %v4506_v13 }
 0xcc5   :  { %4012 = vmatmul.mubr.msk.bf16.vlgmr.msra.gmra.mrb[28].mxu0 %vm206_vm8, %v1529_v15 }
 0xcc6   :  { %4023 = vmatprep.mubr.msk.bf16.mxu0 %vm4507_vm14, %v4506_v13 }
 0xcc8   :  { %4006 = vmatmul.mubr.msk.bf16.vlgmr.msra.gmra.mrb[40].mxu1 %vm206_vm8, %v1478_v16 }
 0xcc9   :  { %4017 = vmatprep.mubr.msk.bf16.mxu1 %vm4507_vm14, %v4506_v13 }
 0xd8f   :  { %v5010_v28 = vpop.f32.mrb[24].mxu0 }
 0xd90   :  { %v4001_v17 = vpop.f32.mrb[25].mxu0 }
 0xd91   :  { %v1473_v18 = vpop.f32.mrb[26].mxu0 }
 0xd92   :  { %v4298_v19 = vpack.i.bf16 %v1473_v18, %v5010_v28  ;;  %v4002_v20 = vpop.f32.mrb[27].mxu0 }
 0xd93   :  { %v1423_v21 = vpop.f32.mrb[36].mxu1 }
 0xd94   :  { %v3995_v24 = vpop.f32.mrb[37].mxu1 }
 0xd95   :  { %v1426_v25 = vpop.f32.mrb[38].mxu1 }
 0xd96   :  { %v4293_v26 = vpack.i.bf16 %v1426_v25, %v1423_v21  ;;  %v3996_v47 = vpop.f32.mrb[39].mxu1 }
 0xd98   :  { %v1572_v27 = vpop.f32.mrb[28].mxu0 }
 0xd99   :  { %v4013_v42 = vpop.f32.mrb[29].mxu0  ;;  %v1581_v40 = vmul.f32 0.35355338, %v1572_v27  ;;  %v1783_v27 = vld [vmem:[%s5597_s11] sm:$0xff] }
 0xd9a   :  { %v1575_v30 = vpop.f32.mrb[30].mxu0  ;;  %v1784_v42 = vld [vmem:[%s5597_s11 + $0x8] sm:$0xff] }
 0xd9b   :  { %v1521_v31 = vpop.f32.mrb[40].mxu1  ;;  %v4014_v33 = vpop.f32.mrb[31].mxu0  ;;  %v1582_v46 = vmul.f32 0.35355338, %v1575_v30  ;;  %v1589_v48 = vsel %vm357_vm11, %v1581_v40, -inf  ;;  %v1789_v30 = vpack.c.bf16 %v1784_v42, %v1783_v27 }
 0xd9c   :  { %v1579_v35 = vmul.f32 0.35355338, %v1521_v31  ;;  %v4007_v37 = vpop.f32.mrb[41].mxu1  ;;  %v1785_v31 = vld [vmem:[%s5597_s11 + $0x10] sm:$0xff]  ;;  %v1786_v33 = vld [vmem:[%s5597_s11 + $0x18] sm:$0xff] }
 0xd9d   :  { %v1524_v39 = vpop.f32.mrb[42].mxu1  ;;  %v1592_v49 = vsel %vm357_vm11, %v1582_v46, -inf }
 0xd9e   :  { %v1580_v41 = vmul.f32 0.35355338, %v1524_v39  ;;  %v4008_v43 = vpop.f32.mrb[43].mxu1  ;;  %v1583_v44 = vsel %vm357_vm11, %v1579_v35, -inf }
 0xd9f   :  { %1584 = vmax.xlane.f32.xlu0 %v1583_v44 }
 0xda0   :  { %v1586_v45 = vsel %vm357_vm11, %v1580_v41, -inf }
 0xda1   :  { %1587 = vmax.xlane.f32.xlu1 %v1586_v45 }
 0xda3   :  { %1590 = vmax.xlane.f32.xlu0 %v1589_v48 }
 0xda7   :  { %1593 = vmax.xlane.f32.xlu0 %v1592_v49 }
 0xe2c   :  { %v1585_v51 = vpop.xlane.xlu0 %1584 }
 0xe2d   :  { %v1595_v54 = vsub.f32 %v1579_v35, %v1585_v51  ;;  %v1790_v35 = vpack.c.bf16 %v1786_v33, %v1785_v31 }
 0xe2e   :  { %v1588_v56 = vpop.xlane.xlu1 %1587 }
 0xe2f   :  { %v1599_v61 = vmul.f32 1.442695, %v1595_v54  ;;  %v1596_v62 = vsub.f32 %v1580_v41, %v1588_v56 }
 0xe30   :  { %v1591_v59 = vpop.xlane.xlu0 %1590 }
 0xe31   :  { %v1597_v60 = vsub.f32 %v1581_v40, %v1591_v59  ;;  %v1601_v2 = vmul.f32 1.442695, %v1596_v62 }
 0xe33   :  { %v1603_v63 = vmul.f32 1.442695, %v1597_v60 }
 0xe34   :  { %v1594_v0 = vpop.xlane.xlu0 %1593 }
 0xe35   :  { %4391 = vpow2.f32 %v1603_v63  ;;  %v1598_v1 = vsub.f32 %v1582_v46, %v1594_v0 }
 0xe36   :  { %4393 = vpow2.f32 %v1599_v61 }
 0xe37   :  { %v1605_v4 = vmul.f32 1.442695, %v1598_v1 }
 0xe39   :  { %4395 = vpow2.f32 %v1605_v4 }
 0xe3a   :  { %4397 = vpow2.f32 %v1601_v2 }
 0xe3f   :  { %v4392_v7 = vpop.eup %4391 }
 0xe40   :  { %v1613_v11 = vsel %vm357_vm11, %v4392_v7, 0.0  ;;  %v4394_v12 = vpop.eup %4393 }
 0xe41   :  { %1614 = vadd.xlane.f32.xlu1 %v1613_v11  ;;  %v1607_v16 = vsel %vm357_vm11, %v4394_v12, 0.0 }
 0xe43   :  { %v4396_v14 = vpop.eup %4395 }
 0xe44   :  { %v1616_v15 = vsel %vm357_vm11, %v4396_v14, 0.0  ;;  %v4398_v28 = vpop.eup %4397 }
 0xe45   :  { %1617 = vadd.xlane.f32.xlu0 %v1616_v15  ;;  %1608 = vadd.xlane.f32.xlu1 %v1607_v16  ;;  %v1610_v17 = vsel %vm357_vm11, %v4398_v28, 0.0 }
 0xe49   :  { %1611 = vadd.xlane.f32.xlu0 %v1610_v17 }
 0xe56   :  { %1629 = vrot.lane.b32.xlu1 %v4858_v23, %s4518_s22 }
 0xe5a   :  { %4284 = vrot.lane.b32.xlu1 %v4283_v58, %s5611_s27 }
 0xe5e   :  { %4289 = vrot.lane.b32.xlu1 %v4288_v53, %s5611_s27 }
 0xe5f   :  { %1676 = vrot.lane.b32.xlu0 %v4856_v22, %s4518_s22 }
 0xe62   :  { %4299 = vrot.lane.b32.xlu1 %v4298_v19, %s5609_s3 }
 0xe63   :  { %4294 = vrot.lane.b32.xlu0 %v4293_v26, %s5609_s3 }
 0xece   :  { %v1615_v18 = vpop.xlane.xlu1 %1614 }
 0xecf   :  { %4399 = vrcp.f32 %v1615_v18 }
 0xed2   :  { %v1618_v23 = vpop.xlane.xlu0 %1617  ;;  %v1609_v20 = vpop.xlane.xlu1 %1608 }
 0xed3   :  { %4401 = vrcp.f32 %v1618_v23 }
 0xed4   :  { %4403 = vrcp.f32 %v1609_v20 }
 0xed6   :  { %v1612_v55 = vpop.xlane.xlu0 %1611  ;;  %v1630_v57 = vpop.permute.xlu1 %1629 }
 0xed7   :  { %4405 = vrcp.f32 %v1612_v55  ;;  %4016 = vmatpush3.bf16.msra.mxu1 %v1630_v57 }
 0xed8   :  { %4027 = vmatprep.subr.bf16.mxu1 %v1789_v30 }
 0xed9   :  { %v4400_v50 = vpop.eup %4399 }
 0xeda   :  { %v1677_v58 = vpop.permute.xlu0 %1676  ;;  %v1625_v53 = vmul.f32 %v4400_v50, %v4392_v7  ;;  %v4285_v51 = vpop.permute.xlu1 %4284 }
 0xedb   :  { %4022 = vmatpush3.bf16.msra.mxu0 %v1677_v58  ;;  %v4287_v0 = vunpack.i.h.bf16 %v4285_v51  ;;  %v4286_v1 = vunpack.i.l.bf16 %v4285_v51 }
 0xedd   :  { %v4402_v52 = vpop.eup %4401 }
 0xede   :  { %v1626_v22 = vmul.f32 %v4402_v52, %v4396_v14  ;;  %v4404_v21 = vpop.eup %4403  ;;  %v4290_v54 = vpop.permute.xlu1 %4289 }
 0xedf   :  { %v1623_v25 = vmul.f32 %v4404_v21, %v4394_v12  ;;  %v4292_v59 = vunpack.i.h.bf16 %v4290_v54  ;;  %v4291_v60 = vunpack.i.l.bf16 %v4290_v54  ;;  %v4295_v63 = vpop.permute.xlu0 %4294 }
 0xee0   :  { %v1628_v19 = vpack.c.bf16 %v1626_v22, %v1625_v53  ;;  %v4297_v14 = vunpack.i.h.bf16 %v4295_v63  ;;  %v4296_v15 = vunpack.i.l.bf16 %v4295_v63 }
 0xee1   :  { %v4406_v24 = vpop.eup %4405  ;;  %v1774_v4 = vsel %vm206_vm8, %v4916_v34, %v4292_v59  ;;  %v1773_v7 = vsel %vm206_vm8, %v4914_v32, %v4291_v60  ;;  %v1772_v34 = vsel %vm206_vm8, %v4920_v38, %v4287_v0  ;;  %v1771_v32 = vsel %vm206_vm8, %v4918_v36, %v4286_v1  ;;  %v5072_v38 = vld [vmem:[%s5598_s15] sm:$0x3f] }
 0xee2   :  { %v1624_v26 = vmul.f32 %v4406_v24, %v4398_v28  ;;  %4024 = vmatmul.mubr.msk.bf16.vlgmr.msra.gmra.mrb[32].mxu0 %vm357_vm11, %v1628_v19  ;;  %v4300_v56 = vpop.permute.xlu1 %4299  ;;  %v1775_v58 = vsel %vm357_vm11, %v1771_v32, %v4296_v15  ;;  %v1776_v50 = vsel %vm357_vm11, %v1772_v34, %v4297_v14  ;;  %v1794_v36 = vrot.slane %v5072_v38, %v4692_v3  ;;  %v1997_v15 = vld [vmem:[%s5600_s14] sm:$0xff]  ;;  %v2002_v34 = vld [vmem:[%s5600_s14 + $0x28] sm:$0xff] }
 0xee3   :  { %v4302_v61 = vunpack.i.h.bf16 %v4300_v56  ;;  %v4301_v62 = vunpack.i.l.bf16 %v4300_v56 }
 0xee4   :  { %v1627_v47 = vpack.c.bf16 %v1624_v26, %v1623_v25 }
 0xee5   :  { %v1777_v16 = vsel %vm357_vm11, %v1773_v7, %v4301_v62  ;;  %v1778_v28 = vsel %vm357_vm11, %v1774_v4, %v4302_v61  ;;  %v1924_v4 = vld [vmem:[%s5599_s12 + $0x8] sm:$0xff] }
 0xee6   :  { %4018 = vmatmul.mubr.msk.bf16.vlgmr.msra.gmra.mrb[44].mxu1 %vm357_vm11, %v1627_v47 }
 0xee7   :  { %4028 = vmatpush3.bf16.msra.mxu1 %v1789_v30 }
 0xee8   :  { %4029 = vmatprep.subr.bf16.mxu1 %v1790_v35 }
 0xeeb   :  { %4030 = vmatpush3.bf16.msra.mxu1 %v1790_v35 }
 0xfb5   :  { %v1716_v37 = vpop.f32.mrb[32].mxu0 }
 0xfb6   :  { %v4025_v39 = vpop.f32.mrb[33].mxu0 }
 0xfb7   :  { %v1719_v40 = vpop.f32.mrb[34].mxu0 }
 0xfb8   :  { %v4308_v41 = vpack.i.bf16 %v1719_v40, %v1716_v37  ;;  %v4026_v43 = vpop.f32.mrb[35].mxu0 }
 0xfb9   :  { %v1669_v44 = vpop.f32.mrb[44].mxu1 }
 0xfba   :  { %4309 = vrot.lane.b32.xlu1 %v4308_v41, %s5607_s2  ;;  %v4019_v45 = vpop.f32.mrb[45].mxu1 }
 0xfbb   :  { %v1672_v46 = vpop.f32.mrb[46].mxu1 }
 0xfbc   :  { %v4303_v48 = vpack.i.bf16 %v1672_v46, %v1669_v44  ;;  %v4020_v49 = vpop.f32.mrb[47].mxu1 }
 0xfbe   :  { %4304 = vrot.lane.b32.xlu0 %v4303_v48, %s5607_s2 }
0x102c   :  { %v4310_v2 = vpop.permute.xlu1 %4309 }
0x102d   :  { %v4312_v11 = vunpack.i.h.bf16 %v4310_v2  ;;  %v4311_v12 = vunpack.i.l.bf16 %v4310_v2  ;;  %v1923_v2 = vld [vmem:[%s5599_s12] sm:$0xff] }
0x102e   :  { %v1929_v7 = vpack.c.bf16 %v1924_v4, %v1923_v2  ;;  %v2010_v2 = vld [vmem:[%s5600_s14 + $0x68] sm:$0xff] }
0x102f   :  { %v1781_v17 = vsel %vm369_vm12, %v1777_v16, %v4311_v12  ;;  %v1782_v18 = vsel %vm369_vm12, %v1778_v28, %v4312_v11  ;;  %v1925_v11 = vld [vmem:[%s5599_s12 + $0x10] sm:$0xff]  ;;  %v1926_v12 = vld [vmem:[%s5599_s12 + $0x18] sm:$0xff]  ;;  %v1998_v16 = vld [vmem:[%s5600_s14 + $0x8] sm:$0xff] }
0x1030   :  { %v1788_v23 = vpack.c.bf16 %v1782_v18, %v1781_v17  ;;  %v4305_v20 = vpop.permute.xlu0 %4304  ;;  %4035 = vmatprep.subr.bf16.mxu0 %v1929_v7  ;;  %v1930_v14 = vpack.c.bf16 %v1926_v12, %v1925_v11  ;;  %v1999_v28 = vld [vmem:[%s5600_s14 + $0x10] sm:$0xff]  ;;  %v2015_v17 = vpack.c.bf16 %v1998_v16, %v1997_v15  ;;  %v2000_v18 = vld [vmem:[%s5600_s14 + $0x18] sm:$0xff]  ;;  %v3713_v12 = vld [vmem:[%s5601_s13] ss:$0 sm:$0xff] }
0x1031   :  { %v4307_v55 = vunpack.i.h.bf16 %v4305_v20  ;;  %v4306_v57 = vunpack.i.l.bf16 %v4305_v20  ;;  %4036 = vmatpush3.bf16.msra.mxu0 %v1929_v7  ;;  %v2001_v20 = vld [vmem:[%s5600_s14 + $0x20] sm:$0xff]  ;;  %v2012_v7 = vld [vmem:[%s5600_s14 + $0x78] sm:$0xff] }
0x1032   :  { %4037 = vmatprep.subr.bf16.mxu0 %v1930_v14  ;;  %4043 = vmatprep.subr.bf16.mxu1 %v2015_v17  ;;  %v2017_v32 = vpack.c.bf16 %v2002_v34, %v2001_v20 }
0x1033   :  { %v1780_v52 = vsel %vm369_vm12, %v1776_v50, %v4307_v55  ;;  %v1779_v53 = vsel %vm369_vm12, %v1775_v58, %v4306_v57  ;;  %v2003_v55 = vld [vmem:[%s5600_s14 + $0x30] sm:$0xff]  ;;  %v2004_v57 = vld [vmem:[%s5600_s14 + $0x38] sm:$0xff]  ;;  %v2005_v50 = vld [vmem:[%s5600_s14 + $0x40] sm:$0xff] }
0x1034   :  { %v1787_v22 = vpack.c.bf16 %v1780_v52, %v1779_v53  ;;  %v2018_v58 = vpack.c.bf16 %v2004_v57, %v2003_v55  ;;  %v2006_v52 = vld [vmem:[%s5600_s14 + $0x48] sm:$0xff] }
0x1035   :  { %4038 = vmatpush3.bf16.msra.mxu0 %v1930_v14  ;;  %v2019_v53 = vpack.c.bf16 %v2006_v52, %v2005_v50  ;;  %v2025_v52 = vsub.s32 3, %v4630_v10 }
0x1036   :  { %4031 = vmatprep.mubr.msk.bf16.mxu1 %vm683_vm13, %v1787_v22  ;;  %v2007_v22 = vld [vmem:[%s5600_s14 + $0x50] sm:$0xff] }
0x1037   :  { %4032 = vmatmul.mubr.msk.bf16.vlgmr.msra.gmra.mrb[48].mxu1 %vm683_vm13, %v1788_v23  ;;  %v2016_v23 = vpack.c.bf16 %v2000_v18, %v1999_v28 }
0x1038   :  { %4044 = vmatpush3.bf16.msra.mxu1 %v2015_v17 }
0x1039   :  { %4045 = vmatprep.subr.bf16.mxu1 %v2016_v23 }
0x103c   :  { %4046 = vmatpush3.bf16.msra.mxu1 %v2016_v23 }
0x103d   :  { %4047 = vmatprep.subr.bf16.mxu1 %v2017_v32 }
0x1040   :  { %4048 = vmatpush3.bf16.msra.mxu1 %v2017_v32 }
0x1041   :  { %4049 = vmatprep.subr.bf16.mxu1 %v2018_v58 }
0x1044   :  { %4050 = vmatpush3.bf16.msra.mxu1 %v2018_v58 }
0x1045   :  { %4051 = vmatprep.subr.bf16.mxu1 %v2019_v53 }
0x1048   :  { %4052 = vmatpush3.bf16.msra.mxu1 %v2019_v53  ;;  %v2026_v53 = vrot.slane %v5072_v38, %v2025_v52 }
0x110a   :  { %v4033_v21 = vpop.f32.mrb[48].mxu1 }
0x110b   :  { %v1835_v19 = vpop.f32.mrb[49].mxu1  ;;  %v1844_v24 = vadd.f32 %v4033_v21, %v1794_v36 }
0x110c   :  { %v1836_v25 = vadd.f32 %v1835_v19, %v1794_v36  ;;  %v4034_v26 = vpop.f32.mrb[50].mxu1 }
0x110d   :  { %v1838_v47 = vpop.f32.mrb[51].mxu1  ;;  %v1847_v30 = vadd.f32 %v4034_v26, %v1794_v36  ;;  %v1852_v35 = vadd.f32 %v1844_v24, %v4839_v9 }
0x110e   :  { %v1839_v27 = vadd.f32 %v1838_v47, %v1794_v36  ;;  %v1850_v42 = vadd.f32 %v1836_v25, %v4835_v8  ;;  %v2008_v36 = vld [vmem:[%s5600_s14 + $0x58] sm:$0xff] }
0x110f   :  { %v1860_v39 = vsel %vm683_vm13, %v1852_v35, 0.0  ;;  %v1853_v40 = vadd.f32 %v1847_v30, %v4833_v6  ;;  %v2020_v21 = vpack.c.bf16 %v2008_v36, %v2007_v22 }
0x1110   :  { %v1854_v31 = vsel %vm683_vm13, %v1850_v42, 0.0  ;;  %v1851_v33 = vadd.f32 %v1839_v27, %v4837_v29 }
0x1111   :  { %1855 = vadd.xlane.f32.xlu0 %v1854_v31  ;;  %v1863_v41 = vsel %vm683_vm13, %v1853_v40, 0.0  ;;  %4053 = vmatprep.subr.bf16.mxu1 %v2020_v21 }
0x1112   :  { %v1857_v37 = vsel %vm683_vm13, %v1851_v33, 0.0  ;;  %4054 = vmatpush3.bf16.msra.mxu1 %v2020_v21 }
0x1113   :  { %1858 = vadd.xlane.f32.xlu1 %v1857_v37 }
0x1115   :  { %1861 = vadd.xlane.f32.xlu0 %v1860_v39  ;;  %v1910_v39 = vrot.slane %v5072_v38, %v4698_v5 }
0x1119   :  { %1864 = vadd.xlane.f32.xlu0 %v1863_v41 }
0x119e   :  { %v1856_v8 = vpop.xlane.xlu0 %1855 }
0x119f   :  { %v1867_v43 = vmul.f32 0.03125, %v1856_v8 }
0x11a0   :  { %v1859_v44 = vpop.xlane.xlu1 %1858 }
0x11a1   :  { %v5084_v45 = vsub.f32 %v1850_v42, %v1867_v43  ;;  %v1868_v29 = vmul.f32 0.03125, %v1859_v44 }
0x11a2   :  { %v1862_v46 = vpop.xlane.xlu0 %1861 }
0x11a3   :  { %v5086_v9 = vsub.f32 %v1851_v33, %v1868_v29  ;;  %v1869_v48 = vmul.f32 0.03125, %v1862_v46  ;;  %v1875_v49 = vmul.f32 %v5084_v45, %v5084_v45 }
0x11a5   :  { %v5090_v51 = vsub.f32 %v1852_v35, %v1869_v48  ;;  %v1879_v6 = vsel %vm683_vm13, %v1875_v49, 0.0  ;;  %v1876_v54 = vmul.f32 %v5086_v9, %v5086_v9 }
0x11a6   :  { %1880 = vadd.xlane.f32.xlu1 %v1879_v6  ;;  %v1865_v56 = vpop.xlane.xlu0 %1864 }
0x11a7   :  { %v1870_v59 = vmul.f32 0.03125, %v1865_v56  ;;  %v1882_v60 = vsel %vm683_vm13, %v1876_v54, 0.0  ;;  %v1877_v61 = vmul.f32 %v5090_v51, %v5090_v51 }
0x11a8   :  { %1883 = vadd.xlane.f32.xlu0 %v1882_v60 }
0x11a9   :  { %v5098_v62 = vsub.f32 %v1853_v40, %v1870_v59  ;;  %v1885_v63 = vsel %vm683_vm13, %v1877_v61, 0.0  ;;  %v1917_v40 = vsub.s32 2, %v4630_v10 }
0x11aa   :  { %1886 = vadd.xlane.f32.xlu1 %v1885_v63 }
0x11ab   :  { %v1878_v0 = vmul.f32 %v5098_v62, %v5098_v62  ;;  %v1918_v46 = vrot.slane %v5072_v38, %v1917_v40 }
0x11ad   :  { %v1888_v1 = vsel %vm683_vm13, %v1878_v0, 0.0 }
0x11ae   :  { %1889 = vadd.xlane.f32.xlu0 %v1888_v1 }
0x1233   :  { %v1881_v19 = vpop.xlane.xlu1 %1880 }
0x1234   :  { %v1891_v24 = vmul.f32 0.03125, %v1881_v19 }
0x1235   :  { %v1884_v25 = vpop.xlane.xlu0 %1883 }
0x1236   :  { %v1895_v26 = vadd.f32 1e-05, %v1891_v24  ;;  %v1892_v47 = vmul.f32 0.03125, %v1884_v25 }
0x1237   :  { %v1887_v27 = vpop.xlane.xlu1 %1886 }
0x1238   :  { %4407 = vrsqrt.f32 %v1895_v26  ;;  %v1896_v42 = vadd.f32 1e-05, %v1892_v47  ;;  %v1893_v30 = vmul.f32 0.03125, %v1887_v27 }
0x123a   :  { %4409 = vrsqrt.f32 %v1896_v42  ;;  %v1897_v31 = vadd.f32 1e-05, %v1893_v30 }
0x123b   :  { %v1890_v33 = vpop.xlane.xlu0 %1889 }
0x123c   :  { %4411 = vrsqrt.f32 %v1897_v31  ;;  %v1894_v35 = vmul.f32 0.03125, %v1890_v33 }
0x123e   :  { %v1898_v37 = vadd.f32 1e-05, %v1894_v35 }
0x1240   :  { %4413 = vrsqrt.f32 %v1898_v37 }
0x1242   :  { %v4408_v41 = vpop.eup %4407 }
0x1243   :  { %v1903_v8 = vmul.f32 %v4408_v41, %v5084_v45 }
0x1244   :  { %v4410_v43 = vpop.eup %4409 }
0x1245   :  { %v1904_v44 = vmul.f32 %v4410_v43, %v5086_v9  ;;  %v1911_v29 = vmul.f32 %v1910_v39, %v1903_v8 }
0x1246   :  { %v4412_v48 = vpop.eup %4411 }
0x1247   :  { %v1905_v49 = vmul.f32 %v4412_v48, %v5090_v51  ;;  %v1912_v6 = vmul.f32 %v1910_v39, %v1904_v44  ;;  %v1919_v54 = vadd.f32 %v1918_v46, %v1911_v29  ;;  %v2009_v51 = vld [vmem:[%s5600_s14 + $0x60] sm:$0xff] }
0x1248   :  { %v2021_v4 = vpack.c.bf16 %v2010_v2, %v2009_v51  ;;  %v3717_v2 = vld [vmem:[%s5594_s9 + $0x20] sm:$0xff] }
0x1249   :  { %v1920_v56 = vadd.f32 %v1918_v46, %v1912_v6  ;;  %v1913_v60 = vmul.f32 %v1910_v39, %v1905_v49 }
0x124a   :  { %v4414_v59 = vpop.eup %4413  ;;  %4055 = vmatprep.subr.bf16.mxu1 %v2021_v4 }
0x124b   :  { %v1906_v61 = vmul.f32 %v4414_v59, %v5098_v62  ;;  %v1927_v63 = vpack.c.bf16 %v1920_v56, %v1919_v54  ;;  %v1921_v9 = vadd.f32 %v1918_v46, %v1913_v60  ;;  %4056 = vmatpush3.bf16.msra.mxu1 %v2021_v4  ;;  %v2011_v62 = vld [vmem:[%s5600_s14 + $0x70] sm:$0xff]  ;;  %v3718_v4 = vld [vmem:[%s5594_s9 + $0x28] sm:$0xff] }
0x124c   :  { %v2022_v11 = vpack.c.bf16 %v2012_v7, %v2011_v62  ;;  %v2157_v62 = vpack.c.bf16 %v3718_v4, %v3717_v2  ;;  %v3719_v7 = vld [vmem:[%s5594_s9 + $0x30] sm:$0xff] }
0x124d   :  { %v1914_v45 = vmul.f32 %v1910_v39, %v1906_v61  ;;  %4039 = vmatprep.mubr.msk.bf16.mxu0 %vm683_vm13, %v1927_v63 }
0x124e   :  { %4057 = vmatprep.subr.bf16.mxu1 %v2022_v11  ;;  %4063 = vmatprep.subr.bf16.mxu0 %v2157_v62 }
0x124f   :  { %v1922_v0 = vadd.f32 %v1918_v46, %v1914_v45  ;;  %4058 = vmatpush3.bf16.msra.mxu1 %v2022_v11  ;;  %v3720_v11 = vld [vmem:[%s5594_s9 + $0x38] sm:$0xff] }
0x1250   :  { %4089 = vmatprep.subr.bf16.mxu1 %v4506_v13 }
0x1251   :  { %v1928_v1 = vpack.c.bf16 %v1922_v0, %v1921_v9 }
0x1253   :  { %4040 = vmatmul.mubr.msk.bf16.vlgmr.msra.gmra.mrb[36].mxu0 %vm683_vm13, %v1928_v1 }
0x1254   :  { %4064 = vmatpush3.bf16.msra.mxu0 %v2157_v62 }
0x1326   :  { %v4041_v14 = vpop.f32.mrb[36].mxu0 }
0x1327   :  { %v1987_v15 = vadd.f32 %v4041_v14, %v3713_v12  ;;  %v1978_v16 = vpop.f32.mrb[37].mxu0 }
0x1328   :  { %v1979_v28 = vadd.f32 %v3713_v12, %v1978_v16  ;;  %v4042_v17 = vpop.f32.mrb[38].mxu0 }
0x1329   :  { %v1990_v18 = vadd.f32 %v4042_v17, %v3713_v12  ;;  %v1981_v23 = vpop.f32.mrb[39].mxu0  ;;  %v1995_v34 = vmax.f32 %v1987_v15, 0.0 }
0x132a   :  { %v1982_v20 = vadd.f32 %v3713_v12, %v1981_v23  ;;  %v1993_v55 = vmax.f32 %v1979_v28, 0.0  ;;  %v2158_v12 = vpack.c.bf16 %v3720_v11, %v3719_v7 }
0x132b   :  { %v1996_v32 = vmax.f32 %v1990_v18, 0.0 }
0x132c   :  { %v1994_v57 = vmax.f32 %v1982_v20, 0.0  ;;  %4065 = vmatprep.subr.bf16.mxu0 %v2158_v12 }
0x132d   :  { %v2014_v58 = vpack.c.bf16 %v1996_v32, %v1995_v34  ;;  %4066 = vmatpush3.bf16.msra.mxu0 %v2158_v12 }
0x132e   :  { %v2013_v50 = vpack.c.bf16 %v1994_v57, %v1993_v55  ;;  %4071 = vmatprep.subr.bf16.mxu0 %v4506_v13 }
0x1330   :  { %4059 = vmatprep.mubr.bf16.mxu1 %v2013_v50 }
0x1331   :  { %4060 = vmatmul.mubr.bf16.vlgmr.msra.gmra.mrb[52].mxu1 %v2014_v58  ;;  %v2134_v58 = vsub.s32 4, %v4630_v10 }
0x1332   :  { %4091 = vmatprep.mubr.msk.bf16.mxu1 %vm4507_vm14, %v4506_v13 }
0x1333   :  { %v2135_v50 = vrot.slane %v5072_v38, %v2134_v58 }
0x1404   :  { %v4061_v22 = vpop.f32.mrb[52].mxu1 }
0x1405   :  { %v2061_v36 = vpop.f32.mrb[53].mxu1  ;;  %v2070_v21 = vadd.f32 %v4061_v22, %v2026_v53 }
0x1406   :  { %v2062_v19 = vadd.f32 %v2061_v36, %v2026_v53  ;;  %v4062_v24 = vpop.f32.mrb[54].mxu1 }
0x1407   :  { %v2064_v25 = vpop.f32.mrb[55].mxu1  ;;  %v2073_v26 = vadd.f32 %v4062_v24, %v2026_v53  ;;  %v2078_v31 = vadd.f32 %v2070_v21, %v1921_v9 }
0x1408   :  { %v2065_v47 = vadd.f32 %v2064_v25, %v2026_v53  ;;  %v2076_v27 = vadd.f32 %v2062_v19, %v1919_v54  ;;  %v2142_v53 = vsub.s32 5, %v4630_v10 }
0x1409   :  { %v2079_v35 = vadd.f32 %v2073_v26, %v1922_v0  ;;  %v2086_v37 = vsel %vm683_vm13, %v2078_v31, 0.0 }
0x140a   :  { %v2080_v42 = vsel %vm683_vm13, %v2076_v27, 0.0  ;;  %v2077_v30 = vadd.f32 %v2065_v47, %v1920_v56  ;;  %v2143_v25 = vrot.slane %v5072_v38, %v2142_v53 }
0x140b   :  { %2081 = vadd.xlane.f32.xlu1 %v2080_v42  ;;  %v2089_v39 = vsel %vm683_vm13, %v2079_v35, 0.0 }
0x140c   :  { %v2083_v33 = vsel %vm683_vm13, %v2077_v30, 0.0 }
0x140d   :  { %2084 = vadd.xlane.f32.xlu0 %v2083_v33 }
0x140f   :  { %2087 = vadd.xlane.f32.xlu1 %v2086_v37 }
0x1411   :  { %2090 = vadd.xlane.f32.xlu0 %v2089_v39 }
0x1498   :  { %v2082_v41 = vpop.xlane.xlu1 %2081 }
0x1499   :  { %v2092_v8 = vmul.f32 0.03125, %v2082_v41 }
0x149a   :  { %v2085_v43 = vpop.xlane.xlu0 %2084 }
0x149b   :  { %v2096_v44 = vsub.f32 %v2076_v27, %v2092_v8  ;;  %v2093_v29 = vmul.f32 0.03125, %v2085_v43 }
0x149c   :  { %v2088_v46 = vpop.xlane.xlu1 %2087 }
0x149d   :  { %v2097_v48 = vsub.f32 %v2077_v30, %v2093_v29  ;;  %v2094_v49 = vmul.f32 0.03125, %v2088_v46  ;;  %v2100_v6 = vmul.f32 %v2096_v44, %v2096_v44 }
0x149e   :  { %v2091_v54 = vpop.xlane.xlu0 %2090 }
0x149f   :  { %v2098_v56 = vsub.f32 %v2078_v31, %v2094_v49  ;;  %v2095_v59 = vmul.f32 0.03125, %v2091_v54  ;;  %v2104_v60 = vsel %vm683_vm13, %v2100_v6, 0.0  ;;  %v2101_v61 = vmul.f32 %v2097_v48, %v2097_v48 }
0x14a0   :  { %2105 = vadd.xlane.f32.xlu1 %v2104_v60 }
0x14a1   :  { %v2099_v63 = vsub.f32 %v2079_v35, %v2095_v59  ;;  %v2107_v45 = vsel %vm683_vm13, %v2101_v61, 0.0  ;;  %v2102_v9 = vmul.f32 %v2098_v56, %v2098_v56 }
0x14a2   :  { %2108 = vadd.xlane.f32.xlu0 %v2107_v45 }
0x14a3   :  { %v2110_v0 = vsel %vm683_vm13, %v2102_v9, 0.0  ;;  %v2103_v1 = vmul.f32 %v2099_v63, %v2099_v63 }
0x14a4   :  { %2111 = vadd.xlane.f32.xlu1 %v2110_v0 }
0x14a5   :  { %v2113_v51 = vsel %vm683_vm13, %v2103_v1, 0.0 }
0x14a6   :  { %2114 = vadd.xlane.f32.xlu0 %v2113_v51 }
0x152d   :  { %v2106_v14 = vpop.xlane.xlu1 %2105 }
0x152e   :  { %v2116_v15 = vmul.f32 0.03125, %v2106_v14 }
0x152f   :  { %v2109_v16 = vpop.xlane.xlu0 %2108 }
0x1530   :  { %v2120_v28 = vadd.f32 1e-05, %v2116_v15  ;;  %v2117_v17 = vmul.f32 0.03125, %v2109_v16 }
0x1531   :  { %v2112_v18 = vpop.xlane.xlu1 %2111 }
0x1532   :  { %4415 = vrsqrt.f32 %v2120_v28  ;;  %v2121_v23 = vadd.f32 1e-05, %v2117_v17  ;;  %v2118_v20 = vmul.f32 0.03125, %v2112_v18 }
0x1533   :  { %v2115_v34 = vpop.xlane.xlu0 %2114 }
0x1534   :  { %4417 = vrsqrt.f32 %v2121_v23  ;;  %v2122_v32 = vadd.f32 1e-05, %v2118_v20  ;;  %v2119_v55 = vmul.f32 0.03125, %v2115_v34 }
0x1536   :  { %4419 = vrsqrt.f32 %v2122_v32  ;;  %v2123_v57 = vadd.f32 1e-05, %v2119_v55 }
0x1538   :  { %4421 = vrsqrt.f32 %v2123_v57 }
0x153c   :  { %v4416_v22 = vpop.eup %4415 }
0x153d   :  { %v2128_v36 = vmul.f32 %v4416_v22, %v2096_v44  ;;  %v3722_v44 = vld [vmem:[%s5596_s10 + $0x1] ss:$0 sm:$0xff]  ;;  %s5627_s10 = smov 8  }
0x153e   :  { %v4418_v21 = vpop.eup %4417 }
0x153f   :  { %v2129_v19 = vmul.f32 %v4418_v21, %v2097_v48  ;;  %v2136_v24 = vmul.f32 %v2135_v50, %v2128_v36 }
0x1540   :  { %v4420_v26 = vpop.eup %4419 }
0x1541   :  { %v2130_v47 = vmul.f32 %v4420_v26, %v2098_v56  ;;  %v2137_v27 = vmul.f32 %v2135_v50, %v2129_v19  ;;  %v5215_v33 = vadd.f32 %v2143_v25, %v2136_v24 }
0x1542   :  { %v4422_v42 = vpop.eup %4421 }
0x1543   :  { %v2138_v30 = vmul.f32 %v2135_v50, %v2130_v47  ;;  %v2131_v31 = vmul.f32 %v4422_v42, %v2099_v63  ;;  %v5217_v35 = vadd.f32 %v2143_v25, %v2137_v27 }
0x1545   :  { %v2139_v37 = vmul.f32 %v2135_v50, %v2131_v31  ;;  %v2155_v39 = vpack.c.bf16 %v5217_v35, %v5215_v33  ;;  %v5222_v41 = vadd.f32 %v2143_v25, %v2138_v30 }
0x1547   :  { %4067 = vmatprep.mubr.msk.bf16.mxu0 %vm683_vm13, %v2155_v39  ;;  %v5224_v8 = vadd.f32 %v2143_v25, %v2139_v37 }
0x1549   :  { %v2156_v38 = vpack.c.bf16 %v5224_v8, %v5222_v41 }
0x154b   :  { %4068 = vmatmul.mubr.msk.bf16.vlgmr.msra.gmra.mrb[40].mxu0 %vm683_vm13, %v2156_v38 }
0x154c   :  { %4073 = vmatprep.mubr.msk.bf16.mxu0 %vm4507_vm14, %v4506_v13 }
0x161e   :  { %v4069_v43 = vpop.f32.mrb[40].mxu0 }
0x161f   :  { %v2207_v29 = vpop.f32.mrb[41].mxu0  ;;  %v2216_v48 = vadd.f32 %v4069_v43, %v3722_v44 }
0x1620   :  { %v4070_v46 = vpop.f32.mrb[42].mxu0  ;;  %v2208_v54 = vadd.f32 %v3722_v44, %v2207_v29 }
0x1621   :  { %v2219_v49 = vadd.f32 %v4070_v46, %v3722_v44  ;;  %v2210_v6 = vpop.f32.mrb[43].mxu0 }
0x1622   :  { %v2211_v56 = vadd.f32 %v3722_v44, %v2210_v6 }
0x1623   :  { %v5234_v59 = vpack.c.bf16 %v2219_v49, %v2216_v48 }
0x1624   :  { %v5236_v60 = vpack.c.bf16 %v2211_v56, %v2208_v54 }
0x1625   :  { %2275 = vrot.lane.b32.xlu0 %v5234_v59, %s4508_s29 }
0x1626   :  { %2225 = vrot.lane.b32.xlu1 %v5236_v60, %s4508_s29  ;;  %s5628_s29 = smov 16  }
0x1697   :  { %v2276_v45 = vpop.permute.xlu0 %2275 }
0x1698   :  { %v2226_v61 = vpop.permute.xlu1 %2225  ;;  %v2281_v9 = vsel %vm206_vm8, %v2276_v45, 0 }
0x1699   :  { %v2231_v63 = vsel %vm206_vm8, %v2226_v61, 0 }
0x169a   :  { %4072 = vmatpush3.bf16.xpose.msra.mxu0 %v2231_v63 }
0x169b   :  { %4077 = vmatprep.subr.bf16.mxu0 %v4506_v13 }
0x16a1   :  { %4074 = vmatmul.mubr.msk.bf16.vlgmr.msra.gmra.mrb[44].mxu0 %vm206_vm8, %v5236_v60 }
0x16a2   :  { %4078 = vmatpush3.bf16.xpose.msra.mxu0 %v2281_v9  ;;  %4079 = vmatprep.mubr.msk.bf16.mxu0 %vm4507_vm14, %v4506_v13 }
0x16a3   :  { %4083 = vmatprep.subr.bf16.mxu0 %v4506_v13 }
0x16a9   :  { %4080 = vmatmul.mubr.msk.bf16.vlgmr.msra.gmra.mrb[48].mxu0 %vm206_vm8, %v5234_v59 }
0x16aa   :  { %4085 = vmatprep.mubr.msk.bf16.mxu0 %vm4507_vm14, %v4506_v13 }
0x1774   :  { %v2267_v0 = vpop.f32.mrb[44].mxu0 }
0x1775   :  { %v2324_v1 = vmul.f32 0.35355338, %v2267_v0  ;;  %v4075_v51 = vpop.f32.mrb[45].mxu0 }
0x1776   :  { %v2270_v2 = vpop.f32.mrb[46].mxu0 }
0x1777   :  { %v2325_v4 = vmul.f32 0.35355338, %v2270_v2  ;;  %v4076_v62 = vpop.f32.mrb[47].mxu0  ;;  %v2328_v7 = vsel %vm357_vm11, %v2324_v1, -inf }
0x1778   :  { %2329 = vmax.xlane.f32.xlu1 %v2328_v7 }
0x1779   :  { %v2331_v11 = vsel %vm357_vm11, %v2325_v4, -inf }
0x177a   :  { %2332 = vmax.xlane.f32.xlu0 %v2331_v11 }
0x177c   :  { %v2317_v12 = vpop.f32.mrb[48].mxu0 }
0x177d   :  { %v2326_v14 = vmul.f32 0.35355338, %v2317_v12  ;;  %v4081_v15 = vpop.f32.mrb[49].mxu0 }
0x177e   :  { %v2320_v16 = vpop.f32.mrb[50].mxu0 }
0x177f   :  { %v2327_v28 = vmul.f32 0.35355338, %v2320_v16  ;;  %v4082_v17 = vpop.f32.mrb[51].mxu0  ;;  %v2334_v18 = vsel %vm357_vm11, %v2326_v14, -inf }
0x1780   :  { %2335 = vmax.xlane.f32.xlu1 %v2334_v18 }
0x1781   :  { %v2337_v23 = vsel %vm357_vm11, %v2327_v28, -inf }
0x1782   :  { %2338 = vmax.xlane.f32.xlu0 %v2337_v23 }
0x1791   :  { %2374 = vrot.lane.b32.xlu1 %v5236_v60, %s4509_s5 }
0x1805   :  { %v2330_v20 = vpop.xlane.xlu1 %2329 }
0x1806   :  { %v2340_v34 = vsub.f32 %v2324_v1, %v2330_v20 }
0x1807   :  { %v2333_v32 = vpop.xlane.xlu0 %2332 }
0x1808   :  { %v2344_v55 = vmul.f32 1.442695, %v2340_v34  ;;  %v2341_v57 = vsub.f32 %v2325_v4, %v2333_v32 }
0x180a   :  { %4423 = vpow2.f32 %v2344_v55  ;;  %v2346_v50 = vmul.f32 1.442695, %v2341_v57 }
0x180c   :  { %4425 = vpow2.f32 %v2346_v50 }
0x180d   :  { %v2336_v22 = vpop.xlane.xlu1 %2335 }
0x180e   :  { %v2342_v36 = vsub.f32 %v2326_v14, %v2336_v22 }
0x180f   :  { %v2339_v21 = vpop.xlane.xlu0 %2338 }
0x1810   :  { %v2348_v19 = vmul.f32 1.442695, %v2342_v36  ;;  %v2343_v24 = vsub.f32 %v2327_v28, %v2339_v21 }
0x1811   :  { %v2375_v25 = vpop.permute.xlu1 %2374 }
0x1812   :  { %4427 = vpow2.f32 %v2348_v19  ;;  %v2350_v26 = vmul.f32 1.442695, %v2343_v24  ;;  %4084 = vmatpush3.bf16.msra.mxu0 %v2375_v25 }
0x1813   :  { %4095 = vmatprep.subr.bf16.mxu0 %v4506_v13 }
0x1814   :  { %v4424_v47 = vpop.eup %4423  ;;  %4429 = vpow2.f32 %v2350_v26 }
0x1815   :  { %v2352_v27 = vsel %vm357_vm11, %v4424_v47, 0.0 }
0x1816   :  { %v4426_v42 = vpop.eup %4425  ;;  %2353 = vadd.xlane.f32.xlu1 %v2352_v27 }
0x1817   :  { %v2355_v30 = vsel %vm357_vm11, %v4426_v42, 0.0 }
0x1818   :  { %2356 = vadd.xlane.f32.xlu0 %v2355_v30 }
0x181c   :  { %v4428_v31 = vpop.eup %4427 }
0x181d   :  { %v2358_v37 = vsel %vm357_vm11, %v4428_v31, 0.0 }
0x181e   :  { %v4430_v39 = vpop.eup %4429  ;;  %2359 = vadd.xlane.f32.xlu1 %v2358_v37 }
0x181f   :  { %v2361_v38 = vsel %vm357_vm11, %v4430_v39, 0.0 }
0x1820   :  { %2362 = vadd.xlane.f32.xlu0 %v2361_v38 }
0x182f   :  { %2470 = vrot.lane.b32.xlu1 %v5236_v60, %s4510_s30 }
0x1833   :  { %2521 = vrot.lane.b32.xlu1 %v5234_v59, %s4510_s30 }
0x1836   :  { %2421 = vrot.lane.b32.xlu0 %v5234_v59, %s4509_s5 }
0x1837   :  { %2519 = vrot.lane.b32.xlu1 %v5234_v59, %s4511_s0 }
0x183a   :  { %2468 = vrot.lane.b32.xlu0 %v5236_v60, %s4511_s0 }
0x18a3   :  { %v2354_v43 = vpop.xlane.xlu1 %2353 }
0x18a4   :  { %4431 = vrcp.f32 %v2354_v43 }
0x18a5   :  { %v2357_v44 = vpop.xlane.xlu0 %2356 }
0x18a6   :  { %4433 = vrcp.f32 %v2357_v44 }
0x18ab   :  { %v2360_v29 = vpop.xlane.xlu1 %2359 }
0x18ac   :  { %4435 = vrcp.f32 %v2360_v29 }
0x18ad   :  { %v2363_v46 = vpop.xlane.xlu0 %2362 }
0x18ae   :  { %v4432_v48 = vpop.eup %4431  ;;  %4437 = vrcp.f32 %v2363_v46 }
0x18af   :  { %v2368_v6 = vmul.f32 %v4432_v48, %v4424_v47  ;;  %v2471_v61 = vpop.permute.xlu1 %2470 }
0x18b0   :  { %v4434_v49 = vpop.eup %4433  ;;  %v2476_v45 = vsel %vm206_vm8, %v2471_v61, 0 }
0x18b1   :  { %v2369_v54 = vmul.f32 %v4434_v49, %v4426_v42  ;;  %v2422_v56 = vpop.permute.xlu0 %2421 }
0x18b2   :  { %4090 = vmatpush3.bf16.msra.mxu1 %v2422_v56 }
0x18b3   :  { %v2372_v63 = vpack.c.bf16 %v2369_v54, %v2368_v6  ;;  %4101 = vmatprep.subr.bf16.mxu1 %v4506_v13  ;;  %v2522_v2 = vpop.permute.xlu1 %2521 }
0x18b4   :  { %v2527_v7 = vsel %vm206_vm8, %v2522_v2, 0 }
0x18b5   :  { %4086 = vmatmul.mubr.msk.bf16.vlgmr.msra.gmra.mrb[52].mxu0 %vm357_vm11, %v2372_v63  ;;  %v2469_v62 = vpop.permute.xlu0 %2468 }
0x18b6   :  { %v4436_v9 = vpop.eup %4435  ;;  %4096 = vmatpush3.bf16.xpose.msra.mxu0 %v2476_v45  ;;  %4097 = vmatprep.mubr.msk.bf16.mxu0 %vm4507_vm14, %v4506_v13 }
0x18b7   :  { %4107 = vmatprep.subr.bf16.mxu0 %v4506_v13  ;;  %v2370_v1 = vmul.f32 %v4436_v9, %v4428_v31  ;;  %v2520_v11 = vpop.permute.xlu1 %2519 }
0x18b8   :  { %v4438_v0 = vpop.eup %4437 }
0x18b9   :  { %v2371_v51 = vmul.f32 %v4438_v0, %v4430_v39 }
0x18bb   :  { %v2373_v4 = vpack.c.bf16 %v2371_v51, %v2370_v1 }
0x18bd   :  { %4092 = vmatmul.mubr.msk.bf16.vlgmr.msra.gmra.mrb[56].mxu1 %vm357_vm11, %v2373_v4  ;;  %4098 = vmatmul.mubr.msk.bf16.vlgmr.msra.gmra.mrb[56].mxu0 %vm206_vm8, %v2469_v62 }
0x18be   :  { %4102 = vmatpush3.bf16.xpose.msra.mxu1 %v2527_v7  ;;  %4103 = vmatprep.mubr.msk.bf16.mxu1 %vm4507_vm14, %v4506_v13 }
0x18bf   :  { %4113 = vmatprep.subr.bf16.mxu1 %v4506_v13  ;;  %4109 = vmatprep.mubr.msk.bf16.mxu0 %vm4507_vm14, %v4506_v13 }
0x18c5   :  { %4104 = vmatmul.mubr.msk.bf16.vlgmr.msra.gmra.mrb[60].mxu1 %vm206_vm8, %v2520_v11 }
0x18c6   :  { %4115 = vmatprep.mubr.msk.bf16.mxu1 %vm4507_vm14, %v4506_v13 }
0x1988   :  { %v5292_v12 = vpop.f32.mrb[52].mxu0 }
0x1989   :  { %v4087_v14 = vpop.f32.mrb[53].mxu0 }
0x198a   :  { %v5294_v15 = vpop.f32.mrb[54].mxu0 }
0x198b   :  { %v4088_v16 = vpop.f32.mrb[55].mxu0 }
0x1990   :  { %v5296_v28 = vpop.f32.mrb[56].mxu1  ;;  %v2512_v17 = vpop.f32.mrb[56].mxu0 }
0x1991   :  { %v2570_v18 = vmul.f32 0.35355338, %v2512_v17  ;;  %v4093_v23 = vpop.f32.mrb[57].mxu1  ;;  %v4099_v20 = vpop.f32.mrb[57].mxu0 }
0x1992   :  { %v5298_v34 = vpop.f32.mrb[58].mxu1  ;;  %v2515_v32 = vpop.f32.mrb[58].mxu0 }
0x1993   :  { %v2571_v55 = vmul.f32 0.35355338, %v2515_v32  ;;  %v4094_v57 = vpop.f32.mrb[59].mxu1  ;;  %v4100_v50 = vpop.f32.mrb[59].mxu0  ;;  %v2574_v22 = vsel %vm357_vm11, %v2570_v18, -inf }
0x1994   :  { %2575 = vmax.xlane.f32.xlu0 %v2574_v22 }
0x1995   :  { %v2577_v36 = vsel %vm357_vm11, %v2571_v55, -inf }
0x1996   :  { %2578 = vmax.xlane.f32.xlu1 %v2577_v36 }
0x1998   :  { %v2563_v21 = vpop.f32.mrb[60].mxu1 }
0x1999   :  { %v2572_v19 = vmul.f32 0.35355338, %v2563_v21  ;;  %v4105_v24 = vpop.f32.mrb[61].mxu1 }
0x199a   :  { %v2566_v25 = vpop.f32.mrb[62].mxu1 }
0x199b   :  { %v2573_v26 = vmul.f32 0.35355338, %v2566_v25  ;;  %v4106_v47 = vpop.f32.mrb[63].mxu1  ;;  %v2580_v27 = vsel %vm357_vm11, %v2572_v19, -inf }
0x199c   :  { %2581 = vmax.xlane.f32.xlu0 %v2580_v27 }
0x199d   :  { %v2583_v42 = vsel %vm357_vm11, %v2573_v26, -inf }
0x19a0   :  { %2584 = vmax.xlane.f32.xlu0 %v2583_v42 }
0x19a7   :  { %2620 = vrot.lane.b32.xlu1 %v5236_v60, %s4512_s19 }
0x1a21   :  { %v2576_v30 = vpop.xlane.xlu0 %2575 }
0x1a22   :  { %v2586_v31 = vsub.f32 %v2570_v18, %v2576_v30 }
0x1a23   :  { %v2579_v37 = vpop.xlane.xlu1 %2578 }
0x1a24   :  { %v2590_v39 = vmul.f32 1.442695, %v2586_v31  ;;  %v2587_v38 = vsub.f32 %v2571_v55, %v2579_v37 }
0x1a26   :  { %4439 = vpow2.f32 %v2590_v39  ;;  %v2592_v43 = vmul.f32 1.442695, %v2587_v38 }
0x1a27   :  { %v2621_v44 = vpop.permute.xlu1 %2620 }
0x1a28   :  { %4441 = vpow2.f32 %v2592_v43  ;;  %4108 = vmatpush3.bf16.msra.mxu0 %v2621_v44 }
0x1a29   :  { %v2582_v29 = vpop.xlane.xlu0 %2581  ;;  %4119 = vmatprep.subr.bf16.mxu0 %v4506_v13 }
0x1a2a   :  { %v2588_v46 = vsub.f32 %v2572_v19, %v2582_v29 }
0x1a2c   :  { %v2594_v48 = vmul.f32 1.442695, %v2588_v46 }
0x1a2d   :  { %v2585_v49 = vpop.xlane.xlu0 %2584 }
0x1a2e   :  { %4443 = vpow2.f32 %v2594_v48  ;;  %v2589_v6 = vsub.f32 %v2573_v26, %v2585_v49 }
0x1a30   :  { %v4440_v54 = vpop.eup %4439  ;;  %v2596_v56 = vmul.f32 1.442695, %v2589_v6 }
0x1a31   :  { %v2598_v61 = vsel %vm357_vm11, %v4440_v54, 0.0 }
0x1a32   :  { %v4442_v63 = vpop.eup %4441  ;;  %4445 = vpow2.f32 %v2596_v56  ;;  %2599 = vadd.xlane.f32.xlu1 %v2598_v61 }
0x1a33   :  { %v2601_v45 = vsel %vm357_vm11, %v4442_v63, 0.0 }
0x1a34   :  { %2602 = vadd.xlane.f32.xlu0 %v2601_v45 }
0x1a38   :  { %v4444_v9 = vpop.eup %4443 }
0x1a39   :  { %v2604_v0 = vsel %vm357_vm11, %v4444_v9, 0.0 }
0x1a3a   :  { %2605 = vadd.xlane.f32.xlu1 %v2604_v0 }
0x1a3c   :  { %v4446_v1 = vpop.eup %4445 }
0x1a3d   :  { %v2607_v51 = vsel %vm357_vm11, %v4446_v1, 0.0 }
0x1a3e   :  { %2608 = vadd.xlane.f32.xlu0 %v2607_v51 }
0x1a4b   :  { %2716 = vrot.lane.b32.xlu1 %v5236_v60, %s4513_s1 }
0x1a4f   :  { %2767 = vrot.lane.b32.xlu1 %v5234_v59, %s4513_s1 }
0x1a53   :  { %2765 = vrot.lane.b32.xlu1 %v5234_v59, %s4514_s20 }
0x1a54   :  { %2667 = vrot.lane.b32.xlu0 %v5234_v59, %s4512_s19 }
0x1a58   :  { %2714 = vrot.lane.b32.xlu0 %v5236_v60, %s4514_s20 }
0x1abf   :  { %v2600_v2 = vpop.xlane.xlu1 %2599 }
0x1ac0   :  { %4447 = vrcp.f32 %v2600_v2 }
0x1ac1   :  { %v2603_v4 = vpop.xlane.xlu0 %2602 }
0x1ac2   :  { %4449 = vrcp.f32 %v2603_v4 }
0x1ac7   :  { %v2606_v62 = vpop.xlane.xlu1 %2605 }
0x1ac8   :  { %4451 = vrcp.f32 %v2606_v62 }
0x1aca   :  { %v4448_v7 = vpop.eup %4447 }
0x1acb   :  { %v2609_v11 = vpop.xlane.xlu0 %2608  ;;  %v2614_v16 = vmul.f32 %v4448_v7, %v4440_v54  ;;  %v2717_v18 = vpop.permute.xlu1 %2716 }
0x1acc   :  { %v4450_v14 = vpop.eup %4449  ;;  %4453 = vrcp.f32 %v2609_v11  ;;  %v2722_v32 = vsel %vm206_vm8, %v2717_v18, 0 }
0x1acd   :  { %v2615_v17 = vmul.f32 %v4450_v14, %v4442_v63 }
0x1acf   :  { %v2668_v23 = vpop.permute.xlu0 %2667  ;;  %v2618_v20 = vpack.c.bf16 %v2615_v17, %v2614_v16  ;;  %v2768_v36 = vpop.permute.xlu1 %2767 }
0x1ad0   :  { %4114 = vmatpush3.bf16.msra.mxu1 %v2668_v23  ;;  %v2773_v24 = vsel %vm206_vm8, %v2768_v36, 0 }
0x1ad1   :  { %4110 = vmatmul.mubr.msk.bf16.vlgmr.msra.gmra.mrb[60].mxu0 %vm357_vm11, %v2618_v20  ;;  %4125 = vmatprep.subr.bf16.mxu1 %v4506_v13 }
0x1ad2   :  { %4120 = vmatpush3.bf16.xpose.msra.mxu0 %v2722_v32  ;;  %4121 = vmatprep.mubr.msk.bf16.mxu0 %vm4507_vm14, %v4506_v13  ;;  %v4452_v55 = vpop.eup %4451 }
0x1ad3   :  { %4131 = vmatprep.subr.bf16.mxu0 %v4506_v13  ;;  %v2616_v50 = vmul.f32 %v4452_v55, %v4444_v9  ;;  %v2715_v21 = vpop.permute.xlu0 %2714  ;;  %v2766_v25 = vpop.permute.xlu1 %2765 }
0x1ad6   :  { %v4454_v57 = vpop.eup %4453 }
0x1ad7   :  { %v2617_v22 = vmul.f32 %v4454_v57, %v4446_v1 }
0x1ad9   :  { %4122 = vmatmul.mubr.msk.bf16.vlgmr.msra.gmra.mrb[64].mxu0 %vm206_vm8, %v2715_v21  ;;  %v2619_v19 = vpack.c.bf16 %v2617_v22, %v2616_v50 }
0x1ada   :  { %4133 = vmatprep.mubr.msk.bf16.mxu0 %vm4507_vm14, %v4506_v13 }
0x1adb   :  { %4116 = vmatmul.mubr.msk.bf16.vlgmr.msra.gmra.mrb[64].mxu1 %vm357_vm11, %v2619_v19 }
0x1adc   :  { %4126 = vmatpush3.bf16.xpose.msra.mxu1 %v2773_v24  ;;  %4127 = vmatprep.mubr.msk.bf16.mxu1 %vm4507_vm14, %v4506_v13 }
0x1add   :  { %4137 = vmatprep.subr.bf16.mxu1 %v4506_v13 }
0x1ae3   :  { %4128 = vmatmul.mubr.msk.bf16.vlgmr.msra.gmra.mrb[68].mxu1 %vm206_vm8, %v2766_v25 }
0x1ae4   :  { %4139 = vmatprep.mubr.msk.bf16.mxu1 %vm4507_vm14, %v4506_v13 }
0x1ba4   :  { %v5338_v26 = vpop.f32.mrb[60].mxu0 }
0x1ba5   :  { %v4111_v47 = vpop.f32.mrb[61].mxu0 }
0x1ba6   :  { %v5340_v27 = vpop.f32.mrb[62].mxu0 }
0x1ba7   :  { %v4313_v42 = vpack.i.bf16 %v5340_v27, %v5338_v26  ;;  %v4112_v30 = vpop.f32.mrb[63].mxu0 }
0x1bac   :  { %v2758_v31 = vpop.f32.mrb[64].mxu0 }
0x1bad   :  { %v2816_v37 = vmul.f32 0.35355338, %v2758_v31  ;;  %v4123_v39 = vpop.f32.mrb[65].mxu0 }
0x1bae   :  { %v5344_v38 = vpop.f32.mrb[64].mxu1  ;;  %v2761_v43 = vpop.f32.mrb[66].mxu0 }
0x1baf   :  { %v2817_v44 = vmul.f32 0.35355338, %v2761_v43  ;;  %v4117_v29 = vpop.f32.mrb[65].mxu1  ;;  %v4124_v46 = vpop.f32.mrb[67].mxu0  ;;  %v2820_v48 = vsel %vm357_vm11, %v2816_v37, -inf }
0x1bb0   :  { %v5347_v49 = vpop.f32.mrb[66].mxu1  ;;  %2821 = vmax.xlane.f32.xlu0 %v2820_v48 }
0x1bb1   :  { %v4318_v6 = vpack.i.bf16 %v5347_v49, %v5344_v38  ;;  %v4118_v54 = vpop.f32.mrb[67].mxu1  ;;  %v2823_v56 = vsel %vm357_vm11, %v2817_v44, -inf }
0x1bb2   :  { %2824 = vmax.xlane.f32.xlu1 %v2823_v56 }
0x1bb6   :  { %v2809_v61 = vpop.f32.mrb[68].mxu1 }
0x1bb7   :  { %v2818_v63 = vmul.f32 0.35355338, %v2809_v61  ;;  %v4129_v45 = vpop.f32.mrb[69].mxu1 }
0x1bb8   :  { %v2812_v9 = vpop.f32.mrb[70].mxu1 }
0x1bb9   :  { %v2819_v0 = vmul.f32 0.35355338, %v2812_v9  ;;  %v4130_v1 = vpop.f32.mrb[71].mxu1  ;;  %v2826_v51 = vsel %vm357_vm11, %v2818_v63, -inf }
0x1bba   :  { %2827 = vmax.xlane.f32.xlu0 %v2826_v51 }
0x1bbb   :  { %v2829_v2 = vsel %vm357_vm11, %v2819_v0, -inf }
0x1bbe   :  { %2830 = vmax.xlane.f32.xlu0 %v2829_v2 }
0x1bc3   :  { %2866 = vrot.lane.b32.xlu1 %v5236_v60, %s4515_s6 }
0x1c3d   :  { %v2822_v4 = vpop.xlane.xlu0 %2821 }
0x1c3e   :  { %v2832_v62 = vsub.f32 %v2816_v37, %v2822_v4 }
0x1c3f   :  { %v2825_v7 = vpop.xlane.xlu1 %2824 }
0x1c40   :  { %v2836_v11 = vmul.f32 1.442695, %v2832_v62  ;;  %v2833_v14 = vsub.f32 %v2817_v44, %v2825_v7 }
0x1c42   :  { %4455 = vpow2.f32 %v2836_v11  ;;  %v2838_v16 = vmul.f32 1.442695, %v2833_v14 }
0x1c43   :  { %v2867_v17 = vpop.permute.xlu1 %2866 }
0x1c44   :  { %4457 = vpow2.f32 %v2838_v16  ;;  %4132 = vmatpush3.bf16.msra.mxu0 %v2867_v17 }
0x1c45   :  { %4143 = vmatprep.subr.bf16.mxu0 %v4506_v13 }
0x1c47   :  { %v2828_v18 = vpop.xlane.xlu0 %2827 }
0x1c48   :  { %v2834_v23 = vsub.f32 %v2818_v63, %v2828_v18 }
0x1c4a   :  { %v2840_v20 = vmul.f32 1.442695, %v2834_v23 }
0x1c4b   :  { %v2831_v32 = vpop.xlane.xlu0 %2830 }
0x1c4c   :  { %v4456_v55 = vpop.eup %4455  ;;  %4459 = vpow2.f32 %v2840_v20  ;;  %v2835_v57 = vsub.f32 %v2819_v0, %v2831_v32 }
0x1c4d   :  { %v2844_v50 = vsel %vm357_vm11, %v4456_v55, 0.0 }
0x1c4e   :  { %v4458_v22 = vpop.eup %4457  ;;  %v2842_v36 = vmul.f32 1.442695, %v2835_v57  ;;  %2845 = vadd.xlane.f32.xlu1 %v2844_v50 }
0x1c4f   :  { %v2847_v21 = vsel %vm357_vm11, %v4458_v22, 0.0 }
0x1c50   :  { %4461 = vpow2.f32 %v2842_v36  ;;  %2848 = vadd.xlane.f32.xlu0 %v2847_v21 }
0x1c56   :  { %v4460_v19 = vpop.eup %4459 }
0x1c57   :  { %v2850_v24 = vsel %vm357_vm11, %v4460_v19, 0.0 }
0x1c58   :  { %2851 = vadd.xlane.f32.xlu1 %v2850_v24 }
0x1c5a   :  { %v4462_v25 = vpop.eup %4461 }
0x1c5b   :  { %v2853_v47 = vsel %vm357_vm11, %v4462_v25, 0.0 }
0x1c5c   :  { %2854 = vadd.xlane.f32.xlu0 %v2853_v47 }
0x1c69   :  { %2962 = vrot.lane.b32.xlu1 %v5236_v60, %s4516_s7 }
0x1c6d   :  { %3013 = vrot.lane.b32.xlu1 %v5234_v59, %s4516_s7 }
0x1c71   :  { %3011 = vrot.lane.b32.xlu1 %v5234_v59, %s4517_s21 }
0x1c72   :  { %2913 = vrot.lane.b32.xlu0 %v5234_v59, %s4515_s6 }
0x1c76   :  { %2960 = vrot.lane.b32.xlu0 %v5236_v60, %s4517_s21  ;;  %s5629_s21 = smov 24  }
0x1cdb   :  { %v2846_v30 = vpop.xlane.xlu1 %2845 }
0x1cdc   :  { %4463 = vrcp.f32 %v2846_v30 }
0x1cdd   :  { %v2849_v31 = vpop.xlane.xlu0 %2848 }
0x1cde   :  { %4465 = vrcp.f32 %v2849_v31 }
0x1ce5   :  { %v2852_v37 = vpop.xlane.xlu1 %2851 }
0x1ce6   :  { %v4464_v39 = vpop.eup %4463  ;;  %4467 = vrcp.f32 %v2852_v37 }
0x1ce7   :  { %v2860_v44 = vmul.f32 %v4464_v39, %v4456_v55 }
0x1ce8   :  { %v4466_v43 = vpop.eup %4465 }
0x1ce9   :  { %v2861_v29 = vmul.f32 %v4466_v43, %v4458_v22  ;;  %v2855_v46 = vpop.xlane.xlu0 %2854  ;;  %v2963_v48 = vpop.permute.xlu1 %2962 }
0x1cea   :  { %4469 = vrcp.f32 %v2855_v46  ;;  %v2968_v56 = vsel %vm206_vm8, %v2963_v48, 0 }
0x1ceb   :  { %v2864_v54 = vpack.c.bf16 %v2861_v29, %v2860_v44 }
0x1ced   :  { %v2914_v61 = vpop.permute.xlu0 %2913  ;;  %4134 = vmatmul.mubr.msk.bf16.vlgmr.msra.gmra.mrb[68].mxu0 %vm357_vm11, %v2864_v54  ;;  %v3014_v51 = vpop.permute.xlu1 %3013 }
0x1cee   :  { %4144 = vmatpush3.bf16.xpose.msra.mxu0 %v2968_v56  ;;  %4138 = vmatpush3.bf16.msra.mxu1 %v2914_v61  ;;  %v3019_v4 = vsel %vm206_vm8, %v3014_v51, 0 }
0x1cef   :  { %4145 = vmatprep.mubr.msk.bf16.mxu0 %vm4507_vm14, %v4506_v13  ;;  %4149 = vmatprep.subr.bf16.mxu1 %v4506_v13 }
0x1cf0   :  { %4155 = vmatprep.subr.bf16.mxu0 %v4506_v13  ;;  %v4468_v63 = vpop.eup %4467 }
0x1cf1   :  { %v2961_v9 = vpop.permute.xlu0 %2960  ;;  %v2862_v0 = vmul.f32 %v4468_v63, %v4460_v19  ;;  %v3012_v62 = vpop.permute.xlu1 %3011 }
0x1cf4   :  { %v4470_v45 = vpop.eup %4469 }
0x1cf5   :  { %v2863_v1 = vmul.f32 %v4470_v45, %v4462_v25  ;;  %4146 = vmatmul.mubr.msk.bf16.vlgmr.msra.gmra.mrb[72].mxu0 %vm206_vm8, %v2961_v9 }
0x1cf6   :  { %4157 = vmatprep.mubr.msk.bf16.mxu0 %vm4507_vm14, %v4506_v13 }
0x1cf7   :  { %v2865_v2 = vpack.c.bf16 %v2863_v1, %v2862_v0 }
0x1cf9   :  { %4140 = vmatmul.mubr.msk.bf16.vlgmr.msra.gmra.mrb[72].mxu1 %vm357_vm11, %v2865_v2 }
0x1cfa   :  { %4150 = vmatpush3.bf16.xpose.msra.mxu1 %v3019_v4  ;;  %4151 = vmatprep.mubr.msk.bf16.mxu1 %vm4507_vm14, %v4506_v13 }
0x1cfb   :  { %4161 = vmatprep.subr.bf16.mxu1 %v4506_v13 }
0x1d01   :  { %4152 = vmatmul.mubr.msk.bf16.vlgmr.msra.gmra.mrb[76].mxu1 %vm206_vm8, %v3012_v62 }
0x1d02   :  { %4163 = vmatprep.mubr.msk.bf16.mxu1 %vm4507_vm14, %v4506_v13 }
0x1dc0   :  { %v5388_v7 = vpop.f32.mrb[68].mxu0 }
0x1dc1   :  { %v4135_v11 = vpop.f32.mrb[69].mxu0 }
0x1dc2   :  { %v2909_v14 = vpop.f32.mrb[70].mxu0 }
0x1dc3   :  { %v4323_v16 = vpack.i.bf16 %v2909_v14, %v5388_v7  ;;  %v4136_v17 = vpop.f32.mrb[71].mxu0 }
0x1dc8   :  { %v3004_v18 = vpop.f32.mrb[72].mxu0 }
0x1dc9   :  { %v3062_v23 = vmul.f32 0.35355338, %v3004_v18  ;;  %v4147_v20 = vpop.f32.mrb[73].mxu0 }
0x1dca   :  { %v3007_v32 = vpop.f32.mrb[74].mxu0 }
0x1dcb   :  { %v3063_v55 = vmul.f32 0.35355338, %v3007_v32  ;;  %v4148_v57 = vpop.f32.mrb[75].mxu0  ;;  %v3066_v50 = vsel %vm357_vm11, %v3062_v23, -inf }
0x1dcc   :  { %v2953_v22 = vpop.f32.mrb[72].mxu1  ;;  %3067 = vmax.xlane.f32.xlu0 %v3066_v50 }
0x1dcd   :  { %v4141_v36 = vpop.f32.mrb[73].mxu1  ;;  %v3069_v13 = vsel %vm357_vm11, %v3063_v55, -inf }
0x1dce   :  { %v2956_v21 = vpop.f32.mrb[74].mxu1  ;;  %3070 = vmax.xlane.f32.xlu1 %v3069_v13  ;;  %v3741_v36 = vld [vmem:[%s5597_s11 + $0x20] sm:$0xff]  ;;  %v3742_v13 = vld [vmem:[%s5597_s11 + $0x28] sm:$0xff] }
0x1dcf   :  { %v4328_v19 = vpack.i.bf16 %v2956_v21, %v2953_v22  ;;  %v4142_v24 = vpop.f32.mrb[75].mxu1  ;;  %v3273_v21 = vpack.c.bf16 %v3742_v13, %v3741_v36 }
0x1dd4   :  { %v3055_v25 = vpop.f32.mrb[76].mxu1 }
0x1dd5   :  { %v3064_v47 = vmul.f32 0.35355338, %v3055_v25  ;;  %v4153_v30 = vpop.f32.mrb[77].mxu1 }
0x1dd6   :  { %v3058_v31 = vpop.f32.mrb[78].mxu1 }
0x1dd7   :  { %v3065_v37 = vmul.f32 0.35355338, %v3058_v31  ;;  %v4154_v39 = vpop.f32.mrb[79].mxu1  ;;  %v3072_v43 = vsel %vm357_vm11, %v3064_v47, -inf  ;;  %v3743_v31 = vld [vmem:[%s5597_s11 + $0x30] sm:$0xff] }
0x1dd8   :  { %3073 = vmax.xlane.f32.xlu0 %v3072_v43 }
0x1dd9   :  { %v3075_v44 = vsel %vm357_vm11, %v3065_v37, -inf }
0x1ddc   :  { %3076 = vmax.xlane.f32.xlu0 %v3075_v44 }
0x1e59   :  { %v3068_v29 = vpop.xlane.xlu0 %3067 }
0x1e5a   :  { %v3078_v46 = vsub.f32 %v3062_v23, %v3068_v29 }
0x1e5b   :  { %v3071_v48 = vpop.xlane.xlu1 %3070 }
0x1e5c   :  { %v3082_v54 = vmul.f32 1.442695, %v3078_v46  ;;  %v3079_v56 = vsub.f32 %v3063_v55, %v3071_v48 }
0x1e5e   :  { %4471 = vpow2.f32 %v3082_v54  ;;  %v3084_v61 = vmul.f32 1.442695, %v3079_v56 }
0x1e60   :  { %4473 = vpow2.f32 %v3084_v61 }
0x1e65   :  { %v3074_v63 = vpop.xlane.xlu0 %3073 }
0x1e66   :  { %v3080_v45 = vsub.f32 %v3064_v47, %v3074_v63 }
0x1e68   :  { %v4472_v9 = vpop.eup %4471  ;;  %v3086_v0 = vmul.f32 1.442695, %v3080_v45 }
0x1e69   :  { %v3077_v1 = vpop.xlane.xlu0 %3076  ;;  %v3090_v51 = vsel %vm357_vm11, %v4472_v9, 0.0 }
0x1e6a   :  { %v4474_v2 = vpop.eup %4473  ;;  %4475 = vpow2.f32 %v3086_v0  ;;  %v3081_v4 = vsub.f32 %v3065_v37, %v3077_v1  ;;  %3091 = vadd.xlane.f32.xlu1 %v3090_v51  ;;  %v3744_v37 = vld [vmem:[%s5597_s11 + $0x38] sm:$0xff] }
0x1e6b   :  { %v3093_v62 = vsel %vm357_vm11, %v4474_v2, 0.0  ;;  %v3274_v39 = vpack.c.bf16 %v3744_v37, %v3743_v31 }
0x1e6c   :  { %v3088_v7 = vmul.f32 1.442695, %v3081_v4  ;;  %3094 = vadd.xlane.f32.xlu0 %v3093_v62 }
0x1e6e   :  { %4477 = vpow2.f32 %v3088_v7 }
0x1e74   :  { %v4476_v11 = vpop.eup %4475 }
0x1e75   :  { %v3096_v14 = vsel %vm357_vm11, %v4476_v11, 0.0 }
0x1e76   :  { %3097 = vadd.xlane.f32.xlu1 %v3096_v14 }
0x1e78   :  { %v4478_v17 = vpop.eup %4477 }
0x1e79   :  { %v3099_v18 = vsel %vm357_vm11, %v4478_v17, 0.0 }
0x1e7a   :  { %3100 = vadd.xlane.f32.xlu0 %v3099_v18 }
0x1e87   :  { %3112 = vrot.lane.b32.xlu1 %v5236_v60, %s4518_s22 }
0x1e8b   :  { %4314 = vrot.lane.b32.xlu1 %v4313_v42, %s5627_s10 }
0x1e8f   :  { %4319 = vrot.lane.b32.xlu1 %v4318_v6, %s5627_s10 }
0x1e90   :  { %3159 = vrot.lane.b32.xlu0 %v5234_v59, %s4518_s22 }
0x1e93   :  { %4329 = vrot.lane.b32.xlu1 %v4328_v19, %s5628_s29 }
0x1e94   :  { %4324 = vrot.lane.b32.xlu0 %v4323_v16, %s5628_s29 }
0x1ef7   :  { %v3092_v23 = vpop.xlane.xlu1 %3091 }
0x1ef8   :  { %4479 = vrcp.f32 %v3092_v23 }
0x1ef9   :  { %v3095_v60 = vpop.xlane.xlu0 %3094 }
0x1efa   :  { %4481 = vrcp.f32 %v3095_v60 }
0x1f02   :  { %v4480_v20 = vpop.eup %4479 }
0x1f03   :  { %v3098_v32 = vpop.xlane.xlu1 %3097  ;;  %v3106_v42 = vmul.f32 %v4480_v20, %v4472_v9 }
0x1f04   :  { %v4482_v26 = vpop.eup %4481  ;;  %4483 = vrcp.f32 %v3098_v32 }
0x1f05   :  { %v3107_v27 = vmul.f32 %v4482_v26, %v4474_v2 }
0x1f07   :  { %v3101_v55 = vpop.xlane.xlu0 %3100  ;;  %v3113_v38 = vpop.permute.xlu1 %3112  ;;  %v3110_v49 = vpack.c.bf16 %v3107_v27, %v3106_v42 }
0x1f08   :  { %4485 = vrcp.f32 %v3101_v55  ;;  %4156 = vmatpush3.bf16.msra.mxu0 %v3113_v38 }
0x1f09   :  { %4167 = vmatprep.subr.bf16.mxu0 %v3273_v21 }
0x1f0b   :  { %v3160_v59 = vpop.permute.xlu0 %3159  ;;  %4158 = vmatmul.mubr.msk.bf16.vlgmr.msra.gmra.mrb[76].mxu0 %vm357_vm11, %v3110_v49  ;;  %v4315_v54 = vpop.permute.xlu1 %4314 }
0x1f0c   :  { %4162 = vmatpush3.bf16.msra.mxu1 %v3160_v59  ;;  %4168 = vmatpush3.bf16.msra.mxu0 %v3273_v21  ;;  %v4317_v61 = vunpack.i.h.bf16 %v4315_v54  ;;  %v4316_v63 = vunpack.i.l.bf16 %v4315_v54 }
0x1f0d   :  { %4169 = vmatprep.subr.bf16.mxu0 %v3274_v39 }
0x1f0e   :  { %v4484_v6 = vpop.eup %4483  ;;  %v3255_v1 = vsel %vm206_vm8, %v5294_v15, %v4317_v61  ;;  %v3254_v51 = vsel %vm206_vm8, %v5292_v12, %v4316_v63 }
0x1f0f   :  { %v3108_v57 = vmul.f32 %v4484_v6, %v4476_v11  ;;  %v4325_v56 = vpop.permute.xlu0 %4324  ;;  %v4320_v2 = vpop.permute.xlu1 %4319 }
0x1f10   :  { %4170 = vmatpush3.bf16.msra.mxu0 %v3274_v39  ;;  %v4327_v45 = vunpack.i.h.bf16 %v4325_v56  ;;  %v4326_v9 = vunpack.i.l.bf16 %v4325_v56  ;;  %v4322_v60 = vunpack.i.h.bf16 %v4320_v2  ;;  %v4321_v15 = vunpack.i.l.bf16 %v4320_v2 }
0x1f12   :  { %v4486_v16 = vpop.eup %4485  ;;  %v3258_v7 = vsel %vm357_vm11, %v3254_v51, %v4326_v9  ;;  %v3259_v11 = vsel %vm357_vm11, %v3255_v1, %v4327_v45  ;;  %v3257_v26 = vsel %vm206_vm8, %v5298_v34, %v4322_v60  ;;  %v3256_v27 = vsel %vm206_vm8, %v5296_v28, %v4321_v15  ;;  %v5450_v34 = vld [vmem:[%s5598_s15 + $0x8] sm:$0x3f]  ;;  %v3755_v60 = vld [vmem:[%s5600_s14 + $0x80] sm:$0xff] }
0x1f13   :  { %v3109_v50 = vmul.f32 %v4486_v16, %v4478_v17  ;;  %v4330_v23 = vpop.permute.xlu1 %4329  ;;  %v3278_v28 = vrot.slane %v5450_v34, %v4692_v3  ;;  %v3756_v15 = vld [vmem:[%s5600_s14 + $0x88] sm:$0xff] }
0x1f14   :  { %v4332_v20 = vunpack.i.h.bf16 %v4330_v23  ;;  %v4331_v32 = vunpack.i.l.bf16 %v4330_v23 }
0x1f15   :  { %v3111_v22 = vpack.c.bf16 %v3109_v50, %v3108_v57 }
0x1f16   :  { %v3260_v38 = vsel %vm357_vm11, %v3256_v27, %v4331_v32  ;;  %v3261_v49 = vsel %vm357_vm11, %v3257_v26, %v4332_v20  ;;  %v3757_v20 = vld [vmem:[%s5600_s14 + $0x90] sm:$0xff]  ;;  %v3501_v32 = vpack.c.bf16 %v3756_v15, %v3755_v60  ;;  %v3759_v27 = vld [vmem:[%s5600_s14 + $0xa0] sm:$0xff] }
0x1f17   :  { %4164 = vmatmul.mubr.msk.bf16.vlgmr.msra.gmra.mrb[80].mxu1 %vm357_vm11, %v3111_v22 }
0x1f18   :  { %4183 = vmatprep.subr.bf16.mxu0 %v3501_v32 }
0x1fde   :  { %v3152_v19 = vpop.f32.mrb[76].mxu0 }
0x1fdf   :  { %v4159_v24 = vpop.f32.mrb[77].mxu0 }
0x1fe0   :  { %v3155_v25 = vpop.f32.mrb[78].mxu0 }
0x1fe1   :  { %v4333_v47 = vpack.i.bf16 %v3155_v25, %v3152_v19  ;;  %v4160_v30 = vpop.f32.mrb[79].mxu0 }
0x1fe3   :  { %4334 = vrot.lane.b32.xlu0 %v4333_v47, %s5629_s21 }
0x1fea   :  { %v3199_v43 = vpop.f32.mrb[80].mxu1 }
0x1feb   :  { %v4165_v44 = vpop.f32.mrb[81].mxu1 }
0x1fec   :  { %v3202_v29 = vpop.f32.mrb[82].mxu1 }
0x1fed   :  { %v4338_v46 = vpack.i.bf16 %v3202_v29, %v3199_v43  ;;  %v4166_v48 = vpop.f32.mrb[83].mxu1 }
0x1fef   :  { %4339 = vrot.lane.b32.xlu1 %v4338_v46, %s5629_s21 }
0x2055   :  { %v4335_v0 = vpop.permute.xlu0 %4334 }
0x2056   :  { %v4337_v4 = vunpack.i.h.bf16 %v4335_v0  ;;  %v4336_v62 = vunpack.i.l.bf16 %v4335_v0 }
0x2058   :  { %v3263_v14 = vsel %vm369_vm12, %v3259_v11, %v4337_v4  ;;  %v3262_v17 = vsel %vm369_vm12, %v3258_v7, %v4336_v62  ;;  %v3747_v7 = vld [vmem:[%s5599_s12 + $0x20] sm:$0xff]  ;;  %v3748_v11 = vld [vmem:[%s5599_s12 + $0x28] sm:$0xff] }
0x2059   :  { %v3271_v18 = vpack.c.bf16 %v3263_v14, %v3262_v17  ;;  %v3413_v14 = vpack.c.bf16 %v3748_v11, %v3747_v7  ;;  %v3749_v17 = vld [vmem:[%s5599_s12 + $0x30] sm:$0xff]  ;;  %v3770_v11 = vld [vmem:[%s5600_s14 + $0xf8] sm:$0xff] }
0x205b   :  { %4171 = vmatprep.mubr.msk.bf16.mxu0 %vm683_vm13, %v3271_v18  ;;  %4175 = vmatprep.subr.bf16.mxu1 %v3413_v14  ;;  %v3750_v18 = vld [vmem:[%s5599_s12 + $0x38] sm:$0xff] }
0x205c   :  { %4176 = vmatpush3.bf16.msra.mxu1 %v3413_v14  ;;  %v3414_v23 = vpack.c.bf16 %v3750_v18, %v3749_v17  ;;  %v3752_v17 = vld [vmem:[%s5601_s13 + $0x1] ss:$0 sm:$0xff] }
0x205e   :  { %4177 = vmatprep.subr.bf16.mxu1 %v3414_v23 }
0x2060   :  { %4178 = vmatpush3.bf16.msra.mxu1 %v3414_v23 }
0x2061   :  { %v4340_v12 = vpop.permute.xlu1 %4339 }
0x2062   :  { %v4342_v42 = vunpack.i.h.bf16 %v4340_v12  ;;  %v4341_v55 = vunpack.i.l.bf16 %v4340_v12  ;;  %v3758_v12 = vld [vmem:[%s5600_s14 + $0x98] sm:$0xff] }
0x2063   :  { %v3502_v26 = vpack.c.bf16 %v3758_v12, %v3757_v20 }
0x2064   :  { %v3264_v59 = vsel %vm369_vm12, %v3260_v38, %v4341_v55  ;;  %v3265_v6 = vsel %vm369_vm12, %v3261_v49, %v4342_v42  ;;  %v3760_v42 = vld [vmem:[%s5600_s14 + $0xa8] sm:$0xff]  ;;  %v3761_v38 = vld [vmem:[%s5600_s14 + $0xb0] sm:$0xff]  ;;  %v3762_v49 = vld [vmem:[%s5600_s14 + $0xb8] sm:$0xff] }
0x2065   :  { %v3272_v16 = vpack.c.bf16 %v3265_v6, %v3264_v59  ;;  %v3503_v55 = vpack.c.bf16 %v3760_v42, %v3759_v27  ;;  %v3504_v59 = vpack.c.bf16 %v3762_v49, %v3761_v38  ;;  %v3763_v6 = vld [vmem:[%s5600_s14 + $0xc0] sm:$0xff] }
0x2067   :  { %4172 = vmatmul.mubr.msk.bf16.vlgmr.msra.gmra.mrb[80].mxu0 %vm683_vm13, %v3272_v16  ;;  %v3764_v16 = vld [vmem:[%s5600_s14 + $0xc8] sm:$0xff] }
0x2068   :  { %4184 = vmatpush3.bf16.msra.mxu0 %v3501_v32 }
0x2069   :  { %4185 = vmatprep.subr.bf16.mxu0 %v3502_v26 }
0x206c   :  { %4186 = vmatpush3.bf16.msra.mxu0 %v3502_v26 }
0x206d   :  { %4187 = vmatprep.subr.bf16.mxu0 %v3503_v55 }
0x2070   :  { %4188 = vmatpush3.bf16.msra.mxu0 %v3503_v55 }
0x2071   :  { %4189 = vmatprep.subr.bf16.mxu0 %v3504_v59 }
0x2074   :  { %4190 = vmatpush3.bf16.msra.mxu0 %v3504_v59 }
0x213a   :  { %v4173_v57 = vpop.f32.mrb[80].mxu0 }
0x213b   :  { %v3319_v50 = vpop.f32.mrb[81].mxu0  ;;  %v3328_v22 = vadd.f32 %v4173_v57, %v3278_v28  ;;  %v3765_v57 = vld [vmem:[%s5600_s14 + $0xd0] sm:$0xff] }
0x213c   :  { %v3320_v36 = vadd.f32 %v3319_v50, %v3278_v28  ;;  %v4174_v13 = vpop.f32.mrb[82].mxu0  ;;  %v3766_v50 = vld [vmem:[%s5600_s14 + $0xd8] sm:$0xff] }
0x213d   :  { %v3322_v21 = vpop.f32.mrb[83].mxu0  ;;  %v3336_v25 = vadd.f32 %v3328_v22, %v5222_v41  ;;  %v3331_v47 = vadd.f32 %v4174_v13, %v3278_v28  ;;  %v3506_v22 = vpack.c.bf16 %v3766_v50, %v3765_v57 }
0x213e   :  { %v3334_v19 = vadd.f32 %v3320_v36, %v5215_v33  ;;  %v3323_v24 = vadd.f32 %v3322_v21, %v3278_v28  ;;  %v3505_v28 = vpack.c.bf16 %v3764_v16, %v3763_v6  ;;  %v3512_v6 = vrot.slane %v5450_v34, %v2025_v52 }
0x213f   :  { %v3337_v3 = vadd.f32 %v3331_v47, %v5224_v8  ;;  %v3344_v39 = vsel %vm683_vm13, %v3336_v25, 0.0 }
0x2140   :  { %v3335_v30 = vadd.f32 %v3323_v24, %v5217_v35  ;;  %v3338_v31 = vsel %vm683_vm13, %v3334_v19, 0.0  ;;  %4191 = vmatprep.subr.bf16.mxu0 %v3505_v28 }
0x2141   :  { %3339 = vadd.xlane.f32.xlu0 %v3338_v31  ;;  %v3347_v43 = vsel %vm683_vm13, %v3337_v3, 0.0  ;;  %4192 = vmatpush3.bf16.msra.mxu0 %v3505_v28 }
0x2142   :  { %v3341_v37 = vsel %vm683_vm13, %v3335_v30, 0.0  ;;  %4193 = vmatprep.subr.bf16.mxu0 %v3506_v22 }
0x2143   :  { %3342 = vadd.xlane.f32.xlu1 %v3341_v37 }
0x2145   :  { %3345 = vadd.xlane.f32.xlu0 %v3344_v39  ;;  %4194 = vmatpush3.bf16.msra.mxu0 %v3506_v22 }
0x2149   :  { %3348 = vadd.xlane.f32.xlu0 %v3347_v43  ;;  %v3393_v43 = vrot.slane %v5450_v34, %v4698_v5 }
0x21ce   :  { %v3340_v33 = vpop.xlane.xlu0 %3339 }
0x21cf   :  { %v3350_v44 = vmul.f32 0.03125, %v3340_v33 }
0x21d0   :  { %v3343_v41 = vpop.xlane.xlu1 %3342 }
0x21d1   :  { %v5462_v29 = vsub.f32 %v3334_v19, %v3350_v44  ;;  %v3351_v35 = vmul.f32 0.03125, %v3343_v41 }
0x21d2   :  { %v3346_v46 = vpop.xlane.xlu0 %3345 }
0x21d3   :  { %v5464_v48 = vsub.f32 %v3335_v30, %v3351_v35  ;;  %v3352_v54 = vmul.f32 0.03125, %v3346_v46  ;;  %v3358_v56 = vmul.f32 %v5462_v29, %v5462_v29 }
0x21d5   :  { %v5468_v8 = vsub.f32 %v3336_v25, %v3352_v54  ;;  %v3362_v61 = vsel %vm683_vm13, %v3358_v56, 0.0  ;;  %v3359_v63 = vmul.f32 %v5464_v48, %v5464_v48  ;;  %v3401_v54 = vrot.slane %v5450_v34, %v1917_v40  ;;  %v3767_v40 = vld [vmem:[%s5600_s14 + $0xe0] sm:$0xff] }
0x21d6   :  { %3363 = vadd.xlane.f32.xlu1 %v3362_v61  ;;  %v3349_v45 = vpop.xlane.xlu0 %3348 }
0x21d7   :  { %v3353_v9 = vmul.f32 0.03125, %v3349_v45  ;;  %v3365_v0 = vsel %vm683_vm13, %v3359_v63, 0.0  ;;  %v3360_v1 = vmul.f32 %v5468_v8, %v5468_v8 }
0x21d8   :  { %3366 = vadd.xlane.f32.xlu0 %v3365_v0 }
0x21d9   :  { %v5476_v51 = vsub.f32 %v3337_v3, %v3353_v9  ;;  %v3368_v2 = vsel %vm683_vm13, %v3360_v1, 0.0 }
0x21da   :  { %3369 = vadd.xlane.f32.xlu1 %v3368_v2 }
0x21db   :  { %v3361_v4 = vmul.f32 %v5476_v51, %v5476_v51 }
0x21dd   :  { %v3371_v62 = vsel %vm683_vm13, %v3361_v4, 0.0 }
0x21de   :  { %3372 = vadd.xlane.f32.xlu0 %v3371_v62 }
0x2263   :  { %v3364_v36 = vpop.xlane.xlu1 %3363 }
0x2264   :  { %v3374_v13 = vmul.f32 0.03125, %v3364_v36 }
0x2265   :  { %v3367_v21 = vpop.xlane.xlu0 %3366 }
0x2266   :  { %v3378_v19 = vadd.f32 1e-05, %v3374_v13  ;;  %v3375_v24 = vmul.f32 0.03125, %v3367_v21 }
0x2267   :  { %v3370_v25 = vpop.xlane.xlu1 %3369 }
0x2268   :  { %4487 = vrsqrt.f32 %v3378_v19  ;;  %v3379_v47 = vadd.f32 1e-05, %v3375_v24  ;;  %v3376_v30 = vmul.f32 0.03125, %v3370_v25 }
0x226a   :  { %4489 = vrsqrt.f32 %v3379_v47  ;;  %v3380_v31 = vadd.f32 1e-05, %v3376_v30 }
0x226b   :  { %v3373_v37 = vpop.xlane.xlu0 %3372 }
0x226c   :  { %4491 = vrsqrt.f32 %v3380_v31  ;;  %v3377_v3 = vmul.f32 0.03125, %v3373_v37 }
0x226e   :  { %v3381_v39 = vadd.f32 1e-05, %v3377_v3 }
0x2270   :  { %4493 = vrsqrt.f32 %v3381_v39 }
0x2272   :  { %v4488_v33 = vpop.eup %4487 }
0x2273   :  { %v3386_v44 = vmul.f32 %v4488_v33, %v5462_v29 }
0x2274   :  { %v4490_v41 = vpop.eup %4489 }
0x2275   :  { %v3387_v35 = vmul.f32 %v4490_v41, %v5464_v48  ;;  %v3394_v46 = vmul.f32 %v3393_v43, %v3386_v44 }
0x2276   :  { %v4492_v56 = vpop.eup %4491 }
0x2277   :  { %v3388_v61 = vmul.f32 %v4492_v56, %v5468_v8  ;;  %v3395_v63 = vmul.f32 %v3393_v43, %v3387_v35  ;;  %v3402_v45 = vadd.f32 %v3401_v54, %v3394_v46  ;;  %v3768_v8 = vld [vmem:[%s5600_s14 + $0xe8] sm:$0xff] }
0x2278   :  { %v3507_v7 = vpack.c.bf16 %v3768_v8, %v3767_v40 }
0x2279   :  { %v3403_v9 = vadd.f32 %v3401_v54, %v3395_v63  ;;  %v3396_v1 = vmul.f32 %v3393_v43, %v3388_v61 }
0x227a   :  { %v4494_v0 = vpop.eup %4493  ;;  %4195 = vmatprep.subr.bf16.mxu0 %v3507_v7 }
0x227b   :  { %v3389_v5 = vmul.f32 %v4494_v0, %v5476_v51  ;;  %v3411_v2 = vpack.c.bf16 %v3403_v9, %v3402_v45  ;;  %v3404_v48 = vadd.f32 %v3401_v54, %v3396_v1  ;;  %4196 = vmatpush3.bf16.msra.mxu0 %v3507_v7  ;;  %v3769_v51 = vld [vmem:[%s5600_s14 + $0xf0] sm:$0xff] }
0x227c   :  { %v3508_v14 = vpack.c.bf16 %v3770_v11, %v3769_v51 }
0x227d   :  { %v3397_v29 = vmul.f32 %v3393_v43, %v3389_v5  ;;  %4179 = vmatprep.mubr.msk.bf16.mxu1 %vm683_vm13, %v3411_v2 }
0x227e   :  { %4197 = vmatprep.subr.bf16.mxu0 %v3508_v14 }
0x227f   :  { %v3405_v4 = vadd.f32 %v3401_v54, %v3397_v29  ;;  %4198 = vmatpush3.bf16.msra.mxu0 %v3508_v14 }
0x2281   :  { %v3412_v62 = vpack.c.bf16 %v3405_v4, %v3404_v48 }
0x2283   :  { %4180 = vmatmul.mubr.msk.bf16.vlgmr.msra.gmra.mrb[84].mxu1 %vm683_vm13, %v3412_v62 }
0x2356   :  { %v4181_v18 = vpop.f32.mrb[84].mxu1 }
0x2357   :  { %v3472_v23 = vadd.f32 %v4181_v18, %v3752_v17  ;;  %v3463_v60 = vpop.f32.mrb[85].mxu1 }
0x2358   :  { %v3464_v15 = vadd.f32 %v3752_v17, %v3463_v60  ;;  %v4182_v20 = vpop.f32.mrb[86].mxu1 }
0x2359   :  { %v3475_v32 = vadd.f32 %v4182_v20, %v3752_v17  ;;  %v3466_v12 = vpop.f32.mrb[87].mxu1  ;;  %v3480_v27 = vmax.f32 %v3472_v23, 0.0  ;;  %v3621_v20 = vrot.slane %v5450_v34, %v2134_v58 }
0x235a   :  { %v3467_v26 = vadd.f32 %v3752_v17, %v3466_v12  ;;  %v3478_v55 = vmax.f32 %v3464_v15, 0.0  ;;  %v3629_v12 = vrot.slane %v5450_v34, %v2142_v53 }
0x235b   :  { %v3481_v42 = vmax.f32 %v3475_v32, 0.0 }
0x235c   :  { %v3479_v38 = vmax.f32 %v3467_v26, 0.0 }
0x235d   :  { %v3500_v49 = vpack.c.bf16 %v3481_v42, %v3480_v27 }
0x235e   :  { %v3499_v59 = vpack.c.bf16 %v3479_v38, %v3478_v55 }
0x2360   :  { %4199 = vmatprep.mubr.bf16.mxu0 %v3499_v59 }
0x2361   :  { %4200 = vmatmul.mubr.bf16.vlgmr.msra.gmra.mrb[84].mxu0 %v3500_v49 }
0x2434   :  { %v4201_v16 = vpop.f32.mrb[84].mxu0 }
0x2435   :  { %v3547_v28 = vpop.f32.mrb[85].mxu0  ;;  %v3556_v57 = vadd.f32 %v4201_v16, %v3512_v6 }
0x2436   :  { %v3548_v50 = vadd.f32 %v3547_v28, %v3512_v6  ;;  %v4202_v22 = vpop.f32.mrb[86].mxu0 }
0x2437   :  { %v3550_v36 = vpop.f32.mrb[87].mxu0  ;;  %v3559_v21 = vadd.f32 %v4202_v22, %v3512_v6  ;;  %v3564_v24 = vadd.f32 %v3556_v57, %v3404_v48 }
0x2438   :  { %v3562_v13 = vadd.f32 %v3548_v50, %v3402_v45  ;;  %v3551_v19 = vadd.f32 %v3550_v36, %v3512_v6 }
0x2439   :  { %v3565_v30 = vadd.f32 %v3559_v21, %v3405_v4  ;;  %v3572_v52 = vsel %vm683_vm13, %v3564_v24, 0.0  ;;  %v23_v4 = vstv %s5602_s17 }
0x243a   :  { %v3563_v25 = vadd.f32 %v3551_v19, %v3403_v9  ;;  %v3566_v47 = vsel %vm683_vm13, %v3562_v13, 0.0  ;;  %24 = vst [vmem:[#allocation2] sm:$0x1] %v23_v4 }
0x243b   :  { %3567 = vadd.xlane.f32.xlu1 %v3566_v47  ;;  %v3575_v37 = vsel %vm683_vm13, %v3565_v30, 0.0 }
0x243c   :  { %v3569_v31 = vsel %vm683_vm13, %v3563_v25, 0.0 }
0x243d   :  { %3570 = vadd.xlane.f32.xlu0 %v3569_v31 }
0x243f   :  { %3573 = vadd.xlane.f32.xlu1 %v3572_v52 }
0x2441   :  { %3576 = vadd.xlane.f32.xlu0 %v3575_v37 }
0x24c8   :  { %v3568_v3 = vpop.xlane.xlu1 %3567 }
0x24c9   :  { %v3578_v39 = vmul.f32 0.03125, %v3568_v3 }
0x24ca   :  { %v3571_v43 = vpop.xlane.xlu0 %3570 }
0x24cb   :  { %v3582_v33 = vsub.f32 %v3562_v13, %v3578_v39  ;;  %v3579_v44 = vmul.f32 0.03125, %v3571_v43 }
0x24cc   :  { %v3574_v41 = vpop.xlane.xlu1 %3573 }
0x24cd   :  { %v3583_v35 = vsub.f32 %v3563_v25, %v3579_v44  ;;  %v3580_v46 = vmul.f32 0.03125, %v3574_v41  ;;  %v3586_v54 = vmul.f32 %v3582_v33, %v3582_v33 }
0x24ce   :  { %v3577_v56 = vpop.xlane.xlu0 %3576 }
0x24cf   :  { %v3584_v61 = vsub.f32 %v3564_v24, %v3580_v46  ;;  %v3581_v63 = vmul.f32 0.03125, %v3577_v56  ;;  %v3590_v45 = vsel %vm683_vm13, %v3586_v54, 0.0  ;;  %v3587_v9 = vmul.f32 %v3583_v35, %v3583_v35  ;;  %v3771_v46 = vld [vmem:[%s5603_s16] ss:$0 sm:$0xff] }
0x24d0   :  { %3591 = vadd.xlane.f32.xlu1 %v3590_v45 }
0x24d1   :  { %v3585_v0 = vsub.f32 %v3565_v30, %v3581_v63  ;;  %v3593_v1 = vsel %vm683_vm13, %v3587_v9, 0.0  ;;  %v3588_v5 = vmul.f32 %v3584_v61, %v3584_v61  ;;  %v3772_v63 = vld [vmem:[#allocation2] ss:$0 sm:$0xff] }
0x24d2   :  { %3594 = vadd.xlane.f32.xlu0 %v3593_v1 }
0x24d3   :  { %v3596_v2 = vsel %vm683_vm13, %v3588_v5, 0.0  ;;  %v3589_v29 = vmul.f32 %v3585_v0, %v3585_v0 }
0x24d4   :  { %3597 = vadd.xlane.f32.xlu1 %v3596_v2 }
0x24d5   :  { %v3599_v48 = vsel %vm683_vm13, %v3589_v29, 0.0 }
0x24d6   :  { %3600 = vadd.xlane.f32.xlu0 %v3599_v48 }
0x255d   :  { %v3592_v62 = vpop.xlane.xlu1 %3591 }
0x255e   :  { %v3602_v40 = vmul.f32 0.03125, %v3592_v62 }
0x255f   :  { %v3595_v8 = vpop.xlane.xlu0 %3594 }
0x2560   :  { %v3606_v7 = vadd.f32 1e-05, %v3602_v40  ;;  %v3603_v51 = vmul.f32 0.03125, %v3595_v8 }
0x2561   :  { %v3598_v11 = vpop.xlane.xlu1 %3597 }
0x2562   :  { %4495 = vrsqrt.f32 %v3606_v7  ;;  %v3607_v14 = vadd.f32 1e-05, %v3603_v51  ;;  %v3604_v17 = vmul.f32 0.03125, %v3598_v11 }
0x2563   :  { %v3601_v18 = vpop.xlane.xlu0 %3600 }
0x2564   :  { %4497 = vrsqrt.f32 %v3607_v14  ;;  %v3608_v23 = vadd.f32 1e-05, %v3604_v17  ;;  %v3605_v60 = vmul.f32 0.03125, %v3601_v18 }
0x2566   :  { %4499 = vrsqrt.f32 %v3608_v23  ;;  %v3609_v15 = vadd.f32 1e-05, %v3605_v60 }
0x2568   :  { %4501 = vrsqrt.f32 %v3609_v15 }
0x256c   :  { %v4496_v32 = vpop.eup %4495 }
0x256d   :  { %v3614_v26 = vmul.f32 %v4496_v32, %v3582_v33 }
0x256e   :  { %v4498_v27 = vpop.eup %4497 }
0x256f   :  { %v3622_v42 = vmul.f32 %v3621_v20, %v3614_v26  ;;  %v3615_v55 = vmul.f32 %v4498_v27, %v3583_v35 }
0x2570   :  { %v4500_v38 = vpop.eup %4499 }
0x2571   :  { %v3630_v49 = vadd.f32 %v3629_v12, %v3622_v42  ;;  %v3623_v59 = vmul.f32 %v3621_v20, %v3615_v55  ;;  %v3616_v6 = vmul.f32 %v4500_v38, %v3584_v61 }
0x2572   :  { %v4502_v16 = vpop.eup %4501 }
0x2573   :  { %v3631_v28 = vadd.f32 %v3629_v12, %v3623_v59  ;;  %v3624_v57 = vmul.f32 %v3621_v20, %v3616_v6  ;;  %v3617_v50 = vmul.f32 %v4502_v16, %v3585_v0  ;;  %v3634_v58 = vsel %vm683_vm13, %v3630_v49, 0.0 }
0x2575   :  { %v3632_v22 = vadd.f32 %v3629_v12, %v3624_v57  ;;  %v3625_v36 = vmul.f32 %v3621_v20, %v3617_v50  ;;  %v3635_v10 = vsel %vm683_vm13, %v3631_v28, 0.0 }
0x2576   :  { %v3636_v13 = vadd.f32 %v3635_v10, %v3634_v58 }
0x2577   :  { %v3633_v53 = vadd.f32 %v3629_v12, %v3625_v36  ;;  %v3645_v21 = vsel %vm683_vm13, %v3632_v22, 0.0 }
0x2578   :  { %v3637_v34 = vrot.slane %v3636_v13, 4 }
0x2579   :  { %v3646_v19 = vsel %vm683_vm13, %v3633_v53, 0.0 }
0x257a   :  { %v3638_v24 = vadd.f32 %v3637_v34, %v3636_v13  ;;  %v3647_v25 = vadd.f32 %v3646_v19, %v3645_v21 }
0x257c   :  { %v3639_v47 = vrot.slane %v3638_v24, 2  ;;  %v3648_v30 = vrot.slane %v3647_v25, 4 }
0x257e   :  { %v3640_v31 = vadd.f32 %v3639_v47, %v3638_v24  ;;  %v3649_v52 = vadd.f32 %v3648_v30, %v3647_v25 }
0x2580   :  { %v3641_v37 = vrot.slane %v3640_v31, 1  ;;  %v3650_v3 = vrot.slane %v3649_v52, 2 }
0x2582   :  { %v3651_v39 = vadd.f32 %v3650_v3, %v3649_v52  ;;  %v3642_v43 = vadd.f32 %v3641_v37, %v3640_v31 }
0x2584   :  { %v3652_v33 = vrot.slane %v3651_v39, 1  ;;  %v3644_v41 = vmul.f32 0.0625, %v3642_v43 }
0x2586   :  { %v3653_v44 = vadd.f32 %v3652_v33, %v3651_v39 }
0x2588   :  { %v3654_v35 = vmul.f32 0.0625, %v3653_v44 }
0x258a   :  { %v3656_v54 = vsel %vm3655_vm15, %v3644_v41, %v3654_v35 }
0x258b   :  { %v3664_v56 = vmul.f32 %v3771_v46, %v3656_v54 }
0x258d   :  { %v3666_v61 = vsel %vm3665_vm0, %v3664_v56, 0.0 }
0x258e   :  { %3667 = vadd.xlane.f32.xlu1 %v3666_v61 }
0x261b   :  { %v3668_v45 = vpop.xlane.xlu1 %3667 }
0x261c   :  { %v3676_v9 = vadd.f32 %v3772_v63, %v3668_v45 }
0x261e   :  { %3678 = vst.msk [vmem:[%s5604_s18] sm:$0x3] %vm3677_vm1, %v3676_v9 }

</bundles_post_ra>
